<compile_context>
chip_gen: v6e
topology: v6e:2x2x1
jax: 0.10.0
libtpu: 0.0.40
codegen_flags: <defaults>
</compile_context>

<pallas_src>
import math

import jax
import jax.numpy as jnp
from jax import lax
from jax.experimental import pallas as pl
from jax.experimental.pallas import tpu as pltpu

# ----------------------------------------------------------------------------
# Configuration consistent with DiffusionTransformer.__init__ (small sizes)
# ----------------------------------------------------------------------------
IO_CHANNELS = 8                          # io_channels
EMBED_DIM = 64                           # embed_dim
DEPTH = 2                                # depth
NUM_HEADS = 2                            # num_heads
DIM_HEADS = EMBED_DIM // NUM_HEADS       # 32
ROT_DIM = max(DIM_HEADS // 2, 32)        # RotaryEmbedding dim -> 32 (== DIM_HEADS)
HALF_ROT = ROT_DIM // 2                  # 16
GLOBAL_COND_DIM = 16                     # global_cond_dim (projected to EMBED_DIM)
T_FEAT = 256                             # timestep_features_dim
FF_INNER = EMBED_DIM * 4                 # FeedForward inner dim (mult=4)
CFG_SCALE = 2.0

BATCH = 2
SEQ_T = 16                               # x is (B, IO_CHANNELS, SEQ_T)
SEQ_S = SEQ_T + 1                        # + conditioning token (kept at row SEQ_T)

WDT = jnp.bfloat16                       # weight storage dtype (MXU operands)

assert ROT_DIM == DIM_HEADS              # full rotary rotation, no unrotated remainder


# ----------------------------------------------------------------------------
# Fused forward kernel: one grid step == one batch element (cond == uncond here,
# so the CFG combine is the identity and is applied in the epilogue).
# ----------------------------------------------------------------------------
def _fused_forward_kernel(
    x_ref, t_ref, g_ref,                                   # per-batch inputs
    rot_ref, fw_ref,                                       # rotary table / fourier weights
    g_w1_ref, g_w2_ref,                                    # to_global_embed
    t_w1_ref, t_b1_ref, t_w2_ref, t_b2_ref,                # to_timestep_embed
    pre_w_ref, proj_in_ref,                                # preprocess conv / project_in
    norm_g_ref, qkv_w_ref, out_w_ref,                      # per-layer (stacked on DEPTH)
    ff_w1_ref, ff_b1_ref, ff_w2_ref, ff_b2_ref,
    proj_out_ref, post_w_ref,                              # project_out / postprocess conv
    o_ref,                                                 # (1, C, T) output block
    h_ref,                                                 # VMEM scratch (SEQ_S, EMBED_DIM) f32
):
    f32 = jnp.float32

    def mm(a, w):            # bf16 x bf16 on the MXU, f32 accumulation
        return jnp.dot(a.astype(WDT), w, preferred_element_type=f32)

    def layer_norm(v, gamma):  # bias-less LayerNorm (beta buffer is zeros), eps=1e-5
        mu = jnp.mean(v, axis=-1, keepdims=True)
        vc = v - mu
        var = jnp.mean(vc * vc, axis=-1, keepdims=True)
        return vc * lax.rsqrt(var + 1e-5) * gamma

    def silu(v):
        return v * jax.nn.sigmoid(v)

    def rotate_half_heads(t):
        # per 32-wide head segment [x1 | x2] -> [-x2 | x1]; pure lane data movement
        # (VPU/XLU), no MXU permutation matmul.
        parts = []
        for base in range(0, t.shape[-1], DIM_HEADS):
            parts.append(-t[:, base + HALF_ROT:base + DIM_HEADS])
            parts.append(t[:, base:base + HALF_ROT])
        return jnp.concatenate(parts, axis=-1)

    # ---- conditioning token: to_global_embed(g) + to_timestep_embed(Fourier(t)) ----
    g1 = silu(mm(g_ref[0], g_w1_ref[...]))                           # (1, D)
    g2 = mm(g1, g_w2_ref[...])                                       # (1, D)
    f = t_ref[0] * fw_ref[...]                                       # (1,1)*(1,128): 2*pi*t*W (2*pi pre-folded)
    feats = jnp.concatenate([jnp.cos(f), jnp.sin(f)], axis=-1)       # (1, 256)
    te = silu(mm(feats, t_w1_ref[...]) + t_b1_ref[...])              # (1, D)
    te = mm(te, t_w2_ref[...]) + t_b2_ref[...]
    token = g2 + te                                                  # (1, D)

    # ---- preprocess 1x1 conv + residual (in (C,T) layout), project_in -> (T, D) ----
    x_ct = x_ref[0]                                                  # (C, T)
    x_ct = x_ct + jnp.dot(pre_w_ref[...], x_ct.astype(WDT), preferred_element_type=f32)
    xp = lax.dot_general(x_ct.astype(WDT), proj_in_ref[...],
                         (((0,), (0,)), ((), ())),
                         preferred_element_type=f32)                 # (T, D)

    # hidden state: rows 0..T-1 = sequence tokens, row T = conditioning token.
    # Attention is unmasked, so this equals the original "prepend" layout up to a row
    # permutation; the token's rotary table row still carries position 0.
    h_ref[0:SEQ_T, :] = xp
    h_ref[SEQ_T:SEQ_S, :] = token
    h = h_ref[...]                                                   # (S, D) f32

    cos_qk = rot_ref[0]                                              # (S, 2D): q half pre-scaled by 1/sqrt(dh)
    sin_qk = rot_ref[1]

    for l in range(DEPTH):
        # ---- self-attention branch ----
        hn = layer_norm(h, norm_g_ref[l, 0])                         # (S, D)
        qkv = mm(hn, qkv_w_ref[l])                                   # (S, 3D): single fused MXU op
        qk = qkv[:, :2 * EMBED_DIM]                                  # (S, 2D) = q || k
        v = qkv[:, 2 * EMBED_DIM:].astype(WDT)                       # (S, D)
        # rotary for q and k at once: t*cos + rotate_half(t)*sin (VPU/XLU only)
        qk = qk * cos_qk + rotate_half_heads(qk) * sin_qk

        o_heads = []
        for hd in range(NUM_HEADS):
            q_h = qk[:, hd * DIM_HEADS:(hd + 1) * DIM_HEADS]                       # scaled q
            k_h = qk[:, EMBED_DIM + hd * DIM_HEADS:EMBED_DIM + (hd + 1) * DIM_HEADS]
            v_h = v[:, hd * DIM_HEADS:(hd + 1) * DIM_HEADS]
            dots = lax.dot_general(q_h.astype(WDT), k_h.astype(WDT),
                                   (((1,), (1,)), ((), ())),
                                   preferred_element_type=f32)       # (S, S)
            m = jnp.max(dots, axis=-1, keepdims=True)
            p = jnp.exp(dots - m)
            inv = pl.reciprocal(jnp.sum(p, axis=-1, keepdims=True), approx=True)
            o_heads.append(jnp.dot((p * inv).astype(WDT), v_h,
                                   preferred_element_type=f32))      # (S, DH)
        o = jnp.concatenate(o_heads, axis=-1)                        # (S, D)
        h = h + mm(o, out_w_ref[l])                                  # fused out-projection

        # ---- feed-forward (GLU) branch ----
        hn = layer_norm(h, norm_g_ref[l, 1])
        a_full = mm(hn, ff_w1_ref[l]) + ff_b1_ref[l]                 # (S, 2*FF): fused value|gate
        u = a_full[:, :FF_INNER] * silu(a_full[:, FF_INNER:])        # slice at lane 256 (aligned)
        h = h + mm(u, ff_w2_ref[l]) + ff_b2_ref[l]

    # ---- project_out straight into (C, S), drop token column, postprocess conv ----
    full_ct = lax.dot_general(proj_out_ref[...], h.astype(WDT),
                              (((0,), (1,)), ((), ())),
                              preferred_element_type=f32)            # (C, S) == (h @ Wout)^T
    out_ct = full_ct[:, :SEQ_T]                                      # (C, T): drop conditioning row
    out_ct = out_ct + jnp.dot(post_w_ref[...], out_ct.astype(WDT),
                              preferred_element_type=f32)
    # CFG combine: cond/uncond inputs are identical (global-cond-only branch), so
    # uncond + (cond - uncond)*CFG_SCALE == cond bit-exactly -> write it directly.
    o_ref[0] = out_ct.astype(o_ref.dtype)


# ----------------------------------------------------------------------------
# Static rotary table: cos/sin for q||k at 128 lanes, q half pre-scaled.
# ----------------------------------------------------------------------------
def _rotary_table():
    inv_freq = 1.0 / (10000.0 ** (jnp.arange(0, ROT_DIM, 2, dtype=jnp.float32) / ROT_DIM))
    # token lives at row SEQ_T but is the original *prepended* token -> rotary pos 0;
    # sequence rows 0..SEQ_T-1 carry positions 1..SEQ_T.
    pos = jnp.concatenate([jnp.arange(1, SEQ_T + 1, dtype=jnp.float32),
                           jnp.zeros((1,), jnp.float32)])            # (S,)
    half = pos[:, None] * inv_freq[None, :]                          # (S, 16)
    cos_h, sin_h = jnp.cos(half), jnp.sin(half)
    # per head freqs = cat(f, f) -> 32 wide; 2 heads share -> tile 4x = 64 wide.
    cos64 = jnp.tile(cos_h, (1, EMBED_DIM // HALF_ROT))              # (S, 64)
    sin64 = jnp.tile(sin_h, (1, EMBED_DIM // HALF_ROT))
    scale = 1.0 / math.sqrt(DIM_HEADS)                               # attn scale folded into q half
    cos_qk = jnp.concatenate([cos64 * scale, cos64], axis=-1)        # (S, 128)
    sin_qk = jnp.concatenate([sin64 * scale, sin64], axis=-1)
    return jnp.stack([cos_qk, sin_qk], axis=0)                       # (2, S, 128)


# ----------------------------------------------------------------------------
# Forward wrapper: exactly one pallas_call, no surrounding XLA glue.
# ----------------------------------------------------------------------------
@jax.jit
def diffusion_transformer_forward(params, x, t, global_embed):
    # TODO(synk): torch.utils.checkpoint is a training-only rematerialization; no-op here.
    B, C, T = x.shape
    rot = _rotary_table()

    per_batch = [x, t.reshape(B, 1, 1), global_embed.reshape(B, 1, GLOBAL_COND_DIM)]
    shared = [
        rot, params["fourier_w"],
        params["g_w1"], params["g_w2"],
        params["t_w1"], params["t_b1"], params["t_w2"], params["t_b2"],
        params["pre_conv_w"], params["proj_in_w"],
        params["norm_g"], params["qkv_w"], params["out_w"],
        params["ff_w1"], params["ff_b1"], params["ff_w2"], params["ff_b2"],
        params["proj_out_w"], params["post_conv_w"],
    ]

    def batch_spec(a):
        nd = a.ndim
        return pl.BlockSpec((1,) + a.shape[1:],
                            lambda b, _nd=nd: (b,) + (0,) * (_nd - 1))

    def full_spec(a):
        nd = a.ndim
        return pl.BlockSpec(a.shape, lambda b, _nd=nd: (0,) * _nd)

    # Rough cost hints so XLA schedules sensibly around the custom call.
    macs = (
        GLOBAL_COND_DIM * EMBED_DIM + EMBED_DIM * EMBED_DIM
        + T_FEAT * EMBED_DIM + EMBED_DIM * EMBED_DIM
        + 2 * IO_CHANNELS * IO_CHANNELS * SEQ_T
        + SEQ_T * IO_CHANNELS * EMBED_DIM
        + SEQ_S * EMBED_DIM * IO_CHANNELS
        + DEPTH * (SEQ_S * EMBED_DIM * 3 * EMBED_DIM
                   + 2 * NUM_HEADS * SEQ_S * SEQ_S * DIM_HEADS
                   + SEQ_S * EMBED_DIM * EMBED_DIM
                   + SEQ_S * EMBED_DIM * 2 * FF_INNER
                   + SEQ_S * FF_INNER * EMBED_DIM)
    )
    cost = pl.CostEstimate(
        flops=2 * B * macs,
        transcendentals=B * (T_FEAT + 2 * EMBED_DIM
                             + DEPTH * (NUM_HEADS * SEQ_S * SEQ_S + SEQ_S * FF_INNER)),
        bytes_accessed=int(sum(a.size * a.dtype.itemsize for a in per_batch + shared)
                           + B * IO_CHANNELS * SEQ_T * 4),
    )

    out = pl.pallas_call(
        _fused_forward_kernel,
        out_shape=jax.ShapeDtypeStruct((B, C, T), jnp.float32),
        grid=(B,),
        in_specs=[batch_spec(a) for a in per_batch] + [full_spec(a) for a in shared],
        out_specs=pl.BlockSpec((1, C, T), lambda b: (b, 0, 0)),
        scratch_shapes=[pltpu.VMEM((SEQ_S, EMBED_DIM), jnp.float32)],
        compiler_params=pltpu.CompilerParams(dimension_semantics=("parallel",)),
        cost_estimate=cost,
    )(*per_batch, *shared)
    return out                                                        # (B, C, T)


# ----------------------------------------------------------------------------
# Deterministic parameter init (shapes from the PyTorch __init__; weights stored
# transposed (in, out) / (out_ch, in_ch) and in bf16 so kernels compute x @ W).
# ----------------------------------------------------------------------------
def init_params(key):
    keys = iter(jax.random.split(key, 24))

    def nrm(shape, scale=0.02, dtype=WDT):
        return (jax.random.normal(next(keys), shape, jnp.float32) * scale).astype(dtype)

    D, C, G = EMBED_DIM, IO_CHANNELS, GLOBAL_COND_DIM
    return {
        # FourierFeatures weight (out/2, 1), std=1; stored as a row with 2*pi pre-folded
        "fourier_w": nrm((1, T_FEAT // 2), 2.0 * math.pi, jnp.float32),
        "g_w1": nrm((G, D)), "g_w2": nrm((D, D)),                    # to_global_embed (no bias)
        "t_w1": nrm((T_FEAT, D)), "t_b1": nrm((1, D), 0.02, jnp.float32),
        "t_w2": nrm((D, D)), "t_b2": nrm((1, D), 0.02, jnp.float32),
        # Conv1d(C,C,1,bias=False) stored (C_out, C_in); reference zero-inits these
        "pre_conv_w": nrm((C, C)), "post_conv_w": nrm((C, C)),
        "proj_in_w": nrm((C, D)), "proj_out_w": nrm((D, C)),         # ContinuousTransformer project_in/out
        # per-layer params stacked on a leading DEPTH axis
        "norm_g": jnp.ones((DEPTH, 2, 1, D), jnp.float32)
                  + nrm((DEPTH, 2, 1, D), 0.02, jnp.float32),        # [:,0]=pre_norm, [:,1]=ff_norm
        "qkv_w": nrm((DEPTH, D, 3 * D)),                             # to_qkv fused: [q_h0 q_h1 | k_h0 k_h1 | v_h0 v_h1]
        "out_w": nrm((DEPTH, D, D)),                                 # to_out (ref zero-inits; randomised)
        "ff_w1": nrm((DEPTH, D, 2 * FF_INNER)),                      # GLU proj: [:FF]=value, [FF:]=gate
        "ff_b1": nrm((DEPTH, 1, 2 * FF_INNER), 0.02, jnp.float32),
        "ff_w2": nrm((DEPTH, FF_INNER, D)),                          # FF out (ref zero-inits; randomised)
        "ff_b2": nrm((DEPTH, 1, D), 0.02, jnp.float32),
    }


if __name__ == "__main__":
    key = jax.random.PRNGKey(0)
    pk, xk, tk, gk = jax.random.split(key, 4)
    params = init_params(pk)

    x = jax.random.normal(xk, (BATCH, IO_CHANNELS, SEQ_T), jnp.float32)       # (B, C, T)
    t = jax.random.uniform(tk, (BATCH,), jnp.float32)                         # diffusion timestep
    global_embed = jax.random.normal(gk, (BATCH, GLOBAL_COND_DIM), jnp.float32)

    out = diffusion_transformer_forward(params, x, t, global_embed)
    out = jax.block_until_ready(out)
    assert out.shape == (BATCH, IO_CHANNELS, SEQ_T), out.shape
    assert bool(jnp.all(jnp.isfinite(out)))
    print("KERNEL_OK")
</pallas_src>

<mosaic_0001>
module attributes {stable_mosaic.version = 11 : i64} {
  func.func @_fused_forward_kernel(%arg0: i32, %arg1: memref<1x8x16xf32, #tpu.memory_space<vmem>>, %arg2: memref<1x1x1xf32, #tpu.memory_space<vmem>>, %arg3: memref<1x1x16xf32, #tpu.memory_space<vmem>>, %arg4: memref<2x17x128xf32, #tpu.memory_space<vmem>>, %arg5: memref<1x128xf32, #tpu.memory_space<vmem>>, %arg6: memref<16x64xbf16, #tpu.memory_space<vmem>>, %arg7: memref<64x64xbf16, #tpu.memory_space<vmem>>, %arg8: memref<256x64xbf16, #tpu.memory_space<vmem>>, %arg9: memref<1x64xf32, #tpu.memory_space<vmem>>, %arg10: memref<64x64xbf16, #tpu.memory_space<vmem>>, %arg11: memref<1x64xf32, #tpu.memory_space<vmem>>, %arg12: memref<8x8xbf16, #tpu.memory_space<vmem>>, %arg13: memref<8x64xbf16, #tpu.memory_space<vmem>>, %arg14: memref<2x2x1x64xf32, #tpu.memory_space<vmem>>, %arg15: memref<2x64x192xbf16, #tpu.memory_space<vmem>>, %arg16: memref<2x64x64xbf16, #tpu.memory_space<vmem>>, %arg17: memref<2x64x512xbf16, #tpu.memory_space<vmem>>, %arg18: memref<2x1x512xf32, #tpu.memory_space<vmem>>, %arg19: memref<2x256x64xbf16, #tpu.memory_space<vmem>>, %arg20: memref<2x1x64xf32, #tpu.memory_space<vmem>>, %arg21: memref<64x8xbf16, #tpu.memory_space<vmem>>, %arg22: memref<8x8xbf16, #tpu.memory_space<vmem>>, %arg23: memref<1x8x16xf32, #tpu.memory_space<vmem>>, %arg24: memref<17x64xf32, #tpu.memory_space<vmem>>) attributes {dimension_semantics = [#tpu.dimension_semantics<parallel>], iteration_bounds = array<i64: 2>, scalar_prefetch = 0 : i64, scratch_operands = 1 : i64, tpu.core_type = #tpu.core_type<tc>, window_params = [{transform_indices = @transform_0, window_bounds = array<i64: 1, 8, 16>}, {transform_indices = @transform_1, window_bounds = array<i64: 1, 1, 1>}, {transform_indices = @transform_2, window_bounds = array<i64: 1, 1, 16>}, {pipeline_mode = #tpu.pipeline_mode<synchronous>, transform_indices = @transform_3, window_bounds = array<i64: 2, 17, 128>}, {pipeline_mode = #tpu.pipeline_mode<synchronous>, transform_indices = @transform_4, window_bounds = array<i64: 1, 128>}, {pipeline_mode = #tpu.pipeline_mode<synchronous>, transform_indices = @transform_5, window_bounds = array<i64: 16, 64>}, {pipeline_mode = #tpu.pipeline_mode<synchronous>, transform_indices = @transform_6, window_bounds = array<i64: 64, 64>}, {pipeline_mode = #tpu.pipeline_mode<synchronous>, transform_indices = @transform_7, window_bounds = array<i64: 256, 64>}, {pipeline_mode = #tpu.pipeline_mode<synchronous>, transform_indices = @transform_8, window_bounds = array<i64: 1, 64>}, {pipeline_mode = #tpu.pipeline_mode<synchronous>, transform_indices = @transform_9, window_bounds = array<i64: 64, 64>}, {pipeline_mode = #tpu.pipeline_mode<synchronous>, transform_indices = @transform_10, window_bounds = array<i64: 1, 64>}, {pipeline_mode = #tpu.pipeline_mode<synchronous>, transform_indices = @transform_11, window_bounds = array<i64: 8, 8>}, {pipeline_mode = #tpu.pipeline_mode<synchronous>, transform_indices = @transform_12, window_bounds = array<i64: 8, 64>}, {pipeline_mode = #tpu.pipeline_mode<synchronous>, transform_indices = @transform_13, window_bounds = array<i64: 2, 2, 1, 64>}, {pipeline_mode = #tpu.pipeline_mode<synchronous>, transform_indices = @transform_14, window_bounds = array<i64: 2, 64, 192>}, {pipeline_mode = #tpu.pipeline_mode<synchronous>, transform_indices = @transform_15, window_bounds = array<i64: 2, 64, 64>}, {pipeline_mode = #tpu.pipeline_mode<synchronous>, transform_indices = @transform_16, window_bounds = array<i64: 2, 64, 512>}, {pipeline_mode = #tpu.pipeline_mode<synchronous>, transform_indices = @transform_17, window_bounds = array<i64: 2, 1, 512>}, {pipeline_mode = #tpu.pipeline_mode<synchronous>, transform_indices = @transform_18, window_bounds = array<i64: 2, 256, 64>}, {pipeline_mode = #tpu.pipeline_mode<synchronous>, transform_indices = @transform_19, window_bounds = array<i64: 2, 1, 64>}, {pipeline_mode = #tpu.pipeline_mode<synchronous>, transform_indices = @transform_20, window_bounds = array<i64: 64, 8>}, {pipeline_mode = #tpu.pipeline_mode<synchronous>, transform_indices = @transform_21, window_bounds = array<i64: 8, 8>}, {transform_indices = @transform_22, window_bounds = array<i64: 1, 8, 16>}]} {
    %c0 = arith.constant 0 : index
    %c0_0 = arith.constant 0 : index
    %c0_1 = arith.constant 0 : index
    %0 = vector.load %arg3[%c0, %c0_0, %c0_1] : memref<1x1x16xf32, #tpu.memory_space<vmem>>, vector<1x1x16xf32>
    %1 = vector.shape_cast %0 : vector<1x1x16xf32> to vector<1x16xf32>
    %c0_2 = arith.constant 0 : index
    %c0_3 = arith.constant 0 : index
    %2 = vector.load %arg6[%c0_2, %c0_3] : memref<16x64xbf16, #tpu.memory_space<vmem>>, vector<16x64xbf16>
    %3 = arith.truncf %1 : vector<1x16xf32> to vector<1x16xbf16>
    %cst = arith.constant dense<0.000000e+00> : vector<1x64xf32>
    %4 = tpu.matmul %3, %2, %cst {dimension_numbers = #tpu.dot_dimension_numbers<[1], [0], [0], [1], [0, 0, 1, 1], [], []>} : vector<1x16xbf16>, vector<16x64xbf16>, vector<1x64xf32> -> vector<1x64xf32>
    %5 = arith.negf %4 : vector<1x64xf32>
    %6 = math.exp %5 : vector<1x64xf32>
    %cst_4 = arith.constant 1.000000e+00 : f32
    %7 = vector.broadcast %cst_4 : f32 to vector<1x64xf32>
    %8 = arith.addf %7, %6 : vector<1x64xf32>
    %9 = arith.divf %7, %8 : vector<1x64xf32>
    %10 = arith.mulf %4, %9 : vector<1x64xf32>
    %c0_5 = arith.constant 0 : index
    %c0_6 = arith.constant 0 : index
    %11 = vector.load %arg7[%c0_5, %c0_6] : memref<64x64xbf16, #tpu.memory_space<vmem>>, vector<64x64xbf16>
    %12 = arith.truncf %10 : vector<1x64xf32> to vector<1x64xbf16>
    %cst_7 = arith.constant dense<0.000000e+00> : vector<1x64xf32>
    %13 = tpu.matmul %12, %11, %cst_7 {dimension_numbers = #tpu.dot_dimension_numbers<[1], [0], [0], [1], [0, 0, 1, 1], [], []>} : vector<1x64xbf16>, vector<64x64xbf16>, vector<1x64xf32> -> vector<1x64xf32>
    %c0_8 = arith.constant 0 : index
    %c0_9 = arith.constant 0 : index
    %c0_10 = arith.constant 0 : index
    %14 = vector.load %arg2[%c0_8, %c0_9, %c0_10] : memref<1x1x1xf32, #tpu.memory_space<vmem>>, vector<1x1x1xf32>
    %15 = vector.shape_cast %14 : vector<1x1x1xf32> to vector<1x1xf32>
    %c0_11 = arith.constant 0 : index
    %c0_12 = arith.constant 0 : index
    %16 = vector.load %arg5[%c0_11, %c0_12] : memref<1x128xf32, #tpu.memory_space<vmem>>, vector<1x128xf32>
    %17 = vector.broadcast %15 : vector<1x1xf32> to vector<1x128xf32>
    %18 = arith.mulf %17, %16 : vector<1x128xf32>
    %19 = math.cos %18 : vector<1x128xf32>
    %20 = math.sin %18 : vector<1x128xf32>
    %21 = tpu.concatenate %19, %20 in 1 : vector<1x128xf32>, vector<1x128xf32> -> vector<1x256xf32>
    %c0_13 = arith.constant 0 : index
    %c0_14 = arith.constant 0 : index
    %22 = vector.load %arg8[%c0_13, %c0_14] : memref<256x64xbf16, #tpu.memory_space<vmem>>, vector<256x64xbf16>
    %23 = arith.truncf %21 : vector<1x256xf32> to vector<1x256xbf16>
    %cst_15 = arith.constant dense<0.000000e+00> : vector<1x64xf32>
    %24 = tpu.matmul %23, %22, %cst_15 {dimension_numbers = #tpu.dot_dimension_numbers<[1], [0], [0], [1], [0, 0, 1, 1], [], []>} : vector<1x256xbf16>, vector<256x64xbf16>, vector<1x64xf32> -> vector<1x64xf32>
    %c0_16 = arith.constant 0 : index
    %c0_17 = arith.constant 0 : index
    %25 = vector.load %arg9[%c0_16, %c0_17] : memref<1x64xf32, #tpu.memory_space<vmem>>, vector<1x64xf32>
    %26 = arith.addf %24, %25 : vector<1x64xf32>
    %27 = arith.negf %26 : vector<1x64xf32>
    %28 = math.exp %27 : vector<1x64xf32>
    %cst_18 = arith.constant 1.000000e+00 : f32
    %29 = vector.broadcast %cst_18 : f32 to vector<1x64xf32>
    %30 = arith.addf %29, %28 : vector<1x64xf32>
    %31 = arith.divf %29, %30 : vector<1x64xf32>
    %32 = arith.mulf %26, %31 : vector<1x64xf32>
    %c0_19 = arith.constant 0 : index
    %c0_20 = arith.constant 0 : index
    %33 = vector.load %arg10[%c0_19, %c0_20] : memref<64x64xbf16, #tpu.memory_space<vmem>>, vector<64x64xbf16>
    %34 = arith.truncf %32 : vector<1x64xf32> to vector<1x64xbf16>
    %cst_21 = arith.constant dense<0.000000e+00> : vector<1x64xf32>
    %35 = tpu.matmul %34, %33, %cst_21 {dimension_numbers = #tpu.dot_dimension_numbers<[1], [0], [0], [1], [0, 0, 1, 1], [], []>} : vector<1x64xbf16>, vector<64x64xbf16>, vector<1x64xf32> -> vector<1x64xf32>
    %c0_22 = arith.constant 0 : index
    %c0_23 = arith.constant 0 : index
    %36 = vector.load %arg11[%c0_22, %c0_23] : memref<1x64xf32, #tpu.memory_space<vmem>>, vector<1x64xf32>
    %37 = arith.addf %35, %36 : vector<1x64xf32>
    %38 = arith.addf %13, %37 : vector<1x64xf32>
    %c0_24 = arith.constant 0 : index
    %c0_25 = arith.constant 0 : index
    %c0_26 = arith.constant 0 : index
    %39 = vector.load %arg1[%c0_24, %c0_25, %c0_26] : memref<1x8x16xf32, #tpu.memory_space<vmem>>, vector<1x8x16xf32>
    %40 = vector.shape_cast %39 : vector<1x8x16xf32> to vector<8x16xf32>
    %c0_27 = arith.constant 0 : index
    %c0_28 = arith.constant 0 : index
    %41 = vector.load %arg12[%c0_27, %c0_28] : memref<8x8xbf16, #tpu.memory_space<vmem>>, vector<8x8xbf16>
    %42 = arith.truncf %40 : vector<8x16xf32> to vector<8x16xbf16>
    %cst_29 = arith.constant dense<0.000000e+00> : vector<8x16xf32>
    %43 = tpu.matmul %41, %42, %cst_29 {dimension_numbers = #tpu.dot_dimension_numbers<[1], [0], [0], [1], [0, 0, 1, 1], [], []>} : vector<8x8xbf16>, vector<8x16xbf16>, vector<8x16xf32> -> vector<8x16xf32>
    %44 = arith.addf %40, %43 : vector<8x16xf32>
    %45 = arith.truncf %44 : vector<8x16xf32> to vector<8x16xbf16>
    %c0_30 = arith.constant 0 : index
    %c0_31 = arith.constant 0 : index
    %46 = vector.load %arg13[%c0_30, %c0_31] : memref<8x64xbf16, #tpu.memory_space<vmem>>, vector<8x64xbf16>
    %cst_32 = arith.constant dense<0.000000e+00> : vector<16x64xf32>
    %47 = tpu.matmul %45, %46, %cst_32 {dimension_numbers = #tpu.dot_dimension_numbers<[0], [0], [1], [1], [0, 1, 1, 1], [], []>} : vector<8x16xbf16>, vector<8x64xbf16>, vector<16x64xf32> -> vector<16x64xf32>
    %c0_33 = arith.constant 0 : index
    %c0_34 = arith.constant 0 : index
    %48 = vector.load %arg24[%c0_33, %c0_34] : memref<17x64xf32, #tpu.memory_space<vmem>>, vector<16x64xf32>
    tpu.vector_store %arg24[%c0_33, %c0_34], %47 {strides = array<i32>} : memref<17x64xf32, #tpu.memory_space<vmem>>, vector<16x64xf32>,
    %c16 = arith.constant 16 : index
    %c0_35 = arith.constant 0 : index
    %49 = vector.load %arg24[%c16, %c0_35] : memref<17x64xf32, #tpu.memory_space<vmem>>, vector<1x64xf32>
    tpu.vector_store %arg24[%c16, %c0_35], %38 {strides = array<i32>} : memref<17x64xf32, #tpu.memory_space<vmem>>, vector<1x64xf32>,
    %c0_36 = arith.constant 0 : index
    %c0_37 = arith.constant 0 : index
    %50 = vector.load %arg24[%c0_36, %c0_37] : memref<17x64xf32, #tpu.memory_space<vmem>>, vector<17x64xf32>
    %c0_38 = arith.constant 0 : index
    %c0_39 = arith.constant 0 : index
    %c0_40 = arith.constant 0 : index
    %51 = vector.load %arg4[%c0_38, %c0_39, %c0_40] : memref<2x17x128xf32, #tpu.memory_space<vmem>>, vector<1x17x128xf32>
    %52 = vector.shape_cast %51 : vector<1x17x128xf32> to vector<17x128xf32>
    %c1 = arith.constant 1 : index
    %c0_41 = arith.constant 0 : index
    %c0_42 = arith.constant 0 : index
    %53 = vector.load %arg4[%c1, %c0_41, %c0_42] : memref<2x17x128xf32, #tpu.memory_space<vmem>>, vector<1x17x128xf32>
    %54 = vector.shape_cast %53 : vector<1x17x128xf32> to vector<17x128xf32>
    %c0_43 = arith.constant 0 : index
    %c0_44 = arith.constant 0 : index
    %c0_45 = arith.constant 0 : index
    %c0_46 = arith.constant 0 : index
    %55 = vector.load %arg14[%c0_43, %c0_44, %c0_45, %c0_46] : memref<2x2x1x64xf32, #tpu.memory_space<vmem>>, vector<1x1x1x64xf32>
    %56 = vector.shape_cast %55 : vector<1x1x1x64xf32> to vector<1x64xf32>
    %cst_47 = arith.constant dense<0.000000e+00> : vector<17xf32>
    %57 = vector.multi_reduction <add>, %50, %cst_47 [1] : vector<17x64xf32> to vector<17xf32>
    %58 = vector.shape_cast %57 : vector<17xf32> to vector<17x1xf32>
    %cst_48 = arith.constant 6.400000e+01 : f32
    %59 = vector.broadcast %cst_48 : f32 to vector<17x1xf32>
    %60 = arith.divf %58, %59 : vector<17x1xf32>
    %61 = vector.broadcast %60 : vector<17x1xf32> to vector<17x64xf32>
    %62 = arith.subf %50, %61 : vector<17x64xf32>
    %63 = arith.mulf %62, %62 : vector<17x64xf32>
    %cst_49 = arith.constant dense<0.000000e+00> : vector<17xf32>
    %64 = vector.multi_reduction <add>, %63, %cst_49 [1] : vector<17x64xf32> to vector<17xf32>
    %65 = vector.shape_cast %64 : vector<17xf32> to vector<17x1xf32>
    %cst_50 = arith.constant 6.400000e+01 : f32
    %66 = vector.broadcast %cst_50 : f32 to vector<17x1xf32>
    %67 = arith.divf %65, %66 : vector<17x1xf32>
    %cst_51 = arith.constant 9.99999974E-6 : f32
    %68 = vector.broadcast %cst_51 : f32 to vector<17x1xf32>
    %69 = arith.addf %67, %68 : vector<17x1xf32>
    %70 = math.rsqrt %69 : vector<17x1xf32>
    %71 = vector.broadcast %70 : vector<17x1xf32> to vector<17x64xf32>
    %72 = arith.mulf %62, %71 : vector<17x64xf32>
    %73 = vector.broadcast %56 : vector<1x64xf32> to vector<17x64xf32>
    %74 = arith.mulf %72, %73 : vector<17x64xf32>
    %c0_52 = arith.constant 0 : index
    %c0_53 = arith.constant 0 : index
    %c0_54 = arith.constant 0 : index
    %75 = vector.load %arg15[%c0_52, %c0_53, %c0_54] : memref<2x64x192xbf16, #tpu.memory_space<vmem>>, vector<1x64x192xbf16>
    %76 = vector.shape_cast %75 : vector<1x64x192xbf16> to vector<64x192xbf16>
    %77 = arith.truncf %74 : vector<17x64xf32> to vector<17x64xbf16>
    %cst_55 = arith.constant dense<0.000000e+00> : vector<17x192xf32>
    %78 = tpu.matmul %77, %76, %cst_55 {dimension_numbers = #tpu.dot_dimension_numbers<[1], [0], [0], [1], [0, 0, 1, 1], [], []>} : vector<17x64xbf16>, vector<64x192xbf16>, vector<17x192xf32> -> vector<17x192xf32>
    %79 = vector.extract_strided_slice %78 {offsets = [0, 0], sizes = [17, 128], strides = [1, 1]} : vector<17x192xf32> to vector<17x128xf32>
    %80 = vector.extract_strided_slice %78 {offsets = [0, 128], sizes = [17, 64], strides = [1, 1]} : vector<17x192xf32> to vector<17x64xf32>
    %81 = arith.truncf %80 : vector<17x64xf32> to vector<17x64xbf16>
    %82 = arith.mulf %79, %52 : vector<17x128xf32>
    %83 = vector.extract_strided_slice %79 {offsets = [0, 16], sizes = [17, 16], strides = [1, 1]} : vector<17x128xf32> to vector<17x16xf32>
    %cst_56 = arith.constant 0.000000e+00 : f32
    %84 = vector.broadcast %cst_56 : f32 to vector<17x16xf32>
    %85 = arith.subf %84, %83 : vector<17x16xf32>
    %86 = vector.extract_strided_slice %79 {offsets = [0, 0], sizes = [17, 16], strides = [1, 1]} : vector<17x128xf32> to vector<17x16xf32>
    %87 = vector.extract_strided_slice %79 {offsets = [0, 48], sizes = [17, 16], strides = [1, 1]} : vector<17x128xf32> to vector<17x16xf32>
    %cst_57 = arith.constant 0.000000e+00 : f32
    %88 = vector.broadcast %cst_57 : f32 to vector<17x16xf32>
    %89 = arith.subf %88, %87 : vector<17x16xf32>
    %90 = vector.extract_strided_slice %79 {offsets = [0, 32], sizes = [17, 16], strides = [1, 1]} : vector<17x128xf32> to vector<17x16xf32>
    %91 = vector.extract_strided_slice %79 {offsets = [0, 80], sizes = [17, 16], strides = [1, 1]} : vector<17x128xf32> to vector<17x16xf32>
    %cst_58 = arith.constant 0.000000e+00 : f32
    %92 = vector.broadcast %cst_58 : f32 to vector<17x16xf32>
    %93 = arith.subf %92, %91 : vector<17x16xf32>
    %94 = vector.extract_strided_slice %79 {offsets = [0, 64], sizes = [17, 16], strides = [1, 1]} : vector<17x128xf32> to vector<17x16xf32>
    %95 = vector.extract_strided_slice %79 {offsets = [0, 112], sizes = [17, 16], strides = [1, 1]} : vector<17x128xf32> to vector<17x16xf32>
    %cst_59 = arith.constant 0.000000e+00 : f32
    %96 = vector.broadcast %cst_59 : f32 to vector<17x16xf32>
    %97 = arith.subf %96, %95 : vector<17x16xf32>
    %98 = vector.extract_strided_slice %79 {offsets = [0, 96], sizes = [17, 16], strides = [1, 1]} : vector<17x128xf32> to vector<17x16xf32>
    %99 = tpu.concatenate %85, %86, %89, %90, %93, %94, %97, %98 in 1 : vector<17x16xf32>, vector<17x16xf32>, vector<17x16xf32>, vector<17x16xf32>, vector<17x16xf32>, vector<17x16xf32>, vector<17x16xf32>, vector<17x16xf32> -> vector<17x128xf32>
    %100 = arith.mulf %99, %54 : vector<17x128xf32>
    %101 = arith.addf %82, %100 : vector<17x128xf32>
    %102 = vector.extract_strided_slice %101 {offsets = [0, 0], sizes = [17, 32], strides = [1, 1]} : vector<17x128xf32> to vector<17x32xf32>
    %103 = vector.extract_strided_slice %101 {offsets = [0, 64], sizes = [17, 32], strides = [1, 1]} : vector<17x128xf32> to vector<17x32xf32>
    %104 = vector.extract_strided_slice %81 {offsets = [0, 0], sizes = [17, 32], strides = [1, 1]} : vector<17x64xbf16> to vector<17x32xbf16>
    %105 = arith.truncf %102 : vector<17x32xf32> to vector<17x32xbf16>
    %106 = arith.truncf %103 : vector<17x32xf32> to vector<17x32xbf16>
    %cst_60 = arith.constant dense<0.000000e+00> : vector<17x17xf32>
    %107 = tpu.matmul %105, %106, %cst_60 {dimension_numbers = #tpu.dot_dimension_numbers<[1], [1], [0], [0], [0, 0, 1, 0], [], []>} : vector<17x32xbf16>, vector<17x32xbf16>, vector<17x17xf32> -> vector<17x17xf32>
    %cst_61 = arith.constant dense<0xFF800000> : vector<17xf32>
    %108 = vector.multi_reduction <maximumf>, %107, %cst_61 [1] : vector<17x17xf32> to vector<17xf32>
    %109 = vector.shape_cast %108 : vector<17xf32> to vector<17x1xf32>
    %110 = vector.broadcast %109 : vector<17x1xf32> to vector<17x17xf32>
    %111 = arith.subf %107, %110 : vector<17x17xf32>
    %112 = math.exp %111 : vector<17x17xf32>
    %cst_62 = arith.constant dense<0.000000e+00> : vector<17xf32>
    %113 = vector.multi_reduction <add>, %112, %cst_62 [1] : vector<17x17xf32> to vector<17xf32>
    %114 = vector.shape_cast %113 : vector<17xf32> to vector<17x1xf32>
    %115 = tpu.reciprocal %114 {approx = true} : vector<17x1xf32> -> vector<17x1xf32>
    %116 = vector.broadcast %115 : vector<17x1xf32> to vector<17x17xf32>
    %117 = arith.mulf %112, %116 : vector<17x17xf32>
    %118 = arith.truncf %117 : vector<17x17xf32> to vector<17x17xbf16>
    %cst_63 = arith.constant dense<0.000000e+00> : vector<17x32xf32>
    %119 = tpu.matmul %118, %104, %cst_63 {dimension_numbers = #tpu.dot_dimension_numbers<[1], [0], [0], [1], [0, 0, 1, 1], [], []>} : vector<17x17xbf16>, vector<17x32xbf16>, vector<17x32xf32> -> vector<17x32xf32>
    %120 = vector.extract_strided_slice %101 {offsets = [0, 32], sizes = [17, 32], strides = [1, 1]} : vector<17x128xf32> to vector<17x32xf32>
    %121 = vector.extract_strided_slice %101 {offsets = [0, 96], sizes = [17, 32], strides = [1, 1]} : vector<17x128xf32> to vector<17x32xf32>
    %122 = vector.extract_strided_slice %81 {offsets = [0, 32], sizes = [17, 32], strides = [1, 1]} : vector<17x64xbf16> to vector<17x32xbf16>
    %123 = arith.truncf %120 : vector<17x32xf32> to vector<17x32xbf16>
    %124 = arith.truncf %121 : vector<17x32xf32> to vector<17x32xbf16>
    %cst_64 = arith.constant dense<0.000000e+00> : vector<17x17xf32>
    %125 = tpu.matmul %123, %124, %cst_64 {dimension_numbers = #tpu.dot_dimension_numbers<[1], [1], [0], [0], [0, 0, 1, 0], [], []>} : vector<17x32xbf16>, vector<17x32xbf16>, vector<17x17xf32> -> vector<17x17xf32>
    %cst_65 = arith.constant dense<0xFF800000> : vector<17xf32>
    %126 = vector.multi_reduction <maximumf>, %125, %cst_65 [1] : vector<17x17xf32> to vector<17xf32>
    %127 = vector.shape_cast %126 : vector<17xf32> to vector<17x1xf32>
    %128 = vector.broadcast %127 : vector<17x1xf32> to vector<17x17xf32>
    %129 = arith.subf %125, %128 : vector<17x17xf32>
    %130 = math.exp %129 : vector<17x17xf32>
    %cst_66 = arith.constant dense<0.000000e+00> : vector<17xf32>
    %131 = vector.multi_reduction <add>, %130, %cst_66 [1] : vector<17x17xf32> to vector<17xf32>
    %132 = vector.shape_cast %131 : vector<17xf32> to vector<17x1xf32>
    %133 = tpu.reciprocal %132 {approx = true} : vector<17x1xf32> -> vector<17x1xf32>
    %134 = vector.broadcast %133 : vector<17x1xf32> to vector<17x17xf32>
    %135 = arith.mulf %130, %134 : vector<17x17xf32>
    %136 = arith.truncf %135 : vector<17x17xf32> to vector<17x17xbf16>
    %cst_67 = arith.constant dense<0.000000e+00> : vector<17x32xf32>
    %137 = tpu.matmul %136, %122, %cst_67 {dimension_numbers = #tpu.dot_dimension_numbers<[1], [0], [0], [1], [0, 0, 1, 1], [], []>} : vector<17x17xbf16>, vector<17x32xbf16>, vector<17x32xf32> -> vector<17x32xf32>
    %138 = tpu.concatenate %119, %137 in 1 : vector<17x32xf32>, vector<17x32xf32> -> vector<17x64xf32>
    %c0_68 = arith.constant 0 : index
    %c0_69 = arith.constant 0 : index
    %c0_70 = arith.constant 0 : index
    %139 = vector.load %arg16[%c0_68, %c0_69, %c0_70] : memref<2x64x64xbf16, #tpu.memory_space<vmem>>, vector<1x64x64xbf16>
    %140 = vector.shape_cast %139 : vector<1x64x64xbf16> to vector<64x64xbf16>
    %141 = arith.truncf %138 : vector<17x64xf32> to vector<17x64xbf16>
    %cst_71 = arith.constant dense<0.000000e+00> : vector<17x64xf32>
    %142 = tpu.matmul %141, %140, %cst_71 {dimension_numbers = #tpu.dot_dimension_numbers<[1], [0], [0], [1], [0, 0, 1, 1], [], []>} : vector<17x64xbf16>, vector<64x64xbf16>, vector<17x64xf32> -> vector<17x64xf32>
    %143 = arith.addf %50, %142 : vector<17x64xf32>
    %c0_72 = arith.constant 0 : index
    %c1_73 = arith.constant 1 : index
    %c0_74 = arith.constant 0 : index
    %c0_75 = arith.constant 0 : index
    %144 = vector.load %arg14[%c0_72, %c1_73, %c0_74, %c0_75] : memref<2x2x1x64xf32, #tpu.memory_space<vmem>>, vector<1x1x1x64xf32>
    %145 = vector.shape_cast %144 : vector<1x1x1x64xf32> to vector<1x64xf32>
    %cst_76 = arith.constant dense<0.000000e+00> : vector<17xf32>
    %146 = vector.multi_reduction <add>, %143, %cst_76 [1] : vector<17x64xf32> to vector<17xf32>
    %147 = vector.shape_cast %146 : vector<17xf32> to vector<17x1xf32>
    %cst_77 = arith.constant 6.400000e+01 : f32
    %148 = vector.broadcast %cst_77 : f32 to vector<17x1xf32>
    %149 = arith.divf %147, %148 : vector<17x1xf32>
    %150 = vector.broadcast %149 : vector<17x1xf32> to vector<17x64xf32>
    %151 = arith.subf %143, %150 : vector<17x64xf32>
    %152 = arith.mulf %151, %151 : vector<17x64xf32>
    %cst_78 = arith.constant dense<0.000000e+00> : vector<17xf32>
    %153 = vector.multi_reduction <add>, %152, %cst_78 [1] : vector<17x64xf32> to vector<17xf32>
    %154 = vector.shape_cast %153 : vector<17xf32> to vector<17x1xf32>
    %cst_79 = arith.constant 6.400000e+01 : f32
    %155 = vector.broadcast %cst_79 : f32 to vector<17x1xf32>
    %156 = arith.divf %154, %155 : vector<17x1xf32>
    %cst_80 = arith.constant 9.99999974E-6 : f32
    %157 = vector.broadcast %cst_80 : f32 to vector<17x1xf32>
    %158 = arith.addf %156, %157 : vector<17x1xf32>
    %159 = math.rsqrt %158 : vector<17x1xf32>
    %160 = vector.broadcast %159 : vector<17x1xf32> to vector<17x64xf32>
    %161 = arith.mulf %151, %160 : vector<17x64xf32>
    %162 = vector.broadcast %145 : vector<1x64xf32> to vector<17x64xf32>
    %163 = arith.mulf %161, %162 : vector<17x64xf32>
    %c0_81 = arith.constant 0 : index
    %c0_82 = arith.constant 0 : index
    %c0_83 = arith.constant 0 : index
    %164 = vector.load %arg17[%c0_81, %c0_82, %c0_83] : memref<2x64x512xbf16, #tpu.memory_space<vmem>>, vector<1x64x512xbf16>
    %165 = vector.shape_cast %164 : vector<1x64x512xbf16> to vector<64x512xbf16>
    %166 = arith.truncf %163 : vector<17x64xf32> to vector<17x64xbf16>
    %cst_84 = arith.constant dense<0.000000e+00> : vector<17x512xf32>
    %167 = tpu.matmul %166, %165, %cst_84 {dimension_numbers = #tpu.dot_dimension_numbers<[1], [0], [0], [1], [0, 0, 1, 1], [], []>} : vector<17x64xbf16>, vector<64x512xbf16>, vector<17x512xf32> -> vector<17x512xf32>
    %c0_85 = arith.constant 0 : index
    %c0_86 = arith.constant 0 : index
    %c0_87 = arith.constant 0 : index
    %168 = vector.load %arg18[%c0_85, %c0_86, %c0_87] : memref<2x1x512xf32, #tpu.memory_space<vmem>>, vector<1x1x512xf32>
    %169 = vector.shape_cast %168 : vector<1x1x512xf32> to vector<1x512xf32>
    %170 = vector.broadcast %169 : vector<1x512xf32> to vector<17x512xf32>
    %171 = arith.addf %167, %170 : vector<17x512xf32>
    %172 = vector.extract_strided_slice %171 {offsets = [0, 0], sizes = [17, 256], strides = [1, 1]} : vector<17x512xf32> to vector<17x256xf32>
    %173 = vector.extract_strided_slice %171 {offsets = [0, 256], sizes = [17, 256], strides = [1, 1]} : vector<17x512xf32> to vector<17x256xf32>
    %174 = arith.negf %173 : vector<17x256xf32>
    %175 = math.exp %174 : vector<17x256xf32>
    %cst_88 = arith.constant 1.000000e+00 : f32
    %176 = vector.broadcast %cst_88 : f32 to vector<17x256xf32>
    %177 = arith.addf %176, %175 : vector<17x256xf32>
    %178 = arith.divf %176, %177 : vector<17x256xf32>
    %179 = arith.mulf %173, %178 : vector<17x256xf32>
    %180 = arith.mulf %172, %179 : vector<17x256xf32>
    %c0_89 = arith.constant 0 : index
    %c0_90 = arith.constant 0 : index
    %c0_91 = arith.constant 0 : index
    %181 = vector.load %arg19[%c0_89, %c0_90, %c0_91] : memref<2x256x64xbf16, #tpu.memory_space<vmem>>, vector<1x256x64xbf16>
    %182 = vector.shape_cast %181 : vector<1x256x64xbf16> to vector<256x64xbf16>
    %183 = arith.truncf %180 : vector<17x256xf32> to vector<17x256xbf16>
    %cst_92 = arith.constant dense<0.000000e+00> : vector<17x64xf32>
    %184 = tpu.matmul %183, %182, %cst_92 {dimension_numbers = #tpu.dot_dimension_numbers<[1], [0], [0], [1], [0, 0, 1, 1], [], []>} : vector<17x256xbf16>, vector<256x64xbf16>, vector<17x64xf32> -> vector<17x64xf32>
    %185 = arith.addf %143, %184 : vector<17x64xf32>
    %c0_93 = arith.constant 0 : index
    %c0_94 = arith.constant 0 : index
    %c0_95 = arith.constant 0 : index
    %186 = vector.load %arg20[%c0_93, %c0_94, %c0_95] : memref<2x1x64xf32, #tpu.memory_space<vmem>>, vector<1x1x64xf32>
    %187 = vector.shape_cast %186 : vector<1x1x64xf32> to vector<1x64xf32>
    %188 = vector.broadcast %187 : vector<1x64xf32> to vector<17x64xf32>
    %189 = arith.addf %185, %188 : vector<17x64xf32>
    %c1_96 = arith.constant 1 : index
    %c0_97 = arith.constant 0 : index
    %c0_98 = arith.constant 0 : index
    %c0_99 = arith.constant 0 : index
    %190 = vector.load %arg14[%c1_96, %c0_97, %c0_98, %c0_99] : memref<2x2x1x64xf32, #tpu.memory_space<vmem>>, vector<1x1x1x64xf32>
    %191 = vector.shape_cast %190 : vector<1x1x1x64xf32> to vector<1x64xf32>
    %cst_100 = arith.constant dense<0.000000e+00> : vector<17xf32>
    %192 = vector.multi_reduction <add>, %189, %cst_100 [1] : vector<17x64xf32> to vector<17xf32>
    %193 = vector.shape_cast %192 : vector<17xf32> to vector<17x1xf32>
    %cst_101 = arith.constant 6.400000e+01 : f32
    %194 = vector.broadcast %cst_101 : f32 to vector<17x1xf32>
    %195 = arith.divf %193, %194 : vector<17x1xf32>
    %196 = vector.broadcast %195 : vector<17x1xf32> to vector<17x64xf32>
    %197 = arith.subf %189, %196 : vector<17x64xf32>
    %198 = arith.mulf %197, %197 : vector<17x64xf32>
    %cst_102 = arith.constant dense<0.000000e+00> : vector<17xf32>
    %199 = vector.multi_reduction <add>, %198, %cst_102 [1] : vector<17x64xf32> to vector<17xf32>
    %200 = vector.shape_cast %199 : vector<17xf32> to vector<17x1xf32>
    %cst_103 = arith.constant 6.400000e+01 : f32
    %201 = vector.broadcast %cst_103 : f32 to vector<17x1xf32>
    %202 = arith.divf %200, %201 : vector<17x1xf32>
    %cst_104 = arith.constant 9.99999974E-6 : f32
    %203 = vector.broadcast %cst_104 : f32 to vector<17x1xf32>
    %204 = arith.addf %202, %203 : vector<17x1xf32>
    %205 = math.rsqrt %204 : vector<17x1xf32>
    %206 = vector.broadcast %205 : vector<17x1xf32> to vector<17x64xf32>
    %207 = arith.mulf %197, %206 : vector<17x64xf32>
    %208 = vector.broadcast %191 : vector<1x64xf32> to vector<17x64xf32>
    %209 = arith.mulf %207, %208 : vector<17x64xf32>
    %c1_105 = arith.constant 1 : index
    %c0_106 = arith.constant 0 : index
    %c0_107 = arith.constant 0 : index
    %210 = vector.load %arg15[%c1_105, %c0_106, %c0_107] : memref<2x64x192xbf16, #tpu.memory_space<vmem>>, vector<1x64x192xbf16>
    %211 = vector.shape_cast %210 : vector<1x64x192xbf16> to vector<64x192xbf16>
    %212 = arith.truncf %209 : vector<17x64xf32> to vector<17x64xbf16>
    %cst_108 = arith.constant dense<0.000000e+00> : vector<17x192xf32>
    %213 = tpu.matmul %212, %211, %cst_108 {dimension_numbers = #tpu.dot_dimension_numbers<[1], [0], [0], [1], [0, 0, 1, 1], [], []>} : vector<17x64xbf16>, vector<64x192xbf16>, vector<17x192xf32> -> vector<17x192xf32>
    %214 = vector.extract_strided_slice %213 {offsets = [0, 0], sizes = [17, 128], strides = [1, 1]} : vector<17x192xf32> to vector<17x128xf32>
    %215 = vector.extract_strided_slice %213 {offsets = [0, 128], sizes = [17, 64], strides = [1, 1]} : vector<17x192xf32> to vector<17x64xf32>
    %216 = arith.truncf %215 : vector<17x64xf32> to vector<17x64xbf16>
    %217 = arith.mulf %214, %52 : vector<17x128xf32>
    %218 = vector.extract_strided_slice %214 {offsets = [0, 16], sizes = [17, 16], strides = [1, 1]} : vector<17x128xf32> to vector<17x16xf32>
    %cst_109 = arith.constant 0.000000e+00 : f32
    %219 = vector.broadcast %cst_109 : f32 to vector<17x16xf32>
    %220 = arith.subf %219, %218 : vector<17x16xf32>
    %221 = vector.extract_strided_slice %214 {offsets = [0, 0], sizes = [17, 16], strides = [1, 1]} : vector<17x128xf32> to vector<17x16xf32>
    %222 = vector.extract_strided_slice %214 {offsets = [0, 48], sizes = [17, 16], strides = [1, 1]} : vector<17x128xf32> to vector<17x16xf32>
    %cst_110 = arith.constant 0.000000e+00 : f32
    %223 = vector.broadcast %cst_110 : f32 to vector<17x16xf32>
    %224 = arith.subf %223, %222 : vector<17x16xf32>
    %225 = vector.extract_strided_slice %214 {offsets = [0, 32], sizes = [17, 16], strides = [1, 1]} : vector<17x128xf32> to vector<17x16xf32>
    %226 = vector.extract_strided_slice %214 {offsets = [0, 80], sizes = [17, 16], strides = [1, 1]} : vector<17x128xf32> to vector<17x16xf32>
    %cst_111 = arith.constant 0.000000e+00 : f32
    %227 = vector.broadcast %cst_111 : f32 to vector<17x16xf32>
    %228 = arith.subf %227, %226 : vector<17x16xf32>
    %229 = vector.extract_strided_slice %214 {offsets = [0, 64], sizes = [17, 16], strides = [1, 1]} : vector<17x128xf32> to vector<17x16xf32>
    %230 = vector.extract_strided_slice %214 {offsets = [0, 112], sizes = [17, 16], strides = [1, 1]} : vector<17x128xf32> to vector<17x16xf32>
    %cst_112 = arith.constant 0.000000e+00 : f32
    %231 = vector.broadcast %cst_112 : f32 to vector<17x16xf32>
    %232 = arith.subf %231, %230 : vector<17x16xf32>
    %233 = vector.extract_strided_slice %214 {offsets = [0, 96], sizes = [17, 16], strides = [1, 1]} : vector<17x128xf32> to vector<17x16xf32>
    %234 = tpu.concatenate %220, %221, %224, %225, %228, %229, %232, %233 in 1 : vector<17x16xf32>, vector<17x16xf32>, vector<17x16xf32>, vector<17x16xf32>, vector<17x16xf32>, vector<17x16xf32>, vector<17x16xf32>, vector<17x16xf32> -> vector<17x128xf32>
    %235 = arith.mulf %234, %54 : vector<17x128xf32>
    %236 = arith.addf %217, %235 : vector<17x128xf32>
    %237 = vector.extract_strided_slice %236 {offsets = [0, 0], sizes = [17, 32], strides = [1, 1]} : vector<17x128xf32> to vector<17x32xf32>
    %238 = vector.extract_strided_slice %236 {offsets = [0, 64], sizes = [17, 32], strides = [1, 1]} : vector<17x128xf32> to vector<17x32xf32>
    %239 = vector.extract_strided_slice %216 {offsets = [0, 0], sizes = [17, 32], strides = [1, 1]} : vector<17x64xbf16> to vector<17x32xbf16>
    %240 = arith.truncf %237 : vector<17x32xf32> to vector<17x32xbf16>
    %241 = arith.truncf %238 : vector<17x32xf32> to vector<17x32xbf16>
    %cst_113 = arith.constant dense<0.000000e+00> : vector<17x17xf32>
    %242 = tpu.matmul %240, %241, %cst_113 {dimension_numbers = #tpu.dot_dimension_numbers<[1], [1], [0], [0], [0, 0, 1, 0], [], []>} : vector<17x32xbf16>, vector<17x32xbf16>, vector<17x17xf32> -> vector<17x17xf32>
    %cst_114 = arith.constant dense<0xFF800000> : vector<17xf32>
    %243 = vector.multi_reduction <maximumf>, %242, %cst_114 [1] : vector<17x17xf32> to vector<17xf32>
    %244 = vector.shape_cast %243 : vector<17xf32> to vector<17x1xf32>
    %245 = vector.broadcast %244 : vector<17x1xf32> to vector<17x17xf32>
    %246 = arith.subf %242, %245 : vector<17x17xf32>
    %247 = math.exp %246 : vector<17x17xf32>
    %cst_115 = arith.constant dense<0.000000e+00> : vector<17xf32>
    %248 = vector.multi_reduction <add>, %247, %cst_115 [1] : vector<17x17xf32> to vector<17xf32>
    %249 = vector.shape_cast %248 : vector<17xf32> to vector<17x1xf32>
    %250 = tpu.reciprocal %249 {approx = true} : vector<17x1xf32> -> vector<17x1xf32>
    %251 = vector.broadcast %250 : vector<17x1xf32> to vector<17x17xf32>
    %252 = arith.mulf %247, %251 : vector<17x17xf32>
    %253 = arith.truncf %252 : vector<17x17xf32> to vector<17x17xbf16>
    %cst_116 = arith.constant dense<0.000000e+00> : vector<17x32xf32>
    %254 = tpu.matmul %253, %239, %cst_116 {dimension_numbers = #tpu.dot_dimension_numbers<[1], [0], [0], [1], [0, 0, 1, 1], [], []>} : vector<17x17xbf16>, vector<17x32xbf16>, vector<17x32xf32> -> vector<17x32xf32>
    %255 = vector.extract_strided_slice %236 {offsets = [0, 32], sizes = [17, 32], strides = [1, 1]} : vector<17x128xf32> to vector<17x32xf32>
    %256 = vector.extract_strided_slice %236 {offsets = [0, 96], sizes = [17, 32], strides = [1, 1]} : vector<17x128xf32> to vector<17x32xf32>
    %257 = vector.extract_strided_slice %216 {offsets = [0, 32], sizes = [17, 32], strides = [1, 1]} : vector<17x64xbf16> to vector<17x32xbf16>
    %258 = arith.truncf %255 : vector<17x32xf32> to vector<17x32xbf16>
    %259 = arith.truncf %256 : vector<17x32xf32> to vector<17x32xbf16>
    %cst_117 = arith.constant dense<0.000000e+00> : vector<17x17xf32>
    %260 = tpu.matmul %258, %259, %cst_117 {dimension_numbers = #tpu.dot_dimension_numbers<[1], [1], [0], [0], [0, 0, 1, 0], [], []>} : vector<17x32xbf16>, vector<17x32xbf16>, vector<17x17xf32> -> vector<17x17xf32>
    %cst_118 = arith.constant dense<0xFF800000> : vector<17xf32>
    %261 = vector.multi_reduction <maximumf>, %260, %cst_118 [1] : vector<17x17xf32> to vector<17xf32>
    %262 = vector.shape_cast %261 : vector<17xf32> to vector<17x1xf32>
    %263 = vector.broadcast %262 : vector<17x1xf32> to vector<17x17xf32>
    %264 = arith.subf %260, %263 : vector<17x17xf32>
    %265 = math.exp %264 : vector<17x17xf32>
    %cst_119 = arith.constant dense<0.000000e+00> : vector<17xf32>
    %266 = vector.multi_reduction <add>, %265, %cst_119 [1] : vector<17x17xf32> to vector<17xf32>
    %267 = vector.shape_cast %266 : vector<17xf32> to vector<17x1xf32>
    %268 = tpu.reciprocal %267 {approx = true} : vector<17x1xf32> -> vector<17x1xf32>
    %269 = vector.broadcast %268 : vector<17x1xf32> to vector<17x17xf32>
    %270 = arith.mulf %265, %269 : vector<17x17xf32>
    %271 = arith.truncf %270 : vector<17x17xf32> to vector<17x17xbf16>
    %cst_120 = arith.constant dense<0.000000e+00> : vector<17x32xf32>
    %272 = tpu.matmul %271, %257, %cst_120 {dimension_numbers = #tpu.dot_dimension_numbers<[1], [0], [0], [1], [0, 0, 1, 1], [], []>} : vector<17x17xbf16>, vector<17x32xbf16>, vector<17x32xf32> -> vector<17x32xf32>
    %273 = tpu.concatenate %254, %272 in 1 : vector<17x32xf32>, vector<17x32xf32> -> vector<17x64xf32>
    %c1_121 = arith.constant 1 : index
    %c0_122 = arith.constant 0 : index
    %c0_123 = arith.constant 0 : index
    %274 = vector.load %arg16[%c1_121, %c0_122, %c0_123] : memref<2x64x64xbf16, #tpu.memory_space<vmem>>, vector<1x64x64xbf16>
    %275 = vector.shape_cast %274 : vector<1x64x64xbf16> to vector<64x64xbf16>
    %276 = arith.truncf %273 : vector<17x64xf32> to vector<17x64xbf16>
    %cst_124 = arith.constant dense<0.000000e+00> : vector<17x64xf32>
    %277 = tpu.matmul %276, %275, %cst_124 {dimension_numbers = #tpu.dot_dimension_numbers<[1], [0], [0], [1], [0, 0, 1, 1], [], []>} : vector<17x64xbf16>, vector<64x64xbf16>, vector<17x64xf32> -> vector<17x64xf32>
    %278 = arith.addf %189, %277 : vector<17x64xf32>
    %c1_125 = arith.constant 1 : index
    %c1_126 = arith.constant 1 : index
    %c0_127 = arith.constant 0 : index
    %c0_128 = arith.constant 0 : index
    %279 = vector.load %arg14[%c1_125, %c1_126, %c0_127, %c0_128] : memref<2x2x1x64xf32, #tpu.memory_space<vmem>>, vector<1x1x1x64xf32>
    %280 = vector.shape_cast %279 : vector<1x1x1x64xf32> to vector<1x64xf32>
    %cst_129 = arith.constant dense<0.000000e+00> : vector<17xf32>
    %281 = vector.multi_reduction <add>, %278, %cst_129 [1] : vector<17x64xf32> to vector<17xf32>
    %282 = vector.shape_cast %281 : vector<17xf32> to vector<17x1xf32>
    %cst_130 = arith.constant 6.400000e+01 : f32
    %283 = vector.broadcast %cst_130 : f32 to vector<17x1xf32>
    %284 = arith.divf %282, %283 : vector<17x1xf32>
    %285 = vector.broadcast %284 : vector<17x1xf32> to vector<17x64xf32>
    %286 = arith.subf %278, %285 : vector<17x64xf32>
    %287 = arith.mulf %286, %286 : vector<17x64xf32>
    %cst_131 = arith.constant dense<0.000000e+00> : vector<17xf32>
    %288 = vector.multi_reduction <add>, %287, %cst_131 [1] : vector<17x64xf32> to vector<17xf32>
    %289 = vector.shape_cast %288 : vector<17xf32> to vector<17x1xf32>
    %cst_132 = arith.constant 6.400000e+01 : f32
    %290 = vector.broadcast %cst_132 : f32 to vector<17x1xf32>
    %291 = arith.divf %289, %290 : vector<17x1xf32>
    %cst_133 = arith.constant 9.99999974E-6 : f32
    %292 = vector.broadcast %cst_133 : f32 to vector<17x1xf32>
    %293 = arith.addf %291, %292 : vector<17x1xf32>
    %294 = math.rsqrt %293 : vector<17x1xf32>
    %295 = vector.broadcast %294 : vector<17x1xf32> to vector<17x64xf32>
    %296 = arith.mulf %286, %295 : vector<17x64xf32>
    %297 = vector.broadcast %280 : vector<1x64xf32> to vector<17x64xf32>
    %298 = arith.mulf %296, %297 : vector<17x64xf32>
    %c1_134 = arith.constant 1 : index
    %c0_135 = arith.constant 0 : index
    %c0_136 = arith.constant 0 : index
    %299 = vector.load %arg17[%c1_134, %c0_135, %c0_136] : memref<2x64x512xbf16, #tpu.memory_space<vmem>>, vector<1x64x512xbf16>
    %300 = vector.shape_cast %299 : vector<1x64x512xbf16> to vector<64x512xbf16>
    %301 = arith.truncf %298 : vector<17x64xf32> to vector<17x64xbf16>
    %cst_137 = arith.constant dense<0.000000e+00> : vector<17x512xf32>
    %302 = tpu.matmul %301, %300, %cst_137 {dimension_numbers = #tpu.dot_dimension_numbers<[1], [0], [0], [1], [0, 0, 1, 1], [], []>} : vector<17x64xbf16>, vector<64x512xbf16>, vector<17x512xf32> -> vector<17x512xf32>
    %c1_138 = arith.constant 1 : index
    %c0_139 = arith.constant 0 : index
    %c0_140 = arith.constant 0 : index
    %303 = vector.load %arg18[%c1_138, %c0_139, %c0_140] : memref<2x1x512xf32, #tpu.memory_space<vmem>>, vector<1x1x512xf32>
    %304 = vector.shape_cast %303 : vector<1x1x512xf32> to vector<1x512xf32>
    %305 = vector.broadcast %304 : vector<1x512xf32> to vector<17x512xf32>
    %306 = arith.addf %302, %305 : vector<17x512xf32>
    %307 = vector.extract_strided_slice %306 {offsets = [0, 0], sizes = [17, 256], strides = [1, 1]} : vector<17x512xf32> to vector<17x256xf32>
    %308 = vector.extract_strided_slice %306 {offsets = [0, 256], sizes = [17, 256], strides = [1, 1]} : vector<17x512xf32> to vector<17x256xf32>
    %309 = arith.negf %308 : vector<17x256xf32>
    %310 = math.exp %309 : vector<17x256xf32>
    %cst_141 = arith.constant 1.000000e+00 : f32
    %311 = vector.broadcast %cst_141 : f32 to vector<17x256xf32>
    %312 = arith.addf %311, %310 : vector<17x256xf32>
    %313 = arith.divf %311, %312 : vector<17x256xf32>
    %314 = arith.mulf %308, %313 : vector<17x256xf32>
    %315 = arith.mulf %307, %314 : vector<17x256xf32>
    %c1_142 = arith.constant 1 : index
    %c0_143 = arith.constant 0 : index
    %c0_144 = arith.constant 0 : index
    %316 = vector.load %arg19[%c1_142, %c0_143, %c0_144] : memref<2x256x64xbf16, #tpu.memory_space<vmem>>, vector<1x256x64xbf16>
    %317 = vector.shape_cast %316 : vector<1x256x64xbf16> to vector<256x64xbf16>
    %318 = arith.truncf %315 : vector<17x256xf32> to vector<17x256xbf16>
    %cst_145 = arith.constant dense<0.000000e+00> : vector<17x64xf32>
    %319 = tpu.matmul %318, %317, %cst_145 {dimension_numbers = #tpu.dot_dimension_numbers<[1], [0], [0], [1], [0, 0, 1, 1], [], []>} : vector<17x256xbf16>, vector<256x64xbf16>, vector<17x64xf32> -> vector<17x64xf32>
    %320 = arith.addf %278, %319 : vector<17x64xf32>
    %c1_146 = arith.constant 1 : index
    %c0_147 = arith.constant 0 : index
    %c0_148 = arith.constant 0 : index
    %321 = vector.load %arg20[%c1_146, %c0_147, %c0_148] : memref<2x1x64xf32, #tpu.memory_space<vmem>>, vector<1x1x64xf32>
    %322 = vector.shape_cast %321 : vector<1x1x64xf32> to vector<1x64xf32>
    %323 = vector.broadcast %322 : vector<1x64xf32> to vector<17x64xf32>
    %324 = arith.addf %320, %323 : vector<17x64xf32>
    %c0_149 = arith.constant 0 : index
    %c0_150 = arith.constant 0 : index
    %325 = vector.load %arg21[%c0_149, %c0_150] : memref<64x8xbf16, #tpu.memory_space<vmem>>, vector<64x8xbf16>
    %326 = arith.truncf %324 : vector<17x64xf32> to vector<17x64xbf16>
    %cst_151 = arith.constant dense<0.000000e+00> : vector<8x17xf32>
    %327 = tpu.matmul %325, %326, %cst_151 {dimension_numbers = #tpu.dot_dimension_numbers<[0], [1], [1], [0], [0, 1, 1, 0], [], []>} : vector<64x8xbf16>, vector<17x64xbf16>, vector<8x17xf32> -> vector<8x17xf32>
    %328 = vector.extract_strided_slice %327 {offsets = [0, 0], sizes = [8, 16], strides = [1, 1]} : vector<8x17xf32> to vector<8x16xf32>
    %c0_152 = arith.constant 0 : index
    %c0_153 = arith.constant 0 : index
    %329 = vector.load %arg22[%c0_152, %c0_153] : memref<8x8xbf16, #tpu.memory_space<vmem>>, vector<8x8xbf16>
    %330 = arith.truncf %328 : vector<8x16xf32> to vector<8x16xbf16>
    %cst_154 = arith.constant dense<0.000000e+00> : vector<8x16xf32>
    %331 = tpu.matmul %329, %330, %cst_154 {dimension_numbers = #tpu.dot_dimension_numbers<[1], [0], [0], [1], [0, 0, 1, 1], [], []>} : vector<8x8xbf16>, vector<8x16xbf16>, vector<8x16xf32> -> vector<8x16xf32>
    %332 = arith.addf %328, %331 : vector<8x16xf32>
    %c0_155 = arith.constant 0 : index
    %c0_156 = arith.constant 0 : index
    %c0_157 = arith.constant 0 : index
    %333 = vector.load %arg23[%c0_155, %c0_156, %c0_157] : memref<1x8x16xf32, #tpu.memory_space<vmem>>, vector<1x8x16xf32>
    %334 = vector.shape_cast %333 : vector<1x8x16xf32> to vector<8x16xf32>
    %335 = vector.shape_cast %332 : vector<8x16xf32> to vector<1x8x16xf32>
    tpu.vector_store %arg23[%c0_155, %c0_156, %c0_157], %335 {strides = array<i32>} : memref<1x8x16xf32, #tpu.memory_space<vmem>>, vector<1x8x16xf32>,
    return
  }
  func.func @transform_0(%arg0: i32) -> (i32, i32, i32) {
    %c0_i32 = arith.constant 0 : i32
    %c0_i32_0 = arith.constant 0 : i32
    %c0_i32_1 = arith.constant 0 : i32
    return %arg0, %c0_i32, %c0_i32_0 : i32, i32, i32
  }
  func.func @transform_1(%arg0: i32) -> (i32, i32, i32) {
    %c0_i32 = arith.constant 0 : i32
    %c0_i32_0 = arith.constant 0 : i32
    %c0_i32_1 = arith.constant 0 : i32
    return %arg0, %c0_i32, %c0_i32_0 : i32, i32, i32
  }
  func.func @transform_2(%arg0: i32) -> (i32, i32, i32) {
    %c0_i32 = arith.constant 0 : i32
    %c0_i32_0 = arith.constant 0 : i32
    %c0_i32_1 = arith.constant 0 : i32
    return %arg0, %c0_i32, %c0_i32_0 : i32, i32, i32
  }
  func.func @transform_3(%arg0: i32) -> (i32, i32, i32) {
    %c0_i32 = arith.constant 0 : i32
    %c0_i32_0 = arith.constant 0 : i32
    %c0_i32_1 = arith.constant 0 : i32
    %c0_i32_2 = arith.constant 0 : i32
    return %c0_i32, %c0_i32_0, %c0_i32_1 : i32, i32, i32
  }
  func.func @transform_4(%arg0: i32) -> (i32, i32) {
    %c0_i32 = arith.constant 0 : i32
    %c0_i32_0 = arith.constant 0 : i32
    %c0_i32_1 = arith.constant 0 : i32
    return %c0_i32, %c0_i32_0 : i32, i32
  }
  func.func @transform_5(%arg0: i32) -> (i32, i32) {
    %c0_i32 = arith.constant 0 : i32
    %c0_i32_0 = arith.constant 0 : i32
    %c0_i32_1 = arith.constant 0 : i32
    return %c0_i32, %c0_i32_0 : i32, i32
  }
  func.func @transform_6(%arg0: i32) -> (i32, i32) {
    %c0_i32 = arith.constant 0 : i32
    %c0_i32_0 = arith.constant 0 : i32
    %c0_i32_1 = arith.constant 0 : i32
    return %c0_i32, %c0_i32_0 : i32, i32
  }
  func.func @transform_7(%arg0: i32) -> (i32, i32) {
    %c0_i32 = arith.constant 0 : i32
    %c0_i32_0 = arith.constant 0 : i32
    %c0_i32_1 = arith.constant 0 : i32
    return %c0_i32, %c0_i32_0 : i32, i32
  }
  func.func @transform_8(%arg0: i32) -> (i32, i32) {
    %c0_i32 = arith.constant 0 : i32
    %c0_i32_0 = arith.constant 0 : i32
    %c0_i32_1 = arith.constant 0 : i32
    return %c0_i32, %c0_i32_0 : i32, i32
  }
  func.func @transform_9(%arg0: i32) -> (i32, i32) {
    %c0_i32 = arith.constant 0 : i32
    %c0_i32_0 = arith.constant 0 : i32
    %c0_i32_1 = arith.constant 0 : i32
    return %c0_i32, %c0_i32_0 : i32, i32
  }
  func.func @transform_10(%arg0: i32) -> (i32, i32) {
    %c0_i32 = arith.constant 0 : i32
    %c0_i32_0 = arith.constant 0 : i32
    %c0_i32_1 = arith.constant 0 : i32
    return %c0_i32, %c0_i32_0 : i32, i32
  }
  func.func @transform_11(%arg0: i32) -> (i32, i32) {
    %c0_i32 = arith.constant 0 : i32
    %c0_i32_0 = arith.constant 0 : i32
    %c0_i32_1 = arith.constant 0 : i32
    return %c0_i32, %c0_i32_0 : i32, i32
  }
  func.func @transform_12(%arg0: i32) -> (i32, i32) {
    %c0_i32 = arith.constant 0 : i32
    %c0_i32_0 = arith.constant 0 : i32
    %c0_i32_1 = arith.constant 0 : i32
    return %c0_i32, %c0_i32_0 : i32, i32
  }
  func.func @transform_13(%arg0: i32) -> (i32, i32, i32, i32) {
    %c0_i32 = arith.constant 0 : i32
    %c0_i32_0 = arith.constant 0 : i32
    %c0_i32_1 = arith.constant 0 : i32
    %c0_i32_2 = arith.constant 0 : i32
    %c0_i32_3 = arith.constant 0 : i32
    return %c0_i32, %c0_i32_0, %c0_i32_1, %c0_i32_2 : i32, i32, i32, i32
  }
  func.func @transform_14(%arg0: i32) -> (i32, i32, i32) {
    %c0_i32 = arith.constant 0 : i32
    %c0_i32_0 = arith.constant 0 : i32
    %c0_i32_1 = arith.constant 0 : i32
    %c0_i32_2 = arith.constant 0 : i32
    return %c0_i32, %c0_i32_0, %c0_i32_1 : i32, i32, i32
  }
  func.func @transform_15(%arg0: i32) -> (i32, i32, i32) {
    %c0_i32 = arith.constant 0 : i32
    %c0_i32_0 = arith.constant 0 : i32
    %c0_i32_1 = arith.constant 0 : i32
    %c0_i32_2 = arith.constant 0 : i32
    return %c0_i32, %c0_i32_0, %c0_i32_1 : i32, i32, i32
  }
  func.func @transform_16(%arg0: i32) -> (i32, i32, i32) {
    %c0_i32 = arith.constant 0 : i32
    %c0_i32_0 = arith.constant 0 : i32
    %c0_i32_1 = arith.constant 0 : i32
    %c0_i32_2 = arith.constant 0 : i32
    return %c0_i32, %c0_i32_0, %c0_i32_1 : i32, i32, i32
  }
  func.func @transform_17(%arg0: i32) -> (i32, i32, i32) {
    %c0_i32 = arith.constant 0 : i32
    %c0_i32_0 = arith.constant 0 : i32
    %c0_i32_1 = arith.constant 0 : i32
    %c0_i32_2 = arith.constant 0 : i32
    return %c0_i32, %c0_i32_0, %c0_i32_1 : i32, i32, i32
  }
  func.func @transform_18(%arg0: i32) -> (i32, i32, i32) {
    %c0_i32 = arith.constant 0 : i32
    %c0_i32_0 = arith.constant 0 : i32
    %c0_i32_1 = arith.constant 0 : i32
    %c0_i32_2 = arith.constant 0 : i32
    return %c0_i32, %c0_i32_0, %c0_i32_1 : i32, i32, i32
  }
  func.func @transform_19(%arg0: i32) -> (i32, i32, i32) {
    %c0_i32 = arith.constant 0 : i32
    %c0_i32_0 = arith.constant 0 : i32
    %c0_i32_1 = arith.constant 0 : i32
    %c0_i32_2 = arith.constant 0 : i32
    return %c0_i32, %c0_i32_0, %c0_i32_1 : i32, i32, i32
  }
  func.func @transform_20(%arg0: i32) -> (i32, i32) {
    %c0_i32 = arith.constant 0 : i32
    %c0_i32_0 = arith.constant 0 : i32
    %c0_i32_1 = arith.constant 0 : i32
    return %c0_i32, %c0_i32_0 : i32, i32
  }
  func.func @transform_21(%arg0: i32) -> (i32, i32) {
    %c0_i32 = arith.constant 0 : i32
    %c0_i32_0 = arith.constant 0 : i32
    %c0_i32_1 = arith.constant 0 : i32
    return %c0_i32, %c0_i32_0 : i32, i32
  }
  func.func @transform_22(%arg0: i32) -> (i32, i32, i32) {
    %c0_i32 = arith.constant 0 : i32
    %c0_i32_0 = arith.constant 0 : i32
    %c0_i32_1 = arith.constant 0 : i32
    return %arg0, %c0_i32, %c0_i32_0 : i32, i32, i32
  }
}

</mosaic_0001>

<bundles_post_ra>
// kernel: tile.14
= control target key start
LH: loop header
LB: loop body
LE: loop exit
PB: predicated region body
PF: predicated region fallthrough
CT: control target
= control target key end

     0   :  { %vm88_vm0 = vcmask 1047556   ;;  %vm90_vm1 = vcmask 130048   ;;  %s233_s11 = smov 32   ;;  %s234_s18 = smov 16   ;;  %vm114_vm2 = vcmask 523648   ;;  %vm142_vm3 = vcmask 392448   ;;  %s343_s0 = inlined_call_operand.vmem [shape: f32[17,4,16], index: 0, kind: input, shape index: {}]   ;;  %s344_s1 = inlined_call_operand.vmem [shape: f32[17,64], index: 1, kind: output, shape index: {}]  }
   0x1   :  { %v214_v0 = vld [vmem:[%s343_s0 + $0x1c] sm:$0xf]  ;;  %v215_v1 = vld [vmem:[%s343_s0 + $0x18] sm:$0xf]  ;;  %v216_v2 = vld [vmem:[%s343_s0 + $0x14] sm:$0xf] }
   0x2   :  { %54 = vst [vmem:[#allocation0 + $0x38] sm:$0xf] %v214_v0  ;;  %59 = vst [vmem:[#allocation0 + $0x30] sm:$0xf] %v215_v1  ;;  %v217_v3 = vld [vmem:[%s343_s0 + $0x10] sm:$0xf] }
   0x3   :  { %64 = vst [vmem:[#allocation0 + $0x28] sm:$0xf] %v216_v2  ;;  %v218_v4 = vld [vmem:[%s343_s0 + $0xc] sm:$0xf]  ;;  %v219_v5 = vld [vmem:[%s343_s0 + $0x8] sm:$0xf] }
   0x4   :  { %69 = vst [vmem:[#allocation0 + $0x20] sm:$0xf] %v217_v3  ;;  %74 = vst [vmem:[#allocation0 + $0x18] sm:$0xf] %v218_v4  ;;  %v220_v6 = vld [vmem:[%s343_s0 + $0x4] sm:$0xf] }
   0x5   :  { %79 = vst [vmem:[#allocation0 + $0x10] sm:$0xf] %v219_v5  ;;  %v84_v7 = vld [vmem:[%s343_s0] sm:$0xf]  ;;  %83 = vst [vmem:[#allocation0 + $0x8] sm:$0xf] %v220_v6 }
   0x6   :  { %85 = vst [vmem:[#allocation0] sm:$0xf] %v84_v7  ;;  %v205_v8 = vld [vmem:[%s343_s0 + $0x40] sm:$0xf]  ;;  %v206_v9 = vld [vmem:[%s343_s0 + $0x3c] sm:$0xf] }
   0x7   :  { %v207_v10 = vld [vmem:[%s343_s0 + $0x38] sm:$0xf]  ;;  %9 = vst [vmem:[#allocation0 + $0x80] sm:$0xf] %v205_v8  ;;  %14 = vst [vmem:[#allocation0 + $0x78] sm:$0xf] %v206_v9 }
   0x8   :  { %19 = vst [vmem:[#allocation0 + $0x70] sm:$0xf] %v207_v10  ;;  %v208_v11 = vld [vmem:[%s343_s0 + $0x34] sm:$0xf]  ;;  %v209_v12 = vld [vmem:[%s343_s0 + $0x30] sm:$0xf] }
   0x9   :  { %v210_v13 = vld [vmem:[%s343_s0 + $0x2c] sm:$0xf]  ;;  %24 = vst [vmem:[#allocation0 + $0x68] sm:$0xf] %v208_v11  ;;  %29 = vst [vmem:[#allocation0 + $0x60] sm:$0xf] %v209_v12 }
   0xa   :  { %34 = vst [vmem:[#allocation0 + $0x58] sm:$0xf] %v210_v13  ;;  %v211_v14 = vld [vmem:[%s343_s0 + $0x28] sm:$0xf]  ;;  %v212_v15 = vld [vmem:[%s343_s0 + $0x24] sm:$0xf] }
   0xb   :  { %v213_v16 = vld [vmem:[%s343_s0 + $0x20] sm:$0xf]  ;;  %39 = vst [vmem:[#allocation0 + $0x50] sm:$0xf] %v211_v14  ;;  %44 = vst [vmem:[#allocation0 + $0x48] sm:$0xf] %v212_v15 }
   0xc   :  { %49 = vst [vmem:[#allocation0 + $0x40] sm:$0xf] %v213_v16  ;;  %v109_v17 = vld [vmem:[#allocation0 + $0x3] ss:$8 sm:$0xf0]   ;;  %s232_s0 = smov 48  }
   0xd   :  { %v107_v18 = vld [vmem:[#allocation0 + $0x3] ss:$8 sm:$0xf]   ;;  %v135_v22 = vld [vmem:[#allocation0 + $0x2] ss:$8 sm:$0xf]  }
   0xe   :  { %v111_v19 = vsel %vm88_vm0, %v109_v17, %v107_v18  ;;  %v128_v20 = vld [vmem:[#allocation0 + $0x83] sm:$0x1]   ;;  %v137_v23 = vld [vmem:[#allocation0 + $0x2] ss:$8 sm:$0xf0]   ;;  %vm170_vm4 = vcmask 261248  }
   0xf   :  { %112 = vrot.lane.b32.xlu0 %v111_v19, %s232_s0  ;;  %129 = vrot.lane.b32.xlu1 %v128_v20, %s232_s0  ;;  %v156_v25 = vld [vmem:[#allocation0 + $0x82] sm:$0x1]   ;;  %v163_v29 = vld [vmem:[#allocation0 + $0x1] ss:$8 sm:$0xf]   ;;  %v139_v35 = vsel %vm88_vm0, %v137_v23, %v135_v22 }
  0x10   :  { %v119_v21 = vld [vmem:[#allocation0 + $0x43] ss:$8 sm:$0xf0]   ;;  %v147_v28 = vld [vmem:[#allocation0 + $0x42] ss:$8 sm:$0xf0]  }
  0x11   :  { %v165_v30 = vld [vmem:[#allocation0 + $0x1] ss:$8 sm:$0xf0]   ;;  %v86_v32 = vld [vmem:[#allocation0] ss:$8 sm:$0xf]  }
  0x12   :  { %v87_v33 = vld [vmem:[#allocation0] ss:$8 sm:$0xf0]   ;;  %v175_v39 = vld [vmem:[#allocation0 + $0x41] ss:$8 sm:$0xf0]   ;;  %v167_v42 = vsel %vm88_vm0, %v165_v30, %v163_v29 }
  0x13   :  { %v117_v24 = vld [vmem:[#allocation0 + $0x43] ss:$8 sm:$0xf]   ;;  %v145_v27 = vld [vmem:[#allocation0 + $0x42] ss:$8 sm:$0xf]   ;;  %157 = vrot.lane.b32.xlu1 %v156_v25, %s233_s11  ;;  %v89_v36 = vsel %vm88_vm0, %v87_v33, %v86_v32 }
  0x14   :  { %v121_v26 = vsel %vm88_vm0, %v119_v21, %v117_v24  ;;  %v173_v31 = vld [vmem:[#allocation0 + $0x41] ss:$8 sm:$0xf]   ;;  %v149_v34 = vsel %vm88_vm0, %v147_v28, %v145_v27  ;;  %v102_v37 = vld [vmem:[#allocation0 + $0x80] sm:$0x1]   ;;  %91 = vst.msk [vmem:[%s344_s1] sm:$0xff] %vm90_vm1, %v89_v36  }
  0x15   :  { %122 = vrot.lane.b32.xlu0 %v121_v26, %s232_s0  ;;  %v93_v38 = vld [vmem:[#allocation0 + $0x40] ss:$8 sm:$0xf]   ;;  %222 = vst.msk [vmem:[%s344_s1 + $0x10] sm:$0x1] %vm90_vm1, %v102_v37   ;;  %v177_v43 = vsel %vm88_vm0, %v175_v39, %v173_v31 }
  0x16   :  { %v95_v40 = vld [vmem:[#allocation0 + $0x40] ss:$8 sm:$0xf0]   ;;  %v184_v44 = vld [vmem:[#allocation0 + $0x81] sm:$0x1]  }
  0x17   :  { %v97_v41 = vsel %vm88_vm0, %v95_v40, %v93_v38  ;;  %140 = vrot.lane.b32.xlu1 %v139_v35, %s233_s11 }
  0x18   :  { %221 = vst.msk [vmem:[%s344_s1 + $0x8] sm:$0xff] %vm90_vm1, %v97_v41  }
  0x19   :  { %150 = vrot.lane.b32.xlu0 %v149_v34, %s233_s11 }
  0x1b   :  { %178 = vrot.lane.b32.xlu1 %v177_v43, %s234_s18 }
  0x1d   :  { %168 = vrot.lane.b32.xlu0 %v167_v42, %s234_s18 }
  0x21   :  { %185 = vrot.lane.b32.xlu0 %v184_v44, %s234_s18 }
  0x81   :  { %v113_v45 = vpop.permute.xlu0 %112   ;;  %v130_v46 = vpop.permute.xlu1 %129  }
  0x82   :  { %115 = vst.msk [vmem:[%s344_s1] sm:$0xff] %vm114_vm2, %v113_v45   ;;  %224 = vst.msk [vmem:[%s344_s1 + $0x10] sm:$0x1] %vm114_vm2, %v130_v46  }
  0x85   :  { %v158_v48 = vpop.permute.xlu1 %157  }
  0x86   :  { %226 = vst.msk [vmem:[%s344_s1 + $0x10] sm:$0x1] %vm142_vm3, %v158_v48  }
  0x87   :  { %v123_v47 = vpop.permute.xlu0 %122  }
  0x88   :  { %223 = vst.msk [vmem:[%s344_s1 + $0x8] sm:$0xff] %vm114_vm2, %v123_v47  }
  0x89   :  { %v141_v50 = vpop.permute.xlu1 %140  }
  0x8a   :  { %143 = vst.msk [vmem:[%s344_s1] sm:$0xff] %vm142_vm3, %v141_v50  }
  0x8b   :  { %v151_v49 = vpop.permute.xlu0 %150  }
  0x8c   :  { %225 = vst.msk [vmem:[%s344_s1 + $0x8] sm:$0xff] %vm142_vm3, %v151_v49  }
  0x8d   :  { %v179_v52 = vpop.permute.xlu1 %178  }
  0x8e   :  { %227 = vst.msk [vmem:[%s344_s1 + $0x8] sm:$0xff] %vm170_vm4, %v179_v52  }
  0x8f   :  { %v169_v51 = vpop.permute.xlu0 %168  }
  0x90   :  { %171 = vst.msk [vmem:[%s344_s1] sm:$0xff] %vm170_vm4, %v169_v51  }
  0x93   :  { %v186_v53 = vpop.permute.xlu0 %185  }
  0x94   :  { %228 = vst.msk [vmem:[%s344_s1 + $0x10] sm:$0x1] %vm170_vm4, %v186_v53  }

// kernel: diffusion_transformer_forward.1
= control target key start
LH: loop header
LB: loop body
LE: loop exit
PB: predicated region body
PF: predicated region fallthrough
CT: control target
= control target key end

     0   :  { %s6067_s0 = inlined_call_operand.vmem [shape: f32[2,8,16], index: 0, kind: input, shape index: {}]   ;;  %s6068_s1 = inlined_call_operand.vmem [shape: f32[2,1,1], index: 1, kind: input, shape index: {}]   ;;  %s6069_s2 = inlined_call_operand.vmem [shape: f32[2,1,16], index: 2, kind: input, shape index: {}]   ;;  %s6070_s3 = inlined_call_operand.vmem [shape: f32[2,17,128], index: 3, kind: input, shape index: {}]   ;;  %s6071_s4 = inlined_call_operand.vmem [shape: f32[1,128], index: 4, kind: input, shape index: {}]   ;;  %s6072_s5 = inlined_call_operand.vmem [shape: bf16[16,64], index: 5, kind: input, shape index: {}]   ;;  %s6073_s6 = inlined_call_operand.vmem [shape: bf16[64,64], index: 6, kind: input, shape index: {}]   ;;  %s6074_s7 = inlined_call_operand.vmem [shape: bf16[256,64], index: 7, kind: input, shape index: {}]   ;;  %s6075_s8 = inlined_call_operand.vmem [shape: f32[1,64], index: 8, kind: input, shape index: {}]   ;;  %s6076_s9 = inlined_call_operand.vmem [shape: bf16[64,64], index: 9, kind: input, shape index: {}]   ;;  %s6077_s10 = inlined_call_operand.vmem [shape: f32[1,64], index: 10, kind: input, shape index: {}]   ;;  %s6078_s11 = inlined_call_operand.vmem [shape: bf16[8,8], index: 11, kind: input, shape index: {}]   ;;  %s6079_s12 = inlined_call_operand.vmem [shape: bf16[8,64], index: 12, kind: input, shape index: {}]   ;;  %s6080_s13 = inlined_call_operand.vmem [shape: f32[2,2,1,64], index: 13, kind: input, shape index: {}]   ;;  %s6081_s14 = inlined_call_operand.vmem [shape: bf16[2,64,192], index: 14, kind: input, shape index: {}]   ;;  %s6082_s15 = inlined_call_operand.vmem [shape: bf16[2,64,64], index: 15, kind: input, shape index: {}]   ;;  %s6083_s16 = inlined_call_operand.vmem [shape: bf16[2,64,512], index: 16, kind: input, shape index: {}]   ;;  %s6084_s17 = inlined_call_operand.vmem [shape: f32[2,1,512], index: 17, kind: input, shape index: {}]   ;;  %s6085_s18 = inlined_call_operand.vmem [shape: bf16[2,256,64], index: 18, kind: input, shape index: {}]   ;;  %s6086_s19 = inlined_call_operand.vmem [shape: f32[2,1,64], index: 19, kind: input, shape index: {}]   ;;  %s6087_s20 = inlined_call_operand.vmem [shape: bf16[64,8], index: 20, kind: input, shape index: {}]   ;;  %s6088_s21 = inlined_call_operand.vmem [shape: bf16[8,8], index: 21, kind: input, shape index: {}]   ;;  %s6089_s22 = inlined_call_operand.hbm [shape: f32[2,8,16], index: 22, kind: output, shape index: {}]  }
   0x1   :  { %6108 = sst [smem:[#allocation12_spill]] %s6067_s0 }
   0x2   :  { %6109 = sst [smem:[#allocation13_spill]] %s6068_s1 }
   0x3   :  { %6110 = sst [smem:[#allocation14_spill]] %s6069_s2 }
   0x4   :  { %6111 = sst [smem:[#allocation15_spill]] %s6070_s3 }
   0x5   :  { %6112 = sst [smem:[#allocation16_spill]] %s6071_s4 }
   0x6   :  { %6113 = sst [smem:[#allocation17_spill]] %s6072_s5 }
   0x7   :  { %6114 = sst [smem:[#allocation18_spill]] %s6073_s6 }
   0x8   :  { %6115 = sst [smem:[#allocation19_spill]] %s6089_s22 }
   0x9   :  { %27 = vsyncpa [#allocation4], 0 }
   0xa   :  { %29 = vsyncpa [#allocation4 + $0x1], 0  ;;  %s5143_s3 = smov 0   ;;  %s5145_s28 = smov 0  }
   0xb   :  { %s5147_s29 = smov 0   ;;  %s5149_s30 = smov 0  }
   0xc LB: > { %6116 = sst [smem:[#allocation6_spill]] %s4999_s3  ;;  %s5164_s4 = sadd.s32 4294967295, %s5011_s30   ;;  %s5011_s30 = sphi %s5149_s30, %s6139_s30   ;;  %s5007_s29 = sphi %s5147_s29, %s6141_s29   ;;  %s5003_s28 = sphi %s5145_s28, %s6143_s28   ;;  %s4999_s3 = sphi %s5143_s3, %s6142_s3  }
   0xd   : > { %6117 = sst [smem:[#allocation7_spill]] %s5007_s29  ;;  %s4043_s0 = sadd.s32 4294967294, %s5011_s30  }
   0xe   : > { %6118 = sst [smem:[#allocation8_spill]] %s5011_s30  ;;  %s5168_s23 = sadd.s32 1, %s5011_s30  }
   0xf   : > { %6119 = sst [smem:[#allocation9_spill]] %s5168_s23  ;;  %s519_s1 = sadd.s32 1, %s5007_s29 }
  0x10   : > { %s516_s5 = ssub.s32 %s5011_s30, %s5168_s23  ;;  %p529_p0 = scmp.ne.s32.totalorder %s5007_s29, %s5003_s28 }
  0x11   : > { %p517_p1 = scmp.eq.s32.totalorder %s516_s5, 0  ;;  %p530_p2 = scmp.eq.s32.totalorder %s5164_s4, 1 }
  0x12   : > { %p535_p3 = scmp.ne.s32.totalorder %s5003_s28, %s4999_s3  ;;  %p536_p4 = scmp.eq.s32.totalorder %s4043_s0, 1 }
  0x13   : > { %s5179_s24 = scalar_select %p517_p1, %s5007_s29, %s519_s1  }
  0x14   : > { %p5181_p5 = por %p530_p2, %p529_p0  ;;  %p5185_p6 = por %p536_p4, %p535_p3 }
  0x15   : > { %6120 = sst [smem:[#allocation10_spill]] %s5179_s24  ;;  %p4046_p7 = scmp.ge.s32.totalorder %s5011_s30, 1 }
  0x16   : > { %s6122_s25 = scalar_select %p5185_p6, 1, 0 }
  0x17   : > { %p630_p8 = scmp.lt.s32.totalorder %s5011_s30, 3 }
  0x18   : > { %6123 = sst [smem:[#allocation11_spill]] %s6122_s25 }
  0x19   : > { %p631_p9 = pnand %p4046_p7, %p630_p8 }
  0x1a   : > { %p697_p10 = scmp.lt.s32.totalorder (!%p631_p9), %s5164_s4, 1  ;;  %s6124_s0 = sld [smem:[#allocation13_spill]] (!%p631_p9) }
  0x1b   : > { %634 = sbr.rel (%p631_p9) target bundleno = 6349 (0x18cd), region = 108  ;;  %s6125_s24 = sld [smem:[#allocation17_spill]] (!%p631_p9) }
  0x1c   : > { %s6126_s23 = sld [smem:[#allocation14_spill]] (!%p631_p9)  ;;  %s5022_s22 = smov (!%p631_p9), 16  }
  0x1d   : > { %s6127_s30 = sld [smem:[#allocation16_spill]] (!%p631_p9)  ;;  %s6099_s29 = smov (!%p631_p9), 96  }
  0x1e   : > { %s6128_s27 = sld [smem:[#allocation12_spill]] (!%p631_p9)  ;;  %s6132_s5 = smov (!%p631_p9), 64  }
  0x1f   : > { %s6130_s2 = sld [smem:[#allocation15_spill]] (!%p631_p9)  ;;  %s694_s25 = sand.u32 (!%p631_p9), 1, %s5003_s28  }
  0x20   : > { %v5013_v0 = vmov 0   ;;  %s5194_s26 = scalar_select %p697_p10, %s5164_s4, 1  ;;  %v4672_v2 = vld [vmem:[%s6074_s7 + $0x78] sm:$0xff]   ;;  %v4674_v4 = vld [vmem:[%s6074_s7 + $0x70] sm:$0xff]   ;;  %v4676_v6 = vld [vmem:[%s6074_s7 + $0x68] sm:$0xff]   ;;  %v5014_v18 = vmov 0.0   ;;  %v785_v22 = vlaneseq }
  0x21   : > { %4661 = vset.pattern.permute.xlu0 %v5013_v0  ;;  %v4673_v3 = vld [vmem:[%s6074_s7 + $0x38] sm:$0xff]   ;;  %4311 = vmatprep.subr.bf16.mxu1 %v4672_v2  ;;  %v4675_v5 = vld [vmem:[%s6074_s7 + $0x30] sm:$0xff]   ;;  %v4677_v7 = vld [vmem:[%s6074_s7 + $0x28] sm:$0xff]   ;;  %vm5015_vm0 = vmmov 0   ;;  %vm718_vm1 = vcmask 130048  }
  0x22   : > { %s703_s1 = scalar_lea.vmem %s6124_s0, %s5194_s26  ;;  %4312 = vmatpush3.bf16.msra.mxu1 %v4673_v3  ;;  %v4678_v8 = vld [vmem:[%s6074_s7 + $0x60] sm:$0xff]   ;;  %v4680_v10 = vld [vmem:[%s6074_s7 + $0x58] sm:$0xff]   ;;  %v4682_v12 = vld [vmem:[%s6074_s7 + $0x50] sm:$0xff]   ;;  %4452 = vmatprep.subr.bf16.mxu0 %v5014_v18  ;;  %s706_s3 = scalar_lea.vmem %s6126_s23, %s5194_s26  ;;  %v5263_v23 = vshrl.u32 %v785_v22, 7  ;;  %v5016_v39 = vmov 683565275  }
  0x23   : > { %v778_v1 = vld [vmem:[%s703_s1] sm:$0x1]  ;;  %4313 = vmatprep.subr.bf16.mxu1 %v4674_v4  ;;  %v4681_v11 = vld [vmem:[%s6074_s7 + $0x18] sm:$0xff]   ;;  %v4683_v13 = vld [vmem:[%s6074_s7 + $0x10] sm:$0xff]   ;;  %4454 = vmatprep.mubr.msk.bf16.mxu0 %vm5015_vm0, %v5014_v18  ;;  %v5017_v41 = vmov 2475754826  }
  0x24   : > { %782 = vperm.xlu0 %4661, %v778_v1   ;;  %v4679_v9 = vld [vmem:[%s6074_s7 + $0x20] sm:$0xff]   ;;  %v4684_v14 = vld [vmem:[%s6074_s7 + $0x48] sm:$0xff]   ;;  %v5266_v24 = vsub.s32 0, %v5263_v23  ;;  %v5018_v44 = vmov 2131351028   ;;  %s4048_s1 = sshll.u32 %s5194_s26, 3 }
  0x25   : > { %v4685_v15 = vld [vmem:[%s6074_s7 + $0x8] sm:$0xff]   ;;  %v4686_v16 = vld [vmem:[%s6074_s7 + $0x40] sm:$0xff]   ;;  %v5019_v47 = vmov 2102212464   ;;  %v5020_v50 = vmov 920167782  }
  0x26   : > { %4314 = vmatpush3.bf16.msra.mxu1 %v4675_v5  ;;  %v4687_v17 = vld [vmem:[%s6074_s7] sm:$0xff]   ;;  %v5021_v53 = vmov 1326507024   ;;  %s6129_s0 = sld [smem:[#allocation18_spill]]  ;;  %s6101_s26 = smov 32  }
  0x27   : > { %4315 = vmatprep.subr.bf16.mxu1 %v4676_v6  ;;  %v4688_v19 = vld [vmem:[%s6125_s24] sm:$0xff]   ;;  %s700_s24 = scalar_lea.vmem %s6128_s27, %s4048_s1  ;;  %s4047_s1 = sshll.u32 %s694_s25, 3 }
  0x28   : > { %v708_v20 = vld [vmem:[%s706_s3] sm:$0x1]  ;;  %4453 = vmatpush3.bf16.msra.mxu0 %v4688_v19  ;;  %s6134_s3 = smov 96   ;;  %s696_s27 = scalar_lea.vmem [#allocation3], %s4047_s1 }
  0x29   : > { %v711_v21 = vpack.c.bf16 %v708_v20, %v708_v20  ;;  %4458 = vmatprep.subr.bf16.mxu0 %v5014_v18  ;;  %v779_v25 = vld [vmem:[%s6127_s30] sm:$0x1]  ;;  %s6105_s30 = smov 112  }
  0x2a   : > { %4316 = vmatpush3.bf16.msra.mxu1 %v4677_v7 }
  0x2b   : > { %4317 = vmatprep.subr.bf16.mxu1 %v4678_v8  ;;  %4455 = vmatmul.mubr.msk.bf16.vlgmr.msra.gmra.mxu0 %vm718_vm1, %v711_v21 }
  0x2c   : > { %4466 = vmatprep.mubr.msk.bf16.mxu0 %vm5015_vm0, %v5014_v18 }
  0x2e   : > { %4318 = vmatpush3.bf16.msra.mxu1 %v4679_v9 }
  0x2f   : > { %4319 = vmatprep.subr.bf16.mxu1 %v4680_v10 }
  0x32   : > { %4320 = vmatpush3.bf16.msra.mxu1 %v4681_v11 }
  0x33   : > { %4321 = vmatprep.subr.bf16.mxu1 %v4682_v12 }
  0x36   : > { %4322 = vmatpush3.bf16.msra.mxu1 %v4683_v13 }
  0x37   : > { %4323 = vmatprep.subr.bf16.mxu1 %v4684_v14 }
  0x3a   : > { %4324 = vmatpush3.bf16.msra.mxu1 %v4685_v15 }
  0x3b   : > { %4325 = vmatprep.subr.bf16.mxu1 %v4686_v16 }
  0x3e   : > { %4326 = vmatpush3.bf16.msra.mxu1 %v4687_v17 }
  0x3f   : > { %4482 = vmatprep.subr.bf16.mxu1 %v5014_v18 }
  0x9f   : > { %v783_v26 = vpop.permute.xlu0 %782 }
  0xa0   : > { %v788_v27 = vrot.slane %v783_v26, %v5266_v24 }
  0xa2   : > { %v5272_v28 = vmul.f32 %v788_v27, %v779_v25 }
  0xa4   : > { %v793_v29 = vand.u32 2139095040, %v5272_v28  ;;  %v790_v33 = vand.u32 2147483647, %v5272_v28  ;;  %vm792_vm9 = vcmp.lt.s32.totalorder %v5272_v28, 0 }
  0xa6   : > { %v794_v30 = vshrl.u32 %v793_v29, 23  ;;  %v797_v37 = vand.u32 8388607, %v790_v33  ;;  %vm791_vm10 = vcmp.le.f32.partialorder %v790_v33, 0.7853982 }
  0xa8   : > { %v4052_v31 = vadd.s32 4294967169, %v794_v30  ;;  %v798_v55 = vor.u32 8388608, %v797_v37 }
  0xaa   : > { %v800_v32 = vadd.s32 1, %v4052_v31  ;;  %v838_v6 = vshll.u32 %v798_v55, 8  ;;  %v1320_v55 = vld [vmem:[%s700_s24] sm:$0xff]  ;;  %s6103_s24 = smov 64  }
  0xac   : > { %vm801_vm2 = vcmp.gt.s32.totalorder %v800_v32, 0 }
  0xad   : > { %v802_v34 = vsel %vm801_vm2, %v800_v32, 0 }
  0xae   : > { %v804_v35 = vand.u32 31, %v802_v34  ;;  %v803_v38 = vshrl.u32 %v802_v34, 5 }
  0xb0   : > { %v805_v36 = vsub.s32 32, %v804_v35  ;;  %v807_v40 = vshll.u32 %v5016_v39, %v804_v35  ;;  %v810_v42 = vshll.u32 %v5017_v41, %v804_v35  ;;  %v813_v46 = vshll.u32 %v5018_v44, %v804_v35 }
  0xb1   : > { %v816_v49 = vshll.u32 %v5019_v47, %v804_v35  ;;  %v819_v52 = vshll.u32 %v5020_v50, %v804_v35  ;;  %vm822_vm3 = vcmp.lt.s32.totalorder %v803_v38, 1  ;;  %vm825_vm4 = vcmp.lt.s32.totalorder %v803_v38, 4 }
  0xb2   : > { %v808_v43 = vshrl.u32 %v5017_v41, %v805_v36  ;;  %v811_v45 = vshrl.u32 %v5018_v44, %v805_v36  ;;  %v814_v48 = vshrl.u32 %v5019_v47, %v805_v36  ;;  %v817_v51 = vshrl.u32 %v5020_v50, %v805_v36 }
  0xb3   : > { %v820_v54 = vshrl.u32 %v5021_v53, %v805_v36  ;;  %v806_v1 = vshrl.u32 %v5016_v39, %v805_v36  ;;  %vm824_vm5 = vcmp.lt.s32.totalorder %v803_v38, 3  ;;  %vm823_vm6 = vcmp.lt.s32.totalorder %v803_v38, 2 }
  0xb4   : > { %v809_v56 = vor.u32 %v808_v43, %v807_v40  ;;  %v812_v57 = vor.u32 %v811_v45, %v810_v42  ;;  %v815_v58 = vor.u32 %v814_v48, %v813_v46  ;;  %v818_v59 = vor.u32 %v817_v51, %v816_v49 }
  0xb5   : > { %v821_v60 = vor.u32 %v820_v54, %v819_v52 }
  0xb6   : > { %v827_v61 = vsel %vm825_vm4, %v815_v58, 2102212464  ;;  %v830_v62 = vsel %vm822_vm3, %v809_v56, %v812_v57  ;;  %v834_v63 = vsel %vm822_vm3, %v812_v57, %v815_v58  ;;  %v831_v2 = vsel %vm825_vm4, %v818_v59, 920167782 }
  0xb7   : > { %v835_v3 = vsel %vm825_vm4, %v821_v60, 1326507024  ;;  %v832_v4 = vsel %vm824_vm5, %v815_v58, %v831_v2  ;;  %v826_v7 = vsel %vm822_vm3, %v806_v1, %v809_v56  ;;  %v828_v8 = vsel %vm824_vm5, %v812_v57, %v827_v61 }
  0xb8   : > { %v836_v5 = vsel %vm824_vm5, %v818_v59, %v835_v3  ;;  %v833_v9 = vsel %vm823_vm6, %v830_v62, %v832_v4  ;;  %v829_v15 = vsel %vm823_vm6, %v826_v7, %v828_v8  ;;  %v1322_v59 = vpack.c.bf16 %v1320_v55, %v1320_v55  ;;  %v1321_v8 = vld [vmem:[%s6078_s11] sm:$0xf] }
  0xb9   : > { %v837_v10 = vsel %vm823_vm6, %v834_v63, %v836_v5  ;;  %v5281_v13 = vmul.u32.u64.low %v838_v6, %v833_v9  ;;  %v5282_v14 = vmul.u32.u64.high %v838_v6, %v833_v9, %v5281_v13  ;;  %v845_v17 = vmul.u32 %v838_v6, %v829_v15  ;;  %v4692_v15 = vld [vmem:[%s6076_s9] sm:$0xff]  }
  0xba   : > { %v5278_v11 = vmul.u32.u64.low %v838_v6, %v837_v10  ;;  %v5279_v12 = vmul.u32.u64.high %v838_v6, %v837_v10, %v5278_v11  ;;  %vm882_vm3 = vweird.f32 %v5272_v28  ;;  %vm1327_vm4 = vcmask 1043456   ;;  %v4689_v10 = vld [vmem:[%s6076_s9 + $0x18] sm:$0xff]  }
  0xbb   : > { %v848_v16 = vadd.s32 1, %v5282_v14  ;;  %v1329_v7 = vsel %vm1327_vm4, %v1322_v59, 0  ;;  %vm1323_vm5 = vcmask 64512   ;;  %4459 = vmatpush3.bf16.msra.mxu0 %v4689_v10  ;;  %vm1209_vm6 = vcmask 523264  }
  0xbc   : > { %vm847_vm7 = vc.u32 %v5279_v12, %v5281_v13  ;;  %v846_v34 = vadd.s32 %v5281_v13, %v5279_v12  ;;  %4460 = vmatprep.subr.bf16.mxu0 %v5014_v18  ;;  %v4690_v13 = vld [vmem:[%s6076_s9 + $0x10] sm:$0xff]  }
  0xbd   : > { %v849_v19 = vsel %vm847_vm7, %v848_v16, %v5282_v14  ;;  %v4691_v14 = vld [vmem:[%s6076_s9 + $0x8] sm:$0xff]   ;;  %vm1439_vm7 = vcmask 516096  }
  0xbe   : > { %v850_v20 = vadd.s32 %v849_v19, %v845_v17  ;;  %v1031_v17 = vld [vmem:[%s6075_s8] sm:$0x1] }
  0xbf   : > { %4461 = vmatpush3.bf16.msra.mxu0 %v4690_v13 }
  0xc0   : > { %v851_v21 = vadd.s32 536870912, %v850_v20  ;;  %4462 = vmatprep.subr.bf16.mxu0 %v5014_v18 }
  0xc2   : > { %v852_v22 = vshrl.u32 %v851_v21, 30 }
  0xc3   : > { %4463 = vmatpush3.bf16.msra.mxu0 %v4691_v14 }
  0xc4   : > { %v853_v25 = vshll.u32 %v852_v22, 30  ;;  %v876_v47 = vsub.s32 4, %v852_v22  ;;  %4464 = vmatprep.subr.bf16.mxu0 %v5014_v18 }
  0xc6   : > { %v854_v26 = vsub.s32 %v850_v20, %v853_v25  ;;  %v877_v50 = vsel %vm792_vm9, %v876_v47, %v852_v22 }
  0xc7   : > { %v879_v51 = vsel %vm791_vm10, 0, %v877_v50  ;;  %4465 = vmatpush3.bf16.msra.mxu0 %v4692_v15 }
  0xc8   : > { %v856_v27 = vsub.s32 0, %v854_v26  ;;  %v986_v52 = vadd.s32 3, %v879_v51  ;;  %v883_v53 = vand.u32 3, %v879_v51  ;;  %4470 = vmatprep.subr.bf16.mxu0 %v5014_v18 }
  0xca   : > { %v4053_v29 = vmin.u32 %v856_v27, %v854_v26  ;;  %v987_v54 = vand.u32 3, %v986_v52  ;;  %vm888_vm11 = vcmp.eq.s32.totalorder %v883_v53, 2  ;;  %vm885_vm13 = vcmp.eq.s32.totalorder %v883_v53, 0 }
  0xcb   : > { %vm884_vm15 = vcmp.lt.s32.totalorder %v883_v53, 2 }
  0xcc   : > { %v858_v30 = vclz %v4053_v29  ;;  %vm992_vm12 = vcmp.eq.s32.totalorder %v987_v54, 2  ;;  %vm989_vm14 = vcmp.eq.s32.totalorder %v987_v54, 0  ;;  %vm988_vm2 = vcmp.lt.s32.totalorder %v987_v54, 2 }
  0xce   : > { %v4054_v31 = vadd.s32 4294967294, %v858_v30 }
  0xd0   : > { %vm4055_vm8 = vcmp.lt.s32.totalorder %v4054_v31, 0 }
  0xd1   : > { %v861_v32 = vsel %vm4055_vm8, 0, %v4054_v31  ;;  %vm1643_vm8 = vcmask 261120  }
  0xd2   : > { %v862_v35 = vsub.s32 32, %v861_v32  ;;  %v866_v36 = vsub.s32 4294967266, %v861_v32  ;;  %v863_v37 = vshll.u32 %v854_v26, %v861_v32 }
  0xd4   : > { %v864_v38 = vshrl.u32 %v846_v34, %v862_v35  ;;  %v867_v39 = vadd.s32 127, %v866_v36 }
  0xd6   : > { %v865_v40 = vor.u32 %v864_v38, %v863_v37  ;;  %v868_v41 = vshll.u32 %v867_v39, 23 }
  0xd8   : > { %v869_v42 = vor.u32 4788187, %v868_v41  ;;  %v872_v44 = vcvt.s32.f32 %v865_v40 }
  0xda   : > { %v870_v43 = vand.u32 2147483647, %v869_v42  ;;  %v4693_v42 = vld [vmem:[%s6129_s0 + $0x18] sm:$0xff]  }
  0xdc   : > { %v873_v45 = vmul.f32 %v872_v44, %v870_v43  ;;  %v4694_v44 = vld [vmem:[%s6129_s0 + $0x10] sm:$0xff]  }
  0xde   : > { %v874_v46 = vxor.u32 2147483648, %v873_v45 }
  0xe0   : > { %v875_v48 = vsel %vm792_vm9, %v874_v46, %v873_v45  ;;  %v4695_v46 = vld [vmem:[%s6129_s0 + $0x8] sm:$0xff]   ;;  %vm1647_vm9 = vcmask 392192  }
  0xe1   : > { %v878_v49 = vsel %vm791_vm10, %v5272_v28, %v875_v48  ;;  %v4696_v48 = vld [vmem:[%s6129_s0] sm:$0xff]   ;;  %vm1654_vm10 = vcmask 654336  }
  0xe2   : > { %4813 = vcosq.f32 %v878_v49 }
  0xe3   : > { %4815 = vsinq.f32 %v878_v49  ;;  %v1373_v49 = vld [vmem:[%s6079_s12] sm:$0xf] }
  0xe4   : > { %v1394_v51 = vsel %vm1327_vm4, %v1373_v49, 0  ;;  %v4092_v49 = vld [vmem:[%s6080_s13] ss:$0 sm:$0xff] }
  0xeb   : > { %v756_v28 = vpop.f32.mrf.mxu0 }
  0xec   : > { %v4051_v32 = vmul.f32 -1.442695, %v756_v28 }
  0xed   : > { %v4456_v9 = vpop.f32.mrf.mxu0 }
  0xef   : > { %v4814_v56 = vpop.eup %4813  ;;  %v759_v11 = vpop.f32.mrf.mxu0 }
  0xf0   : > { %v4816_v57 = vpop.eup %4815  ;;  %v889_v58 = vxor.u32 2147483648, %v4814_v56 }
  0xf1   : > { %v886_v33 = vxor.u32 2147483648, %v4816_v57  ;;  %v4457_v12 = vpop.f32.mrf.mxu0 }
  0xf2   : > { %v890_v60 = vsel %vm888_vm11, %v889_v58, %v4816_v57  ;;  %v994_v61 = vsel %vm992_vm12, %v889_v58, %v4816_v57  ;;  %v1184_v57 = vld [vmem:[%s6077_s10] sm:$0x1]  ;;  %vm1658_vm11 = vcmask 785408   ;;  %vm1662_vm12 = vcmask 916480  }
  0xf3   : > { %v887_v62 = vsel %vm885_vm13, %v4814_v56, %v886_v33  ;;  %v991_v63 = vsel %vm989_vm14, %v4814_v56, %v886_v33  ;;  %vm1783_vm13 = vcmask 1040384   ;;  %vm1740_vm14 = vcmask 138240  }
  0xf4   : > { %v891_v1 = vsel %vm884_vm15, %v887_v62, %v890_v60  ;;  %v995_v2 = vsel %vm988_vm2, %v991_v63, %v994_v61  ;;  %vm1747_vm15 = vcmask 131072  }
  0xf5   : > { %v892_v3 = vsel %vm882_vm3, nan, %v891_v1  ;;  %v996_v4 = vsel %vm882_vm3, nan, %v995_v2 }
  0xf6   : > { %v1029_v5 = vpack.c.bf16 %v892_v3, %v892_v3  ;;  %v1030_v6 = vpack.c.bf16 %v996_v4, %v996_v4 }
  0xf8   : > { %1160 = vmatprep.mubr.bf16.mxu1 %v1030_v6 }
  0xf9   : > { %1161 = vmatmul.mubr.bf16.vlgmr.msra.gmra.mxu1 %v1029_v5 }
  0xfa   : > { %4483 = vmatpush3.bf16.msra.mxu1 %v1329_v7  ;;  %4484 = vmatprep.mubr.msk.bf16.mxu1 %vm5015_vm0, %v5014_v18 }
 0x101   : > { %4485 = vmatmul.mubr.msk.bf16.vlgmr.msra.gmra.mxu1 %vm1323_vm5, %v1321_v8 }
 0x102   : > { %1589 = vmatprep.mubr.bf16.mxu1 %v5013_v0 }
 0x1b9   : > { %v4327_v16 = vpop.f32.mrf.mxu1 }
 0x1bb   : > { %v4328_v19 = vpop.f32.mrf.mxu1 }
 0x1bc   : > { %v4329_v20 = vadd.f32 %v4328_v19, %v4327_v16 }
 0x1bd   : > { %v4330_v21 = vpop.f32.mrf.mxu1 }
 0x1be   : > { %v1163_v22 = vadd.f32 %v4329_v20, %v1031_v17 }
 0x1bf   : > { %v4331_v25 = vpop.f32.mrf.mxu1 }
 0x1c0   : > { %v4076_v26 = vmul.f32 -1.442695, %v1163_v22 }
 0x1c1   : > { %v1365_v27 = vpop.f32.mrf.mxu1 }
 0x1c2   : > { %4817 = vpow2.f32 %v4076_v26  ;;  %v1371_v29 = vadd.f32 %v1365_v27, %v1320_v55  ;;  %v4699_v27 = vld [vmem:[%s6081_s14 + $0x34] ss:$8 sps:$4 sm:$0xff]  }
 0x1c3   : > { %v4486_v30 = vpop.f32.mrf.mxu1  ;;  %4819 = vpow2.f32 %v4051_v32  ;;  %1565 = vmatprep.subr.bf16.mxu1 %v4699_v27  ;;  %v4705_v32 = vld [vmem:[%s6081_s14 + $0x14] ss:$8 sps:$4 sm:$0xff]  }
 0x1c4   : > { %v1372_v31 = vpack.c.bf16 %v1371_v29, %v1371_v29  ;;  %v4697_v29 = vld [vmem:[%s6081_s14 + $0x30] ss:$8 sps:$4 sm:$0xff]   ;;  %v4702_v30 = vld [vmem:[%s6081_s14 + $0x24] ss:$8 sps:$4 sm:$0xff]  }
 0x1c5   : > { %v1368_v34 = vpop.f32.mrf.mxu1  ;;  %1566 = vmatpush1.bf16.msra.mxu1 %v4697_v29 }
 0x1c6   : > { %1374 = vxpose.xlu0.c.b16.start.end [1/1] (short) (narrow) %v1372_v31, 16  ;;  %v4700_v31 = vld [vmem:[%s6081_s14 + $0x20] ss:$8 sps:$4 sm:$0xff]   ;;  %1567 = vmatprep.subr.bf16.mxu1 %v4702_v30  ;;  %v4703_v34 = vld [vmem:[%s6081_s14 + $0x10] ss:$8 sps:$4 sm:$0xff]  }
 0x1c7   : > { %v4487_v35 = vpop.f32.mrf.mxu1 }
 0x1c8   : > { %v4706_v35 = vld [vmem:[%s6081_s14] ss:$8 sps:$4 sm:$0xff]  }
 0x1c9   : > { %1568 = vmatpush1.bf16.msra.mxu1 %v4700_v31 }
 0x1ca   : > { %1569 = vmatprep.subr.bf16.mxu1 %v4705_v32 }
 0x1cd   : > { %1570 = vmatpush1.bf16.msra.mxu1 %v4703_v34 }
 0x1cf   : > { %v4818_v36 = vpop.eup %4817 }
 0x1d0   : > { %v1171_v37 = vadd.f32 1.0, %v4818_v36  ;;  %v4820_v38 = vpop.eup %4819  ;;  %v4708_v36 = vld [vmem:[%s6081_s14 + $0x4] ss:$8 sps:$4 sm:$0xff]  }
 0x1d1   : > { %v765_v39 = vadd.f32 1.0, %v4820_v38  ;;  %1571 = vmatprep.subr.bf16.mxu1 %v4708_v36 }
 0x1d2   : > { %4821 = vrcp.f32 %v1171_v37  ;;  %1572 = vmatpush1.bf16.msra.mxu1 %v4706_v35 }
 0x1d3   : > { %4823 = vrcp.f32 %v765_v39 }
 0x1df   : > { %v4822_v40 = vpop.eup %4821 }
 0x1e0   : > { %v1174_v41 = vmul.f32 %v4822_v40, %v1163_v22  ;;  %v4824_v45 = vpop.eup %4823 }
 0x1e1   : > { %v768_v47 = vmul.f32 %v4824_v45, %v756_v28 }
 0x1e2   : > { %v1183_v43 = vpack.c.bf16 %v1174_v41, %v1174_v41 }
 0x1e3   : > { %v777_v50 = vpack.c.bf16 %v768_v47, %v768_v47 }
 0x1e4   : > { %4467 = vmatmul.mubr.msk.bf16.vlgmr.msra.gmra.mxu0 %vm1209_vm6, %v1183_v43 }
 0x1e5   : > { %4471 = vmatpush3.bf16.msra.mxu0 %v4693_v42  ;;  %4478 = vmatprep.mubr.msk.bf16.mxu0 %vm5015_vm0, %v5014_v18 }
 0x1e6   : > { %4472 = vmatprep.subr.bf16.mxu0 %v5014_v18 }
 0x1e9   : > { %4473 = vmatpush3.bf16.msra.mxu0 %v4694_v44 }
 0x1ea   : > { %4474 = vmatprep.subr.bf16.mxu0 %v5014_v18 }
 0x1ed   : > { %4475 = vmatpush3.bf16.msra.mxu0 %v4695_v46 }
 0x1ee   : > { %4476 = vmatprep.subr.bf16.mxu0 %v5014_v18 }
 0x1f1   : > { %4477 = vmatpush3.bf16.msra.mxu0 %v4696_v48 }
 0x1f2   : > { %4488 = vmatprep.subr.bf16.mxu0 %v5014_v18 }
 0x1f4   : > { %4479 = vmatmul.mubr.msk.bf16.vlgmr.msra.gmra.mxu0 %vm1209_vm6, %v777_v50 }
 0x1f5   : > { %4489 = vmatpush3.bf16.msra.mxu0 %v1394_v51  ;;  %4490 = vmatprep.mubr.msk.bf16.mxu0 %vm5015_vm0, %v5014_v18 }
 0x228   : > { %v1382_v52 = vpop.trf.xlu0 }
 0x229   : > { %4491 = vmatmul.mubr.msk.bf16.vlgmr.msra.gmra.mxu0 %vm1323_vm5, %v1382_v52 }
 0x2a4   : > { %v1247_v53 = vpop.f32.mrf.mxu0 }
 0x2a5   : > { %v1248_v58 = vadd.f32 %v1247_v53, %v1184_v57 }
 0x2a6   : > { %v4468_v54 = vpop.f32.mrf.mxu0 }
 0x2a8   : > { %v1250_v55 = vpop.f32.mrf.mxu0 }
 0x2aa   : > { %v4469_v56 = vpop.f32.mrf.mxu0 }
 0x2b4   : > { %v1314_v33 = vpop.f32.mrf.mxu0 }
 0x2b5   : > { %v1315_v59 = vadd.f32 %v1314_v33, %v1248_v58 }
 0x2b6   : > { %v4480_v60 = vpop.f32.mrf.mxu0 }
 0x2b7   : > { %1440 = vst.msk [vmem:[#allocation2 + $0x10] sm:$0x1] %vm1439_vm7, %v1315_v59 }
 0x2b8   : > { %v1317_v61 = vpop.f32.mrf.mxu0 }
 0x2ba   : > { %v4481_v62 = vpop.f32.mrf.mxu0 }
 0x2be   : > { %v5365_v8 = vld [vmem:[#allocation2 + $0x10] sm:$0x1] }
 0x2bf   : > { %v1458_v28 = vsel %vm1439_vm7, %v5365_v8, 0.0 }
 0x2e9   : > { %v1430_v63 = vpop.f32.mrf.mxu0 }
 0x2ea   : > { %1437 = vst.msk [vmem:[#allocation2] sm:$0xff] %vm1209_vm6, %v1430_v63 }
 0x2eb   : > { %v4492_v1 = vpop.f32.mrf.mxu0 }
 0x2ed   : > { %v1433_v2 = vpop.f32.mrf.mxu0 }
 0x2ee   : > { %1438 = vst.msk [vmem:[#allocation2 + $0x8] sm:$0xff] %vm1209_vm6, %v1433_v2 }
 0x2ef   : > { %v4493_v3 = vpop.f32.mrf.mxu0 }
 0x2f1   : > { %v5357_v4 = vld [vmem:[#allocation2] sm:$0xff] }
 0x2f2   : > { %v1452_v5 = vsel %vm1209_vm6, %v5357_v4, 0.0 }
 0x2f3   : > { %1453 = vadd.xlane.f32.xlu1 %v1452_v5 }
 0x2f5   : > { %v5361_v6 = vld [vmem:[#allocation2 + $0x8] sm:$0xff] }
 0x2f6   : > { %v1455_v7 = vsel %vm1209_vm6, %v5361_v6, 0.0 }
 0x2f7   : > { %1456 = vadd.xlane.f32.xlu1 %v1455_v7 }
 0x2fb   : > { %1459 = vadd.xlane.f32.xlu1 %v1458_v28 }
 0x37c   : > { %v1454_v9 = vpop.xlane.xlu1 %1453 }
 0x37d   : > { %v1462_v10 = vmul.f32 0.015625, %v1454_v9 }
 0x37f   : > { %v1465_v11 = vsub.f32 %v5357_v4, %v1462_v10 }
 0x380   : > { %v1457_v12 = vpop.xlane.xlu1 %1456 }
 0x381   : > { %v1463_v13 = vmul.f32 0.015625, %v1457_v12  ;;  %v1468_v14 = vmul.f32 %v1465_v11, %v1465_v11 }
 0x383   : > { %v1466_v15 = vsub.f32 %v5361_v6, %v1463_v13  ;;  %v1471_v16 = vsel %vm1209_vm6, %v1468_v14, 0.0 }
 0x384   : > { %1472 = vadd.xlane.f32.xlu1 %v1471_v16  ;;  %v1460_v17 = vpop.xlane.xlu1 %1459  ;;  %v1446_v16 = vld [vmem:[%s6130_s2 + $0x10] sm:$0x1] }
 0x385   : > { %v1464_v19 = vmul.f32 0.015625, %v1460_v17  ;;  %v1469_v20 = vmul.f32 %v1466_v15, %v1466_v15  ;;  %v4091_v17 = vld [vmem:[%s6130_s2 + $0x28] sm:$0x1] }
 0x387   : > { %v1467_v21 = vsub.f32 %v5365_v8, %v1464_v19  ;;  %v1474_v22 = vsel %vm1209_vm6, %v1469_v20, 0.0 }
 0x388   : > { %1475 = vadd.xlane.f32.xlu1 %v1474_v22 }
 0x389   : > { %v1470_v25 = vmul.f32 %v1467_v21, %v1467_v21 }
 0x38b   : > { %v1477_v26 = vsel %vm1439_vm7, %v1470_v25, 0.0 }
 0x38c   : > { %1478 = vadd.xlane.f32.xlu1 %v1477_v26 }
 0x40d   : > { %v1473_v37 = vpop.xlane.xlu1 %1472 }
 0x40e   : > { %v1480_v38 = vmul.f32 0.015625, %v1473_v37  ;;  %v4090_v37 = vld [vmem:[%s6130_s2 + $0x20] sm:$0xff] }
 0x410   : > { %v1483_v39 = vadd.f32 1e-05, %v1480_v38 }
 0x411   : > { %v1476_v40 = vpop.xlane.xlu1 %1475 }
 0x412   : > { %4825 = vrsqrt.f32 %v1483_v39  ;;  %v1481_v41 = vmul.f32 0.015625, %v1476_v40 }
 0x414   : > { %v1484_v42 = vadd.f32 1e-05, %v1481_v41 }
 0x415   : > { %v1479_v43 = vpop.xlane.xlu1 %1478 }
 0x416   : > { %4827 = vrsqrt.f32 %v1484_v42  ;;  %v1482_v44 = vmul.f32 0.015625, %v1479_v43  ;;  %v1444_v43 = vld [vmem:[%s6130_s2] sm:$0xff] }
 0x418   : > { %v1485_v45 = vadd.f32 1e-05, %v1482_v44  ;;  %v1445_v44 = vld [vmem:[%s6130_s2 + $0x8] sm:$0xff] }
 0x41a   : > { %4829 = vrsqrt.f32 %v1485_v45 }
 0x41f   : > { %v4826_v46 = vpop.eup %4825 }
 0x420   : > { %v1489_v47 = vmul.f32 %v4826_v46, %v1465_v11  ;;  %v4089_v46 = vld [vmem:[%s6130_s2 + $0x18] sm:$0xff] }
 0x422   : > { %v1498_v51 = vmul.f32 %v4092_v49, %v1489_v47 }
 0x423   : > { %v4828_v48 = vpop.eup %4827 }
 0x424   : > { %v1490_v50 = vmul.f32 %v4828_v48, %v1466_v15 }
 0x426   : > { %v1499_v52 = vmul.f32 %v4092_v49, %v1490_v50 }
 0x427   : > { %v4830_v53 = vpop.eup %4829 }
 0x428   : > { %v1509_v54 = vpack.c.bf16 %v1499_v52, %v1498_v51  ;;  %v1491_v55 = vmul.f32 %v4830_v53, %v1467_v21 }
 0x42a   : > { %4101 = vmatmul.mubr.msk.bf16.vlgmr.msra.gmra.mxu1 %vm1209_vm6, %v1509_v54  ;;  %v1500_v56 = vmul.f32 %v4092_v49, %v1491_v55 }
 0x42b   : > { %1599 = vmatprep.mubr.bf16.mxu1 %v5013_v0 }
 0x42c   : > { %v1510_v57 = vpack.c.bf16 %v1500_v56, %v1500_v56 }
 0x432   : > { %4102 = vmatmul.mubr.msk.bf16.gmra.mxu1 %vm1209_vm6, %v1510_v57 }
 0x4ea   : > { %v5405_v58 = vpop.f32.mrf.mxu1 }
 0x4eb   : > { %v1613_v5 = vsub.f32 0.0, %v5405_v58  ;;  %v1610_v51 = vmul.f32 %v5405_v58, %v1444_v43 }
 0x4ec   : > { %v1593_v33 = vpop.f32.mrf.mxu1 }
 0x4ee   : > { %v5407_v59 = vpop.f32.mrf.mxu1 }
 0x4ef   : > { %v1614_v2 = vsub.f32 0.0, %v5407_v59  ;;  %v1611_v52 = vmul.f32 %v5407_v59, %v1445_v44 }
 0x4f0   : > { %v1597_v60 = vpop.f32.mrf.mxu1 }
 0x4f1   : > { %v5409_v61 = vpack.c.bf16 %v1597_v60, %v1593_v33 }
 0x4f2   : > { %v1601_v62 = vpop.f32.mrf.mxu1 }
 0x4f3   : > { %v1615_v63 = vsub.f32 0.0, %v1601_v62  ;;  %1635 = vrot.lane.b32.xlu0 %v1601_v62, %s5022_s22  ;;  %v1612_v26 = vmul.f32 %v1601_v62, %v1446_v16  ;;  %v5480_v62 = vsel %vm1783_vm13, 65535, %v5013_v0 }
 0x4f4   : > { %v5412_v1 = vpop.f32.mrf.mxu1 }
 0x4f5   : > { %1623 = vrot.lane.b32.xlu1 %v1615_v63, %s6105_s30 }
 0x4f6   : > { %v1605_v3 = vpop.f32.mrf.mxu1 }
 0x4f7   : > { %1621 = vrot.lane.b32.xlu0 %v1614_v2, %s6105_s30 }
 0x4f8   : > { %v1606_v7 = vpop.f32.mrf.mxu1 }
 0x4f9   : > { %1619 = vrot.lane.b32.xlu1 %v1613_v5, %s6105_s30  ;;  %s6131_s30 = smov 112  }
 0x4fb   : > { %1633 = vrot.lane.b32.xlu0 %v5407_v59, %s5022_s22  ;;  %v5475_v59 = vpack.c.bf16 %v5412_v1, %v5412_v1 }
 0x4fd   : > { %1631 = vrot.lane.b32.xlu1 %v5405_v58, %s5022_s22  ;;  %v1787_v2 = vand.u32 %v5480_v62, %v5475_v59 }
 0x565   : > { %v1636_v28 = vpop.permute.xlu0 %1635 }
 0x567   : > { %v1624_v9 = vpop.permute.xlu1 %1623 }
 0x568   : > { %v1642_v10 = vsel %vm718_vm1, %v1624_v9, %v1636_v28 }
 0x569   : > { %v1646_v11 = vsel %vm1643_vm8, %v1642_v10, %v1624_v9  ;;  %v1622_v12 = vpop.permute.xlu0 %1621 }
 0x56a   : > { %v1650_v13 = vsel %vm1647_vm9, %v1646_v11, %v1636_v28 }
 0x56b   : > { %v1653_v14 = vsel %vm1209_vm6, %v1650_v13, %v1624_v9  ;;  %v1620_v15 = vpop.permute.xlu1 %1619 }
 0x56c   : > { %v1657_v19 = vsel %vm1654_vm10, %v1653_v14, %v1636_v28 }
 0x56d   : > { %v1661_v20 = vsel %vm1658_vm11, %v1657_v19, %v1624_v9  ;;  %v1634_v21 = vpop.permute.xlu0 %1633 }
 0x56e   : > { %v1665_v22 = vsel %vm1662_vm12, %v1661_v20, %v1636_v28  ;;  %v1641_v25 = vsel %vm718_vm1, %v1622_v12, %v1634_v21 }
 0x56f   : > { %v1668_v27 = vmul.f32 %v4091_v17, %v1665_v22  ;;  %v1645_v29 = vsel %vm1643_vm8, %v1641_v25, %v1622_v12  ;;  %v1632_v30 = vpop.permute.xlu1 %1631 }
 0x570   : > { %v1649_v31 = vsel %vm1647_vm9, %v1645_v29, %v1634_v21  ;;  %v1640_v32 = vsel %vm718_vm1, %v1620_v15, %v1632_v30 }
 0x571   : > { %v1652_v34 = vsel %vm1209_vm6, %v1649_v31, %v1622_v12  ;;  %v1644_v35 = vsel %vm1643_vm8, %v1640_v32, %v1620_v15  ;;  %v1671_v36 = vadd.f32 %v1668_v27, %v1612_v26 }
 0x572   : > { %v1656_v38 = vsel %vm1654_vm10, %v1652_v34, %v1634_v21  ;;  %v1648_v39 = vsel %vm1647_vm9, %v1644_v35, %v1632_v30 }
 0x573   : > { %v1660_v40 = vsel %vm1658_vm11, %v1656_v38, %v1622_v12  ;;  %v1651_v41 = vsel %vm1209_vm6, %v1648_v39, %v1620_v15  ;;  %v1673_v42 = vpack.c.bf16 %v1671_v36, %v1671_v36 }
 0x574   : > { %v1664_v45 = vsel %vm1662_vm12, %v1660_v40, %v1634_v21  ;;  %v1655_v47 = vsel %vm1654_vm10, %v1651_v41, %v1632_v30 }
 0x575   : > { %v1667_v48 = vmul.f32 %v4090_v37, %v1664_v45  ;;  %v1659_v49 = vsel %vm1658_vm11, %v1655_v47, %v1620_v15  ;;  %1678 = vrot.lane.b32.xlu1 %v1673_v42, %s6103_s24 }
 0x576   : > { %v1663_v50 = vsel %vm1662_vm12, %v1659_v49, %v1632_v30 }
 0x577   : > { %v1666_v53 = vmul.f32 %v4089_v46, %v1663_v50  ;;  %v1670_v54 = vadd.f32 %v1667_v48, %v1611_v52 }
 0x579   : > { %v1669_v55 = vadd.f32 %v1666_v53, %v1610_v51  ;;  %1843 = vrot.lane.b32.xlu1 %v1673_v42, %s6101_s26 }
 0x57b   : > { %v1672_v56 = vpack.c.bf16 %v1670_v54, %v1669_v55 }
 0x57d   : > { %1676 = vrot.lane.b32.xlu0 %v1672_v56, %s6103_s24  ;;  %4498 = vmatprep.mubr.msk.bf16.mxu0 %vm1643_vm8, %v1672_v56 }
 0x57e   : > { %1837 = vrot.lane.b32.xlu1 %v1672_v56, %s6099_s29 }
 0x581   : > { %1841 = vrot.lane.b32.xlu0 %v1672_v56, %s6101_s26 }
 0x585   : > { %1839 = vrot.lane.b32.xlu0 %v1673_v42, %s6099_s29 }
 0x5e7   : > { %v1679_v57 = vpop.permute.xlu1 %1678 }
 0x5e8   : > { %v1690_v58 = vsel %vm1643_vm8, %v1679_v57, 0  ;;  %4596 = vmatprep.subr.msk.bf16.mxu0 %vm1643_vm8, %v1679_v57 }
 0x5e9   : > { %4495 = vmatpush3.bf16.xpose.msra.mxu0 %v1690_v58 }
 0x5eb   : > { %v1844_v33 = vpop.permute.xlu1 %1843 }
 0x5ec   : > { %v1855_v60 = vsel %vm1643_vm8, %v1844_v33, 0  ;;  %4598 = vmatprep.subr.msk.bf16.mxu1 %vm1643_vm8, %v1844_v33 }
 0x5ed   : > { %4511 = vmatpush3.bf16.xpose.msra.mxu1 %v1855_v60 }
 0x5ef   : > { %v1677_v63 = vpop.permute.xlu0 %1676 }
 0x5f0   : > { %v1687_v3 = vsel %vm1643_vm8, %v1677_v63, 0  ;;  %v1838_v5 = vpop.permute.xlu1 %1837  ;;  %4597 = vmatprep.subr.msk.bf16.mxu0 %vm1643_vm8, %v1677_v63 }
 0x5f1   : > { %4514 = vmatprep.mubr.msk.bf16.mxu1 %vm1643_vm8, %v1838_v5  ;;  %4497 = vmatpush3.bf16.xpose.msra.mxu0 %v1687_v3 }
 0x5f2   : > { %4502 = vmatprep.subr.bf16.mxu0 %v1787_v2 }
 0x5f3   : > { %v1842_v1 = vpop.permute.xlu0 %1841 }
 0x5f4   : > { %v1852_v7 = vsel %vm1643_vm8, %v1842_v1, 0  ;;  %4599 = vmatprep.subr.msk.bf16.mxu1 %vm1643_vm8, %v1842_v1 }
 0x5f5   : > { %4513 = vmatpush3.bf16.xpose.msra.mxu1 %v1852_v7 }
 0x5f7   : > { %v1840_v28 = vpop.permute.xlu0 %1839 }
 0x5f8   : > { %4499 = vmatmul.mubr.msk.bf16.vlgmr.msra.gmra.mxu0 %vm1643_vm8, %v1673_v42 }
 0x5f9   : > { %4503 = vmatpush3.bf16.msra.mxu0 %v1787_v2 }
 0x5fa   : > { %4504 = vmatprep.subr.bf16.mxu0 %v5409_v61 }
 0x5fc   : > { %4515 = vmatmul.mubr.msk.bf16.vlgmr.msra.gmra.mxu1 %vm1643_vm8, %v1840_v28 }
 0x5fd   : > { %4505 = vmatpush3.bf16.msra.mxu0 %v5409_v61 }
 0x6b8   : > { %v4500_v9 = vpop.f32.mrf.mxu0 }
 0x6b9   : > { %v1748_v20 = vsel %vm1747_vm15, %v4500_v9, -inf }
 0x6ba   : > { %v1726_v10 = vpop.f32.mrf.mxu0 }
 0x6bb   : > { %v1741_v11 = vsel %vm1740_vm14, %v1726_v10, -inf }
 0x6bc   : > { %1742 = vmax.xlane.f32.xlu1 %v1741_v11  ;;  %v4501_v12 = vpop.f32.mrf.mxu0  ;;  %v4516_v13 = vpop.f32.mrf.mxu1 }
 0x6bd   : > { %v1911_v21 = vsel %vm1747_vm15, %v4516_v13, -inf }
 0x6be   : > { %v1729_v14 = vpop.f32.mrf.mxu0  ;;  %v1891_v15 = vpop.f32.mrf.mxu1 }
 0x6bf   : > { %v1744_v16 = vsel %vm1740_vm14, %v1729_v14, -inf  ;;  %v1905_v17 = vsel %vm1740_vm14, %v1891_v15, -inf }
 0x6c0   : > { %1745 = vmax.xlane.f32.xlu0 %v1744_v16  ;;  %1906 = vmax.xlane.f32.xlu1 %v1905_v17  ;;  %v4517_v19 = vpop.f32.mrf.mxu1 }
 0x6c2   : > { %v1894_v22 = vpop.f32.mrf.mxu1 }
 0x6c3   : > { %v1908_v25 = vsel %vm1740_vm14, %v1894_v22, -inf }
 0x6c4   : > { %1749 = vmax.xlane.f32.xlu0 %v1748_v20  ;;  %1912 = vmax.xlane.f32.xlu1 %v1911_v21 }
 0x6c8   : > { %1909 = vmax.xlane.f32.xlu0 %v1908_v25  ;;  %v4709_v25 = vld [vmem:[%s6082_s15 + $0x18] sm:$0xff]  }
 0x6c9   : > { %4526 = vmatprep.subr.bf16.mxu1 %v4709_v25 }
 0x6ca   : > { %4527 = vmatpush3.bf16.msra.mxu1 %v4709_v25  ;;  %v4731_v25 = vld [vmem:[%s6083_s16] ss:$16 sps:$4 sm:$0xff]  }
 0x745   : > { %v1743_v26 = vpop.xlane.xlu1 %1742 }
 0x746   : > { %v1751_v30 = vsub.f32 %v1726_v10, %v1743_v26  ;;  %v4710_v26 = vld [vmem:[%s6082_s15 + $0x10] sm:$0xff]  }
 0x747   : > { %4528 = vmatprep.subr.bf16.mxu1 %v4710_v26 }
 0x748   : > { %v1754_v37 = vmul.f32 1.442695, %v1751_v30  ;;  %4529 = vmatpush3.bf16.msra.mxu1 %v4710_v26  ;;  %v4733_v26 = vld [vmem:[%s6083_s16 + $0x4] ss:$16 sps:$4 sm:$0xff]  }
 0x749   : > { %v1746_v27 = vpop.xlane.xlu0 %1745  ;;  %v1907_v29 = vpop.xlane.xlu1 %1906 }
 0x74a   : > { %v1914_v31 = vsub.f32 %v1891_v15, %v1907_v29  ;;  %v1752_v40 = vsub.f32 %v1729_v14, %v1746_v27  ;;  %v4711_v27 = vld [vmem:[%s6082_s15 + $0x8] sm:$0xff]  }
 0x74b   : > { %4530 = vmatprep.subr.bf16.mxu1 %v4711_v27 }
 0x74c   : > { %v1917_v41 = vmul.f32 1.442695, %v1914_v31  ;;  %v1756_v45 = vmul.f32 1.442695, %v1752_v40  ;;  %4531 = vmatpush3.bf16.msra.mxu1 %v4711_v27  ;;  %v4734_v27 = vld [vmem:[%s6083_s16 + $0x8] ss:$16 sps:$4 sm:$0xff]  }
 0x74d   : > { %v1750_v32 = vpop.xlane.xlu0 %1749  ;;  %v1913_v34 = vpop.xlane.xlu1 %1912 }
 0x74e   : > { %v1753_v35 = vsub.f32 %v4500_v9, %v1750_v32  ;;  %v1916_v36 = vsub.f32 %v4516_v13, %v1913_v34  ;;  %v4712_v32 = vld [vmem:[%s6082_s15] sm:$0xff]  }
 0x74f   : > { %4532 = vmatprep.subr.bf16.mxu1 %v4712_v32 }
 0x750   : > { %v1758_v38 = vmul.f32 1.442695, %v1753_v35  ;;  %v1921_v39 = vmul.f32 1.442695, %v1916_v36  ;;  %4533 = vmatpush3.bf16.msra.mxu1 %v4712_v32 }
 0x751   : > { %v1910_v42 = vpop.xlane.xlu0 %1909 }
 0x752   : > { %4831 = vpow2.f32 %v1758_v38  ;;  %v1915_v43 = vsub.f32 %v1894_v22, %v1910_v42 }
 0x753   : > { %4833 = vpow2.f32 %v1921_v39 }
 0x754   : > { %4835 = vpow2.f32 %v1754_v37  ;;  %v1919_v44 = vmul.f32 1.442695, %v1915_v43 }
 0x755   : > { %4837 = vpow2.f32 %v1917_v41 }
 0x756   : > { %4839 = vpow2.f32 %v1919_v44 }
 0x757   : > { %4841 = vpow2.f32 %v1756_v45 }
 0x75f   : > { %v4832_v46 = vpop.eup %4831 }
 0x760   : > { %v4834_v47 = vpop.eup %4833  ;;  %v1766_v48 = vsel %vm1747_vm15, %v4832_v46, 0.0 }
 0x761   : > { %v4836_v49 = vpop.eup %4835  ;;  %v1929_v50 = vsel %vm1747_vm15, %v4834_v47, 0.0  ;;  %1767 = vadd.xlane.f32.xlu0 %v1766_v48 }
 0x762   : > { %v4838_v51 = vpop.eup %4837  ;;  %1930 = vadd.xlane.f32.xlu1 %v1929_v50  ;;  %v1760_v52 = vsel %vm1740_vm14, %v4836_v49, 0.0 }
 0x763   : > { %v4840_v53 = vpop.eup %4839  ;;  %v1923_v54 = vsel %vm1740_vm14, %v4838_v51, 0.0 }
 0x764   : > { %v4842_v55 = vpop.eup %4841  ;;  %v1926_v56 = vsel %vm1740_vm14, %v4840_v53, 0.0 }
 0x765   : > { %1761 = vadd.xlane.f32.xlu0 %v1760_v52  ;;  %v1763_v57 = vsel %vm1740_vm14, %v4842_v55, 0.0 }
 0x766   : > { %1924 = vadd.xlane.f32.xlu1 %v1923_v54 }
 0x769   : > { %1927 = vadd.xlane.f32.xlu0 %v1926_v56 }
 0x76a   : > { %1764 = vadd.xlane.f32.xlu1 %v1763_v57 }
 0x77b   : > { %1942 = vrot.lane.b32.xlu1 %v5409_v61, %s6099_s29 }
 0x77f   : > { %1944 = vrot.lane.b32.xlu0 %v5475_v59, %s6099_s29  ;;  %s6133_s29 = smov 32  }
 0x7ea   : > { %v1768_v58 = vpop.xlane.xlu0 %1767 }
 0x7eb   : > { %v1931_v33 = vpop.xlane.xlu1 %1930  ;;  %4843 = vrcp.f32 %v1768_v58 }
 0x7ee   : > { %v1762_v60 = vpop.xlane.xlu0 %1761 }
 0x7ef   : > { %v1925_v63 = vpop.xlane.xlu1 %1924  ;;  %4845 = vrcp.f32 %v1762_v60 }
 0x7f0   : > { %4847 = vrcp.f32 %v1925_v63 }
 0x7f2   : > { %v1928_v2 = vpop.xlane.xlu0 %1927 }
 0x7f3   : > { %v1765_v3 = vpop.xlane.xlu1 %1764  ;;  %4849 = vrcp.f32 %v1928_v2 }
 0x7f4   : > { %4851 = vrcp.f32 %v1765_v3 }
 0x7f5   : > { %4853 = vrcp.f32 %v1931_v33 }
 0x7f6   : > { %v1945_v5 = vpop.permute.xlu0 %1944 }
 0x7f7   : > { %v1954_v1 = vand.u32 %v1945_v5, %v5480_v62  ;;  %v1943_v20 = vpop.permute.xlu1 %1942 }
 0x7f8   : > { %v4844_v61 = vpop.eup %4843 }
 0x7f9   : > { %4518 = vmatprep.subr.bf16.mxu0 %v1954_v1  ;;  %v1774_v10 = vmul.f32 %v4844_v61, %v4832_v46 }
 0x7fb   : > { %v1776_v16 = vpack.c.bf16 %v1774_v10, %v1774_v10  ;;  %v4715_v10 = vld [vmem:[%s6083_s16 + $0x64] ss:$16 sps:$4 sm:$0xff]  }
 0x7fc   : > { %v4846_v7 = vpop.eup %4845 }
 0x7fd   : > { %v4848_v28 = vpop.eup %4847  ;;  %v1772_v11 = vmul.f32 %v4846_v7, %v4836_v49 }
 0x7fe   : > { %v1935_v15 = vmul.f32 %v4848_v28, %v4838_v51 }
 0x800   : > { %v4850_v59 = vpop.eup %4849 }
 0x801   : > { %v4852_v9 = vpop.eup %4851  ;;  %v1936_v13 = vmul.f32 %v4850_v59, %v4840_v53 }
 0x802   : > { %v1773_v12 = vmul.f32 %v4852_v9, %v4842_v55  ;;  %v4854_v17 = vpop.eup %4853 }
 0x803   : > { %v1938_v19 = vpack.c.bf16 %v1936_v13, %v1935_v15  ;;  %v1937_v21 = vmul.f32 %v4854_v17, %v4834_v47  ;;  %v4716_v13 = vld [vmem:[%s6083_s16 + $0x68] ss:$16 sps:$4 sm:$0xff]   ;;  %v4724_v15 = vld [vmem:[%s6083_s16 + $0x4c] ss:$16 sps:$4 sm:$0xff]  }
 0x804   : > { %v1775_v14 = vpack.c.bf16 %v1773_v12, %v1772_v11  ;;  %v4718_v11 = vld [vmem:[%s6083_s16 + $0x6c] ss:$16 sps:$4 sm:$0xff]   ;;  %v4713_v12 = vld [vmem:[%s6083_s16 + $0x60] ss:$16 sps:$4 sm:$0xff]   ;;  %v4722_v17 = vld [vmem:[%s6083_s16 + $0x48] ss:$16 sps:$4 sm:$0xff]  }
 0x805   : > { %v1939_v22 = vpack.c.bf16 %v1937_v21, %v1937_v21  ;;  %2345 = vmatprep.subr.bf16.mxu1 %v4718_v11  ;;  %v4725_v21 = vld [vmem:[%s6083_s16 + $0x20] ss:$16 sps:$4 sm:$0xff]  }
 0x806   : > { %4506 = vmatprep.mubr.msk.bf16.mxu0 %vm1740_vm14, %v1775_v14  ;;  %v4721_v14 = vld [vmem:[%s6083_s16 + $0x44] ss:$16 sps:$4 sm:$0xff]  }
 0x807   : > { %4507 = vmatmul.mubr.msk.bf16.vlgmr.msra.gmra.mxu0 %vm1740_vm14, %v1776_v16  ;;  %v4719_v16 = vld [vmem:[%s6083_s16 + $0x40] ss:$16 sps:$4 sm:$0xff]  }
 0x808   : > { %4519 = vmatpush3.bf16.msra.mxu0 %v1954_v1  ;;  %4522 = vmatprep.mubr.msk.bf16.mxu0 %vm1740_vm14, %v1938_v19  ;;  %v4727_v19 = vld [vmem:[%s6083_s16 + $0x24] ss:$16 sps:$4 sm:$0xff]  }
 0x809   : > { %4520 = vmatprep.subr.bf16.mxu0 %v1943_v20 }
 0x80c   : > { %4521 = vmatpush3.bf16.msra.mxu0 %v1943_v20  ;;  %v4730_v20 = vld [vmem:[%s6083_s16 + $0x2c] ss:$16 sps:$4 sm:$0xff]  }
 0x80d   : > { %2294 = vmatprep.subr.bf16.mxu0 %v4715_v10 }
 0x80f   : > { %4523 = vmatmul.mubr.msk.bf16.vlgmr.msra.gmra.mxu0 %vm1740_vm14, %v1939_v22  ;;  %v4728_v22 = vld [vmem:[%s6083_s16 + $0x28] ss:$16 sps:$4 sm:$0xff]  }
 0x810   : > { %2318 = vmatprep.mubr.bf16.mxu0 %v5013_v0  ;;  %2295 = vmatpush1.bf16.msra.mxu0 %v4713_v12 }
 0x811   : > { %2296 = vmatprep.subr.bf16.mxu0 %v4721_v14 }
 0x814   : > { %2297 = vmatpush1.bf16.msra.mxu0 %v4719_v16 }
 0x815   : > { %2298 = vmatprep.subr.bf16.mxu0 %v4727_v19 }
 0x818   : > { %2299 = vmatpush1.bf16.msra.mxu0 %v4725_v21 }
 0x819   : > { %2300 = vmatprep.subr.bf16.mxu0 %v4733_v26 }
 0x81c   : > { %2301 = vmatpush1.bf16.msra.mxu0 %v4731_v25 }
 0x8c7   : > { %v4508_v29 = vpop.f32.mrf.mxu0 }
 0x8c9   : > { %v1823_v30 = vpop.f32.mrf.mxu0 }
 0x8cb   : > { %v4509_v31 = vpop.f32.mrf.mxu0 }
 0x8cd   : > { %v1826_v34 = vpop.f32.mrf.mxu0 }
 0x8cf   : > { %v4524_v35 = vpop.f32.mrf.mxu0 }
 0x8d0   : > { %2011 = vrot.lane.b32.xlu0 %v4524_v35, %s6101_s26 }
 0x8d1   : > { %v1990_v36 = vpop.f32.mrf.mxu0 }
 0x8d3   : > { %v4525_v37 = vpop.f32.mrf.mxu0 }
 0x8d5   : > { %v1993_v38 = vpop.f32.mrf.mxu0 }
 0x8d6   : > { %v4662_v39 = vpack.i.bf16 %v1993_v38, %v1990_v36 }
 0x8d8   : > { %4663 = vrot.lane.b32.xlu1 %v4662_v39, %s6101_s26  ;;  %s3966_s26 = sshll.u32 %s696_s27, 4  ;;  %s6027_s26 = int_to_ptr.vmem [resolvable:$true] %s3966_s26 }
 0x942   : > { %v2012_v40 = vpop.permute.xlu0 %2011 }
 0x943   : > { %v2018_v44 = vsel %vm1643_vm8, %v4508_v29, %v2012_v40  ;;  %v4736_v29 = vld [vmem:[%s6083_s16 + $0xc] ss:$16 sps:$4 sm:$0xff]  }
 0x944   : > { %v2028_v48 = vpack.c.bf16 %v2018_v44, %v2018_v44 }
 0x94a   : > { %v4664_v41 = vpop.permute.xlu1 %4663 }
 0x94b   : > { %v4666_v42 = vunpack.i.h.bf16 %v4664_v41  ;;  %v4665_v43 = vunpack.i.l.bf16 %v4664_v41 }
 0x94d   : > { %v2017_v45 = vsel %vm1643_vm8, %v1826_v34, %v4666_v42  ;;  %v2016_v46 = vsel %vm1643_vm8, %v1823_v30, %v4665_v43  ;;  %v4118_v43 = vld [vmem:[%s6080_s13 + $0x1] ss:$0 sm:$0xff] }
 0x94e   : > { %v2027_v47 = vpack.c.bf16 %v2017_v45, %v2016_v46 }
 0x950   : > { %4534 = vmatprep.mubr.msk.bf16.mxu1 %vm1209_vm6, %v2027_v47 }
 0x951   : > { %4535 = vmatmul.mubr.msk.bf16.vlgmr.msra.gmra.mxu1 %vm1209_vm6, %v2028_v48 }
 0x952   : > { %2369 = vmatprep.mubr.bf16.mxu1 %v5013_v0  ;;  %2346 = vmatpush1.bf16.msra.mxu1 %v4716_v13 }
 0x953   : > { %2347 = vmatprep.subr.bf16.mxu1 %v4724_v15 }
 0x956   : > { %2348 = vmatpush1.bf16.msra.mxu1 %v4722_v17 }
 0x957   : > { %2349 = vmatprep.subr.bf16.mxu1 %v4730_v20 }
 0x95a   : > { %2350 = vmatpush1.bf16.msra.mxu1 %v4728_v22 }
 0x95b   : > { %2351 = vmatprep.subr.bf16.mxu1 %v4736_v29 }
 0x95e   : > { %2352 = vmatpush1.bf16.msra.mxu1 %v4734_v27 }
 0xa11   : > { %v4536_v49 = vpop.f32.mrf.mxu1 }
 0xa12   : > { %v5544_v56 = vadd.f32 %v4536_v49, %v5365_v8 }
 0xa13   : > { %v2093_v50 = vpop.f32.mrf.mxu1 }
 0xa14   : > { %v5536_v51 = vadd.f32 %v2093_v50, %v5357_v4  ;;  %v2118_v4 = vsel %vm1439_vm7, %v5544_v56, 0.0 }
 0xa15   : > { %v4537_v52 = vpop.f32.mrf.mxu1 }
 0xa16   : > { %v2112_v53 = vsel %vm1209_vm6, %v5536_v51, 0.0 }
 0xa17   : > { %2113 = vadd.xlane.f32.xlu1 %v2112_v53  ;;  %v2096_v54 = vpop.f32.mrf.mxu1  ;;  %v4737_v53 = vld [vmem:[%s6085_s18 + $0x78] sm:$0xff]  }
 0xa18   : > { %v5541_v55 = vadd.f32 %v2096_v54, %v5361_v6  ;;  %v4738_v54 = vld [vmem:[%s6085_s18 + $0x38] sm:$0xff]   ;;  %4369 = vmatprep.subr.bf16.mxu0 %v4737_v53 }
 0xa1a   : > { %v2115_v57 = vsel %vm1209_vm6, %v5541_v55, 0.0 }
 0xa1b   : > { %2116 = vadd.xlane.f32.xlu0 %v2115_v57  ;;  %v4739_v57 = vld [vmem:[%s6085_s18 + $0x70] sm:$0xff]  }
 0xa1f   : > { %2119 = vadd.xlane.f32.xlu0 %v2118_v4  ;;  %v4740_v4 = vld [vmem:[%s6085_s18 + $0x30] sm:$0xff]  }
 0xaa0   : > { %v2114_v58 = vpop.xlane.xlu1 %2113 }
 0xaa1   : > { %v2121_v33 = vmul.f32 0.015625, %v2114_v58  ;;  %v4741_v58 = vld [vmem:[%s6085_s18 + $0x68] sm:$0xff]  }
 0xaa3   : > { %v2124_v60 = vsub.f32 %v5536_v51, %v2121_v33  ;;  %v4742_v33 = vld [vmem:[%s6085_s18 + $0x28] sm:$0xff]  }
 0xaa4   : > { %v2117_v63 = vpop.xlane.xlu0 %2116 }
 0xaa5   : > { %v2122_v2 = vmul.f32 0.015625, %v2117_v63  ;;  %v2127_v3 = vmul.f32 %v2124_v60, %v2124_v60  ;;  %v4744_v63 = vld [vmem:[%s6085_s18 + $0x20] sm:$0xff]  }
 0xaa7   : > { %v2125_v6 = vsub.f32 %v5541_v55, %v2122_v2  ;;  %v2130_v8 = vsel %vm1209_vm6, %v2127_v3, 0.0  ;;  %v4745_v2 = vld [vmem:[%s6085_s18 + $0x58] sm:$0xff]  }
 0xaa8   : > { %2131 = vadd.xlane.f32.xlu1 %v2130_v8  ;;  %v2120_v5 = vpop.xlane.xlu0 %2119  ;;  %v4746_v3 = vld [vmem:[%s6085_s18 + $0x18] sm:$0xff]   ;;  %v4748_v8 = vld [vmem:[%s6085_s18 + $0x10] sm:$0xff]  }
 0xaa9   : > { %v2123_v1 = vmul.f32 0.015625, %v2120_v5  ;;  %v2128_v61 = vmul.f32 %v2125_v6, %v2125_v6  ;;  %v4749_v5 = vld [vmem:[%s6085_s18 + $0x48] sm:$0xff]  }
 0xaab   : > { %v2126_v7 = vsub.f32 %v5544_v56, %v2123_v1  ;;  %v2133_v28 = vsel %vm1209_vm6, %v2128_v61, 0.0  ;;  %v4750_v1 = vld [vmem:[%s6085_s18 + $0x8] sm:$0xff]   ;;  %v4751_v61 = vld [vmem:[%s6085_s18 + $0x40] sm:$0xff]  }
 0xaac   : > { %2134 = vadd.xlane.f32.xlu0 %v2133_v28  ;;  %v2190_v28 = vsub.s32 2, %v5263_v23 }
 0xaad   : > { %v2129_v59 = vmul.f32 %v2126_v7, %v2126_v7 }
 0xaaf   : > { %v2136_v9 = vsel %vm1439_vm7, %v2129_v59, 0.0  ;;  %v2178_v59 = vld [vmem:[%s6084_s17] sm:$0xf] }
 0xab0   : > { %2137 = vadd.xlane.f32.xlu1 %v2136_v9  ;;  %v2194_v9 = vsub.s32 3, %v5263_v23  ;;  %v2191_v10 = vrot.slane %v2178_v59, %v2190_v28 }
 0xab2   : > { %v2195_v11 = vrot.slane %v2178_v59, %v2194_v9 }
 0xb31   : > { %v2132_v30 = vpop.xlane.xlu1 %2131 }
 0xb32   : > { %v2139_v31 = vmul.f32 0.015625, %v2132_v30 }
 0xb34   : > { %v2142_v32 = vadd.f32 1e-05, %v2139_v31 }
 0xb35   : > { %v2135_v34 = vpop.xlane.xlu0 %2134 }
 0xb36   : > { %4855 = vrsqrt.f32 %v2142_v32  ;;  %v2140_v35 = vmul.f32 0.015625, %v2135_v34 }
 0xb38   : > { %v2143_v36 = vadd.f32 1e-05, %v2140_v35 }
 0xb39   : > { %v2138_v37 = vpop.xlane.xlu1 %2137 }
 0xb3a   : > { %4857 = vrsqrt.f32 %v2143_v36  ;;  %v2141_v38 = vmul.f32 0.015625, %v2138_v37 }
 0xb3c   : > { %v2144_v39 = vadd.f32 1e-05, %v2141_v38 }
 0xb3e   : > { %4859 = vrsqrt.f32 %v2144_v39 }
 0xb43   : > { %v4856_v40 = vpop.eup %4855 }
 0xb44   : > { %v2148_v41 = vmul.f32 %v4856_v40, %v2124_v60  ;;  %v4743_v60 = vld [vmem:[%s6085_s18 + $0x60] sm:$0xff]  }
 0xb46   : > { %v2157_v45 = vmul.f32 %v4118_v43, %v2148_v41 }
 0xb47   : > { %v4858_v42 = vpop.eup %4857 }
 0xb48   : > { %v2149_v44 = vmul.f32 %v4858_v42, %v2125_v6  ;;  %v4747_v6 = vld [vmem:[%s6085_s18 + $0x50] sm:$0xff]  }
 0xb4a   : > { %v2158_v46 = vmul.f32 %v4118_v43, %v2149_v44 }
 0xb4b   : > { %v4860_v47 = vpop.eup %4859 }
 0xb4c   : > { %v2176_v48 = vpack.c.bf16 %v2158_v46, %v2157_v45  ;;  %v2150_v49 = vmul.f32 %v4860_v47, %v2126_v7  ;;  %v4752_v7 = vld [vmem:[%s6085_s18] sm:$0xff]  }
 0xb4e   : > { %4135 = vmatmul.mubr.msk.bf16.vlgmr.msra.gmra.mxu0 %vm1209_vm6, %v2176_v48  ;;  %4137 = vmatmul.mubr.msk.bf16.vlgmr.msra.gmra.mxu1 %vm1209_vm6, %v2176_v48  ;;  %v2159_v50 = vmul.f32 %v4118_v43, %v2150_v49 }
 0xb4f   : > { %2328 = vmatprep.mubr.bf16.mxu0 %v5013_v0  ;;  %2379 = vmatprep.mubr.bf16.mxu1 %v5013_v0 }
 0xb50   : > { %v2177_v52 = vpack.c.bf16 %v2159_v50, %v2159_v50  ;;  %4370 = vmatpush3.bf16.msra.mxu0 %v4738_v54 }
 0xb51   : > { %4371 = vmatprep.subr.bf16.mxu0 %v4739_v57 }
 0xb54   : > { %4372 = vmatpush3.bf16.msra.mxu0 %v4740_v4 }
 0xb55   : > { %4373 = vmatprep.subr.bf16.mxu0 %v4741_v58 }
 0xb56   : > { %4136 = vmatmul.mubr.msk.bf16.gmra.mxu0 %vm1209_vm6, %v2177_v52  ;;  %4138 = vmatmul.mubr.msk.bf16.gmra.mxu1 %vm1209_vm6, %v2177_v52 }
 0xb57   : > { %2768 = vmatprep.mubr.bf16.mxu1 %v5013_v0 }
 0xb58   : > { %4374 = vmatpush3.bf16.msra.mxu0 %v4742_v33  ;;  %v2186_v33 = vsub.s32 1, %v5263_v23 }
 0xb59   : > { %4375 = vmatprep.subr.bf16.mxu0 %v4743_v60 }
 0xb5c   : > { %4376 = vmatpush3.bf16.msra.mxu0 %v4744_v63 }
 0xb5d   : > { %4377 = vmatprep.subr.bf16.mxu0 %v4745_v2  ;;  %v2187_v2 = vrot.slane %v2178_v59, %v2186_v33 }
 0xb60   : > { %4378 = vmatpush3.bf16.msra.mxu0 %v4746_v3 }
 0xb61   : > { %4379 = vmatprep.subr.bf16.mxu0 %v4747_v6  ;;  %v2183_v6 = vrot.slane %v2178_v59, %v5266_v24 }
 0xb64   : > { %4380 = vmatpush3.bf16.msra.mxu0 %v4748_v8 }
 0xb65   : > { %4381 = vmatprep.subr.bf16.mxu0 %v4749_v5 }
 0xb68   : > { %4382 = vmatpush3.bf16.msra.mxu0 %v4750_v1 }
 0xb69   : > { %4383 = vmatprep.subr.bf16.mxu0 %v4751_v61 }
 0xb6c   : > { %4384 = vmatpush3.bf16.msra.mxu0 %v4752_v7 }
 0xc0e   : > { %v5671_v12 = vpop.f32.mrf.mxu0  ;;  %v2371_v13 = vpop.f32.mrf.mxu1 }
 0xc0f   : > { %v2372_v14 = vadd.f32 %v2371_v13, %v2191_v10 }
 0xc10   : > { %v2322_v15 = vpop.f32.mrf.mxu0  ;;  %v2373_v16 = vpop.f32.mrf.mxu1 }
 0xc11   : > { %v4139_v17 = vmul.f32 -1.442695, %v2372_v14  ;;  %v2374_v19 = vadd.f32 %v2373_v16, %v2195_v11  ;;  %v2321_v16 = vadd.f32 %v5671_v12, %v2183_v6 }
 0xc12   : > { %v2324_v20 = vpop.f32.mrf.mxu0  ;;  %v2375_v21 = vpop.f32.mrf.mxu1 }
 0xc13   : > { %4861 = vpow2.f32 %v4139_v17  ;;  %v4140_v22 = vmul.f32 -1.442695, %v2374_v19  ;;  %v2376_v25 = vadd.f32 %v2375_v21, %v2191_v10  ;;  %v2325_v7 = vadd.f32 %v2324_v20, %v2183_v6 }
 0xc14   : > { %v2326_v26 = vpop.f32.mrf.mxu0  ;;  %v2377_v27 = vpop.f32.mrf.mxu1 }
 0xc15   : > { %4863 = vpow2.f32 %v4140_v22  ;;  %v4141_v29 = vmul.f32 -1.442695, %v2376_v25  ;;  %v2378_v30 = vadd.f32 %v2377_v27, %v2195_v11 }
 0xc16   : > { %v5673_v31 = vpop.f32.mrf.mxu0  ;;  %v2381_v32 = vpop.f32.mrf.mxu1 }
 0xc17   : > { %4865 = vpow2.f32 %v4141_v29  ;;  %v4142_v34 = vmul.f32 -1.442695, %v2378_v30  ;;  %v2382_v35 = vadd.f32 %v2381_v32, %v2191_v10  ;;  %v2323_v10 = vadd.f32 %v2322_v15, %v2187_v2 }
 0xc18   : > { %v2332_v36 = vpop.f32.mrf.mxu0  ;;  %v2383_v37 = vpop.f32.mrf.mxu1 }
 0xc19   : > { %4867 = vpow2.f32 %v4142_v34  ;;  %v4143_v38 = vmul.f32 -1.442695, %v2382_v35  ;;  %v2384_v39 = vadd.f32 %v2383_v37, %v2195_v11  ;;  %v2327_v11 = vadd.f32 %v2326_v26, %v2187_v2 }
 0xc1a   : > { %v2334_v40 = vpop.f32.mrf.mxu0  ;;  %v2385_v41 = vpop.f32.mrf.mxu1  ;;  %v2333_v34 = vadd.f32 %v2332_v36, %v2187_v2  ;;  %v4161_v36 = vld [vmem:[%s6086_s19] ss:$0 sm:$0xff] }
 0xc1b   : > { %4869 = vpow2.f32 %v4143_v38  ;;  %v4144_v42 = vmul.f32 -1.442695, %v2384_v39 }
 0xc1c   : > { %v2335_v43 = vpop.f32.mrf.mxu0  ;;  %v2386_v44 = vpop.f32.mrf.mxu1 }
 0xc1d   : > { %4871 = vpow2.f32 %v4144_v42 }
 0xc20   : > { %v4862_v45 = vpop.eup %4861 }
 0xc21   : > { %v2406_v47 = vadd.f32 1.0, %v4862_v45 }
 0xc22   : > { %v4864_v46 = vpop.eup %4863 }
 0xc23   : > { %v2407_v48 = vadd.f32 1.0, %v4864_v46 }
 0xc24   : > { %v4866_v49 = vpop.eup %4865 }
 0xc25   : > { %4873 = vrcp.f32 %v2407_v48  ;;  %v2408_v50 = vadd.f32 1.0, %v4866_v49 }
 0xc26   : > { %v4868_v52 = vpop.eup %4867  ;;  %4875 = vrcp.f32 %v2406_v47 }
 0xc27   : > { %4877 = vrcp.f32 %v2408_v50  ;;  %v2409_v53 = vadd.f32 1.0, %v4868_v52 }
 0xc28   : > { %v4870_v54 = vpop.eup %4869 }
 0xc29   : > { %4879 = vrcp.f32 %v2409_v53  ;;  %v2410_v57 = vadd.f32 1.0, %v4870_v54 }
 0xc2a   : > { %v4872_v4 = vpop.eup %4871 }
 0xc2b   : > { %v2411_v58 = vadd.f32 1.0, %v4872_v4  ;;  %4881 = vrcp.f32 %v2410_v57 }
 0xc2d   : > { %4883 = vrcp.f32 %v2411_v58 }
 0xc32   : > { %v4874_v60 = vpop.eup %4873 }
 0xc33   : > { %v4876_v63 = vpop.eup %4875  ;;  %v2425_v8 = vmul.f32 %v4874_v60, %v2374_v19 }
 0xc34   : > { %v4878_v3 = vpop.eup %4877  ;;  %v2424_v61 = vmul.f32 %v4876_v63, %v2372_v14  ;;  %v2331_v14 = vadd.f32 %v5673_v31, %v2183_v6 }
 0xc35   : > { %v2426_v5 = vmul.f32 %v4878_v3, %v2376_v25  ;;  %v2431_v22 = vmul.f32 %v2425_v8, %v2323_v10  ;;  %v4755_v10 = vld [vmem:[%s6081_s14 + $0x74] ss:$8 sps:$4 sm:$0xff]  }
 0xc36   : > { %v4880_v1 = vpop.eup %4879  ;;  %v2430_v32 = vmul.f32 %v2424_v61, %v2321_v16  ;;  %2744 = vmatprep.subr.bf16.mxu1 %v4755_v10  ;;  %v4756_v16 = vld [vmem:[%s6081_s14 + $0x60] ss:$8 sps:$4 sm:$0xff]  }
 0xc37   : > { %v2427_v13 = vmul.f32 %v4880_v1, %v2378_v30  ;;  %v2432_v17 = vmul.f32 %v2426_v5, %v2325_v7 }
 0xc38   : > { %v4882_v21 = vpop.eup %4881 }
 0xc39   : > { %v2433_v27 = vmul.f32 %v2427_v13, %v2327_v11  ;;  %v2468_v59 = vpack.c.bf16 %v2432_v17, %v2430_v32  ;;  %v2428_v19 = vmul.f32 %v4882_v21, %v2382_v35  ;;  %v4753_v11 = vld [vmem:[%s6081_s14 + $0x70] ss:$8 sps:$4 sm:$0xff]   ;;  %v4758_v13 = vld [vmem:[%s6081_s14 + $0x64] ss:$8 sps:$4 sm:$0xff]   ;;  %v4761_v17 = vld [vmem:[%s6081_s14 + $0x54] ss:$8 sps:$4 sm:$0xff]  }
 0xc3a   : > { %v4884_v29 = vpop.eup %4883  ;;  %2745 = vmatpush1.bf16.msra.mxu1 %v4753_v11  ;;  %v4759_v21 = vld [vmem:[%s6081_s14 + $0x50] ss:$8 sps:$4 sm:$0xff]  }
 0xc3b   : > { %v2429_v37 = vmul.f32 %v4884_v29, %v2384_v39  ;;  %v2469_v38 = vpack.c.bf16 %v2433_v27, %v2431_v22  ;;  %v2434_v20 = vmul.f32 %v2428_v19, %v2331_v14  ;;  %2746 = vmatprep.subr.bf16.mxu1 %v4758_v13  ;;  %v4764_v22 = vld [vmem:[%s6081_s14 + $0x44] ss:$8 sps:$4 sm:$0xff]   ;;  %v4762_v27 = vld [vmem:[%s6081_s14 + $0x40] ss:$8 sps:$4 sm:$0xff]  }
 0xc3d   : > { %2600 = vmatprep.mubr.bf16.mxu0 %v2469_v38  ;;  %v2435_v25 = vmul.f32 %v2429_v37, %v2333_v34  ;;  %v2470_v12 = vpack.c.bf16 %v2434_v20, %v2434_v20 }
 0xc3e   : > { %2601 = vmatmul.mubr.bf16.vlgmr.msra.gmra.mxu0 %v2468_v59  ;;  %2747 = vmatpush1.bf16.msra.mxu1 %v4756_v16  ;;  %v4945_v16 = vld [vmem:[%s6130_s2 + $0x10] sm:$0x1] }
 0xc3f   : > { %v2471_v15 = vpack.c.bf16 %v2435_v25, %v2435_v25  ;;  %2748 = vmatprep.subr.bf16.mxu1 %v4761_v17 }
 0xc41   : > { %2608 = vmatprep.mubr.bf16.mxu0 %v2471_v15 }
 0xc42   : > { %2749 = vmatpush1.bf16.msra.mxu1 %v4759_v21  ;;  %v4946_v21 = vld [vmem:[%s6130_s2 + $0x28] sm:$0x1] }
 0xc43   : > { %2750 = vmatprep.subr.bf16.mxu1 %v4764_v22 }
 0xc46   : > { %2609 = vmatmul.mubr.bf16.gmra.mxu0 %v2470_v12  ;;  %2751 = vmatpush1.bf16.msra.mxu1 %v4762_v27 }
 0xcfe   : > { %v4385_v26 = vpop.f32.mrf.mxu0 }
 0xd00   : > { %v4386_v30 = vpop.f32.mrf.mxu0 }
 0xd01   : > { %v4387_v40 = vadd.f32 %v4386_v30, %v4385_v26  ;;  %v4163_v26 = vld [vmem:[%s6080_s13 + $0x2] ss:$0 sm:$0xff] }
 0xd02   : > { %v4388_v39 = vpop.f32.mrf.mxu0 }
 0xd03   : > { %v2616_v35 = vadd.f32 %v4387_v40, %v5536_v51 }
 0xd04   : > { %v4389_v41 = vpop.f32.mrf.mxu0 }
 0xd05   : > { %v5685_v42 = vadd.f32 %v4161_v36, %v2616_v35  ;;  %v4390_v31 = vadd.f32 %v4389_v41, %v4388_v39 }
 0xd06   : > { %v4391_v43 = vpop.f32.mrf.mxu0 }
 0xd07   : > { %v2617_v44 = vadd.f32 %v4390_v31, %v5541_v55  ;;  %v2631_v45 = vsel %vm1209_vm6, %v5685_v42, 0.0 }
 0xd08   : > { %v4392_v46 = vpop.f32.mrf.mxu0  ;;  %2632 = vadd.xlane.f32.xlu0 %v2631_v45 }
 0xd09   : > { %v5690_v47 = vadd.f32 %v4161_v36, %v2617_v44  ;;  %v4393_v48 = vadd.f32 %v4392_v46, %v4391_v43 }
 0xd0a   : > { %v4394_v49 = vpop.f32.mrf.mxu0 }
 0xd0b   : > { %v2618_v50 = vadd.f32 %v4393_v48, %v5544_v56  ;;  %v2634_v51 = vsel %vm1209_vm6, %v5690_v47, 0.0 }
 0xd0c   : > { %v4395_v52 = vpop.f32.mrf.mxu0  ;;  %2635 = vadd.xlane.f32.xlu1 %v2634_v51 }
 0xd0d   : > { %v5695_v53 = vadd.f32 %v4161_v36, %v2618_v50 }
 0xd0f   : > { %v2637_v55 = vsel %vm1439_vm7, %v5695_v53, 0.0 }
 0xd10   : > { %2638 = vadd.xlane.f32.xlu0 %v2637_v55 }
 0xd91   : > { %v2633_v54 = vpop.xlane.xlu0 %2632 }
 0xd92   : > { %v2640_v57 = vmul.f32 0.015625, %v2633_v54 }
 0xd94   : > { %v2643_v4 = vsub.f32 %v5685_v42, %v2640_v57 }
 0xd95   : > { %v2636_v58 = vpop.xlane.xlu1 %2635 }
 0xd96   : > { %v2641_v60 = vmul.f32 0.015625, %v2636_v58  ;;  %v2646_v63 = vmul.f32 %v2643_v4, %v2643_v4 }
 0xd98   : > { %v2644_v56 = vsub.f32 %v5690_v47, %v2641_v60  ;;  %v2649_v2 = vsel %vm1209_vm6, %v2646_v63, 0.0 }
 0xd99   : > { %2650 = vadd.xlane.f32.xlu1 %v2649_v2  ;;  %v2639_v3 = vpop.xlane.xlu0 %2638 }
 0xd9a   : > { %v2642_v6 = vmul.f32 0.015625, %v2639_v3  ;;  %v2647_v8 = vmul.f32 %v2644_v56, %v2644_v56 }
 0xd9c   : > { %v2645_v5 = vsub.f32 %v5695_v53, %v2642_v6  ;;  %v2652_v1 = vsel %vm1209_vm6, %v2647_v8, 0.0 }
 0xd9d   : > { %2653 = vadd.xlane.f32.xlu0 %v2652_v1 }
 0xd9e   : > { %v2648_v61 = vmul.f32 %v2645_v5, %v2645_v5 }
 0xda0   : > { %v2655_v7 = vsel %vm1439_vm7, %v2648_v61, 0.0 }
 0xda1   : > { %2656 = vadd.xlane.f32.xlu1 %v2655_v7 }
 0xe22   : > { %v2651_v29 = vpop.xlane.xlu1 %2650 }
 0xe23   : > { %v2658_v32 = vmul.f32 0.015625, %v2651_v29 }
 0xe25   : > { %v2661_v34 = vadd.f32 1e-05, %v2658_v32 }
 0xe26   : > { %v2654_v37 = vpop.xlane.xlu0 %2653 }
 0xe27   : > { %4885 = vrsqrt.f32 %v2661_v34  ;;  %v2659_v38 = vmul.f32 0.015625, %v2654_v37 }
 0xe29   : > { %v2662_v59 = vadd.f32 1e-05, %v2659_v38 }
 0xe2a   : > { %v2657_v19 = vpop.xlane.xlu1 %2656 }
 0xe2b   : > { %4887 = vrsqrt.f32 %v2662_v59  ;;  %v2660_v25 = vmul.f32 0.015625, %v2657_v19 }
 0xe2d   : > { %v2663_v14 = vadd.f32 1e-05, %v2660_v25 }
 0xe2f   : > { %4889 = vrsqrt.f32 %v2663_v14 }
 0xe34   : > { %v4886_v15 = vpop.eup %4885 }
 0xe35   : > { %v2667_v20 = vmul.f32 %v4886_v15, %v2643_v4 }
 0xe37   : > { %v2676_v40 = vmul.f32 %v4163_v26, %v2667_v20 }
 0xe38   : > { %v4888_v12 = vpop.eup %4887 }
 0xe39   : > { %v2668_v30 = vmul.f32 %v4888_v12, %v2644_v56 }
 0xe3b   : > { %v2677_v36 = vmul.f32 %v4163_v26, %v2668_v30  ;;  %v4947_v30 = vld [vmem:[%s6130_s2 + $0x18] sm:$0xff] }
 0xe3c   : > { %v4890_v39 = vpop.eup %4889 }
 0xe3d   : > { %v2688_v35 = vpack.c.bf16 %v2677_v36, %v2676_v40  ;;  %v2669_v41 = vmul.f32 %v4890_v39, %v2645_v5 }
 0xe3f   : > { %4180 = vmatmul.mubr.msk.bf16.vlgmr.msra.gmra.mxu1 %vm1209_vm6, %v2688_v35  ;;  %v2678_v31 = vmul.f32 %v4163_v26, %v2669_v41  ;;  %v4948_v35 = vld [vmem:[%s6130_s2] sm:$0xff] }
 0xe40   : > { %2778 = vmatprep.mubr.bf16.mxu1 %v5013_v0 }
 0xe41   : > { %v2689_v43 = vpack.c.bf16 %v2678_v31, %v2678_v31  ;;  %v4949_v31 = vld [vmem:[%s6130_s2 + $0x8] sm:$0xff] }
 0xe47   : > { %4181 = vmatmul.mubr.msk.bf16.gmra.mxu1 %vm1209_vm6, %v2689_v43 }
 0xeff   : > { %v2770_v44 = vpop.f32.mrf.mxu1 }
 0xf00   : > { %v2792_v52 = vsub.f32 0.0, %v2770_v44  ;;  %v2789_v41 = vmul.f32 %v4948_v35, %v2770_v44 }
 0xf01   : > { %v2772_v45 = vpop.f32.mrf.mxu1 }
 0xf03   : > { %v2774_v46 = vpop.f32.mrf.mxu1 }
 0xf04   : > { %v2793_v57 = vsub.f32 0.0, %v2774_v46  ;;  %v2790_v43 = vmul.f32 %v4949_v31, %v2774_v46 }
 0xf05   : > { %v2776_v48 = vpop.f32.mrf.mxu1 }
 0xf06   : > { %v5742_v60 = vpack.c.bf16 %v2776_v48, %v2772_v45  ;;  %v4950_v45 = vld [vmem:[%s6130_s2 + $0x20] sm:$0xff] }
 0xf07   : > { %v2780_v49 = vpop.f32.mrf.mxu1 }
 0xf08   : > { %v2794_v50 = vsub.f32 0.0, %v2780_v49  ;;  %2814 = vrot.lane.b32.xlu1 %v2780_v49, %s5022_s22  ;;  %v2791_v17 = vmul.f32 %v4945_v16, %v2780_v49 }
 0xf09   : > { %v2782_v51 = vpop.f32.mrf.mxu1 }
 0xf0a   : > { %v5736_v55 = vpack.c.bf16 %v2782_v51, %v2782_v51  ;;  %2802 = vrot.lane.b32.xlu0 %v2794_v50, %s6131_s30 }
 0xf0b   : > { %v2784_v54 = vpop.f32.mrf.mxu1 }
 0xf0c   : > { %v2956_v4 = vand.u32 %v5736_v55, %v5480_v62  ;;  %2798 = vrot.lane.b32.xlu1 %v2792_v52, %s6131_s30 }
 0xf0d   : > { %v2785_v58 = vpop.f32.mrf.mxu1 }
 0xf0e   : > { %2800 = vrot.lane.b32.xlu0 %v2793_v57, %s6131_s30  ;;  %4546 = vmatprep.subr.bf16.mxu0 %v2956_v4 }
 0xf0f   : > { %4547 = vmatpush3.bf16.msra.mxu0 %v2956_v4 }
 0xf10   : > { %2810 = vrot.lane.b32.xlu1 %v2770_v44, %s5022_s22  ;;  %4548 = vmatprep.subr.bf16.mxu0 %v5742_v60 }
 0xf12   : > { %2812 = vrot.lane.b32.xlu0 %v2774_v46, %s5022_s22  ;;  %s6135_s22 = sld [smem:[#allocation19_spill]] }
 0xf13   : > { %4549 = vmatpush3.bf16.msra.mxu0 %v5742_v60 }
 0xf7a   : > { %v2815_v63 = vpop.permute.xlu1 %2814 }
 0xf7c   : > { %v2803_v56 = vpop.permute.xlu0 %2802 }
 0xf7d   : > { %v2821_v2 = vsel %vm718_vm1, %v2803_v56, %v2815_v63 }
 0xf7e   : > { %v2824_v3 = vsel %vm1643_vm8, %v2821_v2, %v2803_v56  ;;  %v2799_v6 = vpop.permute.xlu1 %2798 }
 0xf7f   : > { %v2827_v8 = vsel %vm1647_vm9, %v2824_v3, %v2815_v63 }
 0xf80   : > { %v2830_v5 = vsel %vm1209_vm6, %v2827_v8, %v2803_v56  ;;  %v2801_v1 = vpop.permute.xlu0 %2800 }
 0xf81   : > { %v2833_v61 = vsel %vm1654_vm10, %v2830_v5, %v2815_v63 }
 0xf82   : > { %v2836_v7 = vsel %vm1658_vm11, %v2833_v61, %v2803_v56  ;;  %v2811_v10 = vpop.permute.xlu1 %2810 }
 0xf83   : > { %v2839_v11 = vsel %vm1662_vm12, %v2836_v7, %v2815_v63  ;;  %v2819_v13 = vsel %vm718_vm1, %v2799_v6, %v2811_v10 }
 0xf84   : > { %v2842_v22 = vmul.f32 %v4946_v21, %v2839_v11  ;;  %v2822_v27 = vsel %vm1643_vm8, %v2819_v13, %v2799_v6  ;;  %v2813_v29 = vpop.permute.xlu0 %2812 }
 0xf85   : > { %v2825_v32 = vsel %vm1647_vm9, %v2822_v27, %v2811_v10  ;;  %v2820_v34 = vsel %vm718_vm1, %v2801_v1, %v2813_v29 }
 0xf86   : > { %v2828_v37 = vsel %vm1209_vm6, %v2825_v32, %v2799_v6  ;;  %v2823_v38 = vsel %vm1643_vm8, %v2820_v34, %v2801_v1  ;;  %v2845_v59 = vadd.f32 %v2842_v22, %v2791_v17 }
 0xf87   : > { %v2831_v19 = vsel %vm1654_vm10, %v2828_v37, %v2811_v10  ;;  %v2826_v25 = vsel %vm1647_vm9, %v2823_v38, %v2813_v29 }
 0xf88   : > { %v2834_v14 = vsel %vm1658_vm11, %v2831_v19, %v2799_v6  ;;  %v2829_v15 = vsel %vm1209_vm6, %v2826_v25, %v2801_v1  ;;  %v2847_v20 = vpack.c.bf16 %v2845_v59, %v2845_v59 }
 0xf89   : > { %v2837_v12 = vsel %vm1662_vm12, %v2834_v14, %v2811_v10  ;;  %v2832_v26 = vsel %vm1654_vm10, %v2829_v15, %v2813_v29 }
 0xf8a   : > { %v2840_v40 = vmul.f32 %v4947_v30, %v2837_v12  ;;  %v2835_v36 = vsel %vm1658_vm11, %v2832_v26, %v2801_v1  ;;  %2852 = vrot.lane.b32.xlu1 %v2847_v20, %s6132_s5 }
 0xf8b   : > { %v2838_v39 = vsel %vm1662_vm12, %v2835_v36, %v2813_v29 }
 0xf8c   : > { %v2841_v48 = vmul.f32 %v4950_v45, %v2838_v39  ;;  %v2843_v49 = vadd.f32 %v2840_v40, %v2789_v41 }
 0xf8e   : > { %v2844_v50 = vadd.f32 %v2841_v48, %v2790_v43  ;;  %3012 = vrot.lane.b32.xlu1 %v2847_v20, %s6133_s29 }
 0xf90   : > { %v2846_v51 = vpack.c.bf16 %v2844_v50, %v2843_v49 }
 0xf92   : > { %2850 = vrot.lane.b32.xlu0 %v2846_v51, %s6132_s5  ;;  %4542 = vmatprep.mubr.msk.bf16.mxu1 %vm1643_vm8, %v2846_v51  ;;  %s4306_s5 = sshll.u32 %s5164_s4, 7  ;;  %s4951_s4 = scalar_lea.vmem %s6027_s26, 128 }
 0xf93   : > { %3006 = vrot.lane.b32.xlu1 %v2846_v51, %s6134_s3  ;;  %s6025_s24 = scalar_lea.hbm %s6135_s22, %s4306_s5  ;;  %p4952_p11 = scmp.ne.s32.totalorder %s6027_s26, %s4951_s4 }
 0xf95   : > { %p4953_p12 = pnand %p4952_p11, %p5181_p5 }
 0xf96   : > { %3010 = vrot.lane.b32.xlu0 %v2846_v51, %s6133_s29 }
 0xf97   : > { %p4954_p13 = pneg %p4953_p12 }
 0xf9a   : > { %3008 = vrot.lane.b32.xlu0 %v2847_v20, %s6134_s3 }
 0xffc   : > { %v2853_v44 = vpop.permute.xlu1 %2852 }
 0xffd   : > { %v2864_v46 = vsel %vm1643_vm8, %v2853_v44, 0  ;;  %4600 = vmatprep.subr.msk.bf16.mxu1 %vm1643_vm8, %v2853_v44 }
 0xffe   : > { %4539 = vmatpush3.bf16.xpose.msra.mxu1 %v2864_v46 }
0x1000   : > { %v3013_v57 = vpop.permute.xlu1 %3012 }
0x1001   : > { %v3024_v4 = vsel %vm1643_vm8, %v3013_v57, 0 }
0x1004   : > { %v2851_v52 = vpop.permute.xlu0 %2850 }
0x1005   : > { %v2861_v54 = vsel %vm1643_vm8, %v2851_v52, 0  ;;  %4601 = vmatprep.subr.msk.bf16.mxu1 %vm1643_vm8, %v2851_v52  ;;  %v3007_v58 = vpop.permute.xlu1 %3006 }
0x1006   : > { %4541 = vmatpush3.bf16.xpose.msra.mxu1 %v2861_v54 }
0x1007   : > { %4602 = vmatprep.subr.msk.bf16.mxu1 %vm1643_vm8, %v3013_v57 }
0x1008   : > { %v3011_v63 = vpop.permute.xlu0 %3010 }
0x1009   : > { %v3021_v56 = vsel %vm1643_vm8, %v3011_v63, 0 }
0x100c   : > { %v3009_v2 = vpop.permute.xlu0 %3008 }
0x100d   : > { %4543 = vmatmul.mubr.msk.bf16.vlgmr.msra.gmra.mxu1 %vm1643_vm8, %v2847_v20 }
0x100e   : > { %4555 = vmatpush3.bf16.xpose.msra.mxu1 %v3024_v4  ;;  %4558 = vmatprep.mubr.msk.bf16.mxu1 %vm1643_vm8, %v3007_v58 }
0x100f   : > { %4603 = vmatprep.subr.msk.bf16.mxu1 %vm1643_vm8, %v3011_v63 }
0x1016   : > { %4557 = vmatpush3.bf16.xpose.msra.mxu1 %v3021_v56 }
0x101d   : > { %4559 = vmatmul.mubr.msk.bf16.vlgmr.msra.gmra.mxu1 %vm1643_vm8, %v3009_v2 }
0x101e   : > { %3490 = vmatprep.mubr.bf16.mxu1 %v5013_v0 }
0x10cd   : > { %v4544_v3 = vpop.f32.mrf.mxu1 }
0x10ce   : > { %v2920_v7 = vsel %vm1747_vm15, %v4544_v3, -inf }
0x10cf   : > { %v2900_v6 = vpop.f32.mrf.mxu1 }
0x10d0   : > { %v2914_v8 = vsel %vm1740_vm14, %v2900_v6, -inf }
0x10d1   : > { %2915 = vmax.xlane.f32.xlu1 %v2914_v8  ;;  %v4545_v5 = vpop.f32.mrf.mxu1 }
0x10d3   : > { %v2903_v1 = vpop.f32.mrf.mxu1 }
0x10d4   : > { %v2917_v61 = vsel %vm1740_vm14, %v2903_v1, -inf }
0x10d5   : > { %2918 = vmax.xlane.f32.xlu0 %v2917_v61 }
0x10d9   : > { %2921 = vmax.xlane.f32.xlu0 %v2920_v7 }
0x10dd   : > { %v4560_v10 = vpop.f32.mrf.mxu1 }
0x10de   : > { %v3080_v21 = vsel %vm1747_vm15, %v4560_v10, -inf }
0x10df   : > { %v3060_v11 = vpop.f32.mrf.mxu1 }
0x10e0   : > { %v3074_v13 = vsel %vm1740_vm14, %v3060_v11, -inf }
0x10e1   : > { %3075 = vmax.xlane.f32.xlu1 %v3074_v13  ;;  %v4561_v16 = vpop.f32.mrf.mxu1 }
0x10e3   : > { %v3063_v17 = vpop.f32.mrf.mxu1 }
0x10e4   : > { %v3077_v22 = vsel %vm1740_vm14, %v3063_v17, -inf }
0x10e5   : > { %3081 = vmax.xlane.f32.xlu1 %v3080_v21  ;;  %3078 = vmax.xlane.f32.xlu0 %v3077_v22 }
0x115a   : > { %v2916_v27 = vpop.xlane.xlu1 %2915 }
0x115b   : > { %v2923_v34 = vsub.f32 %v2900_v6, %v2916_v27 }
0x115d   : > { %v2926_v19 = vmul.f32 1.442695, %v2923_v34  ;;  %v4766_v34 = vld [vmem:[%s6082_s15 + $0x30] sm:$0xff]  }
0x115e   : > { %v2919_v29 = vpop.xlane.xlu0 %2918 }
0x115f   : > { %v2924_v32 = vsub.f32 %v2903_v1, %v2919_v29  ;;  %v4765_v29 = vld [vmem:[%s6082_s15 + $0x38] sm:$0xff]  }
0x1161   : > { %v2928_v37 = vmul.f32 1.442695, %v2924_v32 }
0x1162   : > { %v2922_v38 = vpop.xlane.xlu0 %2921 }
0x1163   : > { %4891 = vpow2.f32 %v2928_v37  ;;  %v2925_v59 = vsub.f32 %v4544_v3, %v2922_v38  ;;  %v4767_v37 = vld [vmem:[%s6082_s15 + $0x28] sm:$0xff]  }
0x1165   : > { %v2930_v25 = vmul.f32 1.442695, %v2925_v59 }
0x1167   : > { %4893 = vpow2.f32 %v2930_v25 }
0x1168   : > { %4895 = vpow2.f32 %v2926_v19  ;;  %v4768_v19 = vld [vmem:[%s6082_s15 + $0x20] sm:$0xff]  }
0x116a   : > { %v3076_v14 = vpop.xlane.xlu1 %3075 }
0x116b   : > { %v3083_v15 = vsub.f32 %v3060_v11, %v3076_v14 }
0x116d   : > { %v3086_v36 = vmul.f32 1.442695, %v3083_v15 }
0x116e   : > { %v3082_v20 = vpop.xlane.xlu1 %3081  ;;  %v3079_v12 = vpop.xlane.xlu0 %3078 }
0x116f   : > { %v3085_v26 = vsub.f32 %v4560_v10, %v3082_v20  ;;  %v3084_v30 = vsub.f32 %v3063_v17, %v3079_v12 }
0x1170   : > { %v4892_v40 = vpop.eup %4891 }
0x1171   : > { %v3090_v39 = vmul.f32 1.442695, %v3085_v26  ;;  %v3088_v35 = vmul.f32 1.442695, %v3084_v30  ;;  %v2935_v41 = vsel %vm1740_vm14, %v4892_v40, 0.0 }
0x1172   : > { %2936 = vadd.xlane.f32.xlu1 %v2935_v41 }
0x1173   : > { %4897 = vpow2.f32 %v3090_v39 }
0x1174   : > { %v4894_v31 = vpop.eup %4893  ;;  %4899 = vpow2.f32 %v3088_v35 }
0x1175   : > { %4901 = vpow2.f32 %v3086_v36  ;;  %v2938_v43 = vsel %vm1747_vm15, %v4894_v31, 0.0  ;;  %v4896_v45 = vpop.eup %4895 }
0x1176   : > { %2939 = vadd.xlane.f32.xlu0 %v2938_v43  ;;  %v2932_v48 = vsel %vm1740_vm14, %v4896_v45, 0.0 }
0x117a   : > { %2933 = vadd.xlane.f32.xlu0 %v2932_v48 }
0x1180   : > { %v4898_v49 = vpop.eup %4897 }
0x1181   : > { %v4900_v50 = vpop.eup %4899  ;;  %v3098_v51 = vsel %vm1747_vm15, %v4898_v49, 0.0 }
0x1182   : > { %v4902_v44 = vpop.eup %4901  ;;  %3099 = vadd.xlane.f32.xlu1 %v3098_v51  ;;  %v3095_v46 = vsel %vm1740_vm14, %v4900_v50, 0.0 }
0x1183   : > { %3096 = vadd.xlane.f32.xlu0 %v3095_v46  ;;  %v3092_v52 = vsel %vm1740_vm14, %v4902_v44, 0.0 }
0x1186   : > { %3093 = vadd.xlane.f32.xlu1 %v3092_v52 }
0x1197   : > { %3111 = vrot.lane.b32.xlu1 %v5742_v60, %s6134_s3 }
0x1199   : > { %3113 = vrot.lane.b32.xlu0 %v5736_v55, %s6134_s3  ;;  %s5027_s3 = smov [#allocation3]  }
0x119a   : > { %s4955_s1 = sshll.u32 %s5027_s3, 4  ;;  %s4956_s1 = int_to_ptr.vmem [resolvable:$false] %s4955_s1 }
0x119b   : > { %s4957_s5 = scalar_lea.vmem %s4956_s1, 256  ;;  %p4958_p0 = scmp.lt.s32.totalorder %s6027_s26, %s4956_s1 }
0x119c   : > { %p4959_p1 = scmp.lt.s32.totalorder %s4957_s5, %s4951_s4 }
0x119e   : > { %p4960_p2 = por %p4959_p1, %p4958_p0 }
0x11a0   : > { %p4961_p3 = pnand %p4960_p2, %p4954_p13 }
0x11fb   : > { %v2937_v54 = vpop.xlane.xlu1 %2936 }
0x11ff   : > { %v2940_v57 = vpop.xlane.xlu0 %2939 }
0x1200   : > { %4903 = vrcp.f32 %v2940_v57 }
0x1201   : > { %4905 = vrcp.f32 %v2937_v54 }
0x1203   : > { %v2934_v4 = vpop.xlane.xlu0 %2933 }
0x1204   : > { %4907 = vrcp.f32 %v2934_v4 }
0x120b   : > { %v3100_v58 = vpop.xlane.xlu1 %3099 }
0x120c   : > { %v3097_v63 = vpop.xlane.xlu0 %3096  ;;  %4909 = vrcp.f32 %v3100_v58 }
0x120d   : > { %v4904_v56 = vpop.eup %4903  ;;  %4911 = vrcp.f32 %v3097_v63 }
0x120e   : > { %v4906_v2 = vpop.eup %4905  ;;  %v2946_v60 = vmul.f32 %v4904_v56, %v4894_v31 }
0x120f   : > { %v3094_v3 = vpop.xlane.xlu1 %3093  ;;  %v2945_v1 = vmul.f32 %v4906_v2, %v4892_v40 }
0x1210   : > { %4913 = vrcp.f32 %v3094_v3  ;;  %v3114_v6 = vpop.permute.xlu0 %3113  ;;  %v2948_v7 = vpack.c.bf16 %v2946_v60, %v2946_v60 }
0x1211   : > { %v4908_v8 = vpop.eup %4907  ;;  %v3123_v5 = vand.u32 %v3114_v6, %v5480_v62 }
0x1212   : > { %v2944_v55 = vmul.f32 %v4908_v8, %v4896_v45 }
0x1213   : > { %4562 = vmatprep.subr.bf16.mxu0 %v3123_v5  ;;  %v3112_v10 = vpop.permute.xlu1 %3111 }
0x1214   : > { %v2947_v61 = vpack.c.bf16 %v2945_v1, %v2944_v55 }
0x1216   : > { %4550 = vmatprep.mubr.msk.bf16.mxu0 %vm1740_vm14, %v2947_v61 }
0x1217   : > { %4551 = vmatmul.mubr.msk.bf16.vlgmr.msra.gmra.mxu0 %vm1740_vm14, %v2948_v7  ;;  %v4771_v7 = vld [vmem:[%s6083_s16 + $0xe4] ss:$16 sps:$4 sm:$0xff]  }
0x1218   : > { %4563 = vmatpush3.bf16.msra.mxu0 %v3123_v5  ;;  %3466 = vmatprep.subr.bf16.mxu1 %v4771_v7  ;;  %v4811_v7 = vld [vmem:[%s6087_s20 + $0x10] sm:$0xff]  }
0x1219   : > { %4564 = vmatprep.subr.bf16.mxu0 %v3112_v10  ;;  %v4910_v11 = vpop.eup %4909 }
0x121a   : > { %v4912_v13 = vpop.eup %4911  ;;  %v3106_v17 = vmul.f32 %v4910_v11, %v4898_v49  ;;  %v4769_v11 = vld [vmem:[%s6083_s16 + $0xe0] ss:$16 sps:$4 sm:$0xff]  }
0x121b   : > { %v3105_v22 = vmul.f32 %v4912_v13, %v4900_v50  ;;  %v4772_v13 = vld [vmem:[%s6083_s16 + $0xe8] ss:$16 sps:$4 sm:$0xff]   ;;  %3467 = vmatpush1.bf16.msra.mxu1 %v4769_v11  ;;  %v4222_v11 = vld [vmem:[%s6084_s17 + $0x4] sm:$0xf] }
0x121c   : > { %4565 = vmatpush3.bf16.msra.mxu0 %v3112_v10  ;;  %v3108_v27 = vpack.c.bf16 %v3106_v17, %v3106_v17  ;;  %v4774_v10 = vld [vmem:[%s6083_s16 + $0xec] ss:$16 sps:$4 sm:$0xff]  }
0x121d   : > { %v4914_v16 = vpop.eup %4913  ;;  %4570 = vmatprep.subr.bf16.mxu0 %v4765_v29  ;;  %v4780_v17 = vld [vmem:[%s6083_s16 + $0xcc] ss:$16 sps:$4 sm:$0xff]  }
0x121e   : > { %v3104_v21 = vmul.f32 %v4914_v16, %v4902_v44  ;;  %v4777_v16 = vld [vmem:[%s6083_s16 + $0xc4] ss:$16 sps:$4 sm:$0xff]  }
0x121f   : > { %3468 = vmatprep.subr.bf16.mxu1 %v4777_v16  ;;  %v3367_v16 = vrot.slane %v4222_v11, %v2194_v9 }
0x1220   : > { %v3107_v62 = vpack.c.bf16 %v3105_v22, %v3104_v21  ;;  %v4775_v21 = vld [vmem:[%s6083_s16 + $0xc0] ss:$16 sps:$4 sm:$0xff]   ;;  %v4778_v22 = vld [vmem:[%s6083_s16 + $0xc8] ss:$16 sps:$4 sm:$0xff]  }
0x1221   : > { %3469 = vmatpush1.bf16.msra.mxu1 %v4775_v21 }
0x1222   : > { %4566 = vmatprep.mubr.msk.bf16.mxu0 %vm1740_vm14, %v3107_v62  ;;  %v4783_v62 = vld [vmem:[%s6083_s16 + $0xa4] ss:$16 sps:$4 sm:$0xff]  }
0x1223   : > { %4567 = vmatmul.mubr.msk.bf16.vlgmr.msra.gmra.mxu0 %vm1740_vm14, %v3108_v27  ;;  %v4786_v27 = vld [vmem:[%s6083_s16 + $0xac] ss:$16 sps:$4 sm:$0xff]   ;;  %3470 = vmatprep.subr.bf16.mxu1 %v4783_v62 }
0x1224   : > { %4571 = vmatpush3.bf16.msra.mxu0 %v4765_v29  ;;  %v4781_v29 = vld [vmem:[%s6083_s16 + $0xa0] ss:$16 sps:$4 sm:$0xff]  }
0x1225   : > { %4572 = vmatprep.subr.bf16.mxu0 %v4766_v34  ;;  %3471 = vmatpush1.bf16.msra.mxu1 %v4781_v29 }
0x1228   : > { %4573 = vmatpush3.bf16.msra.mxu0 %v4766_v34  ;;  %v4787_v34 = vld [vmem:[%s6083_s16 + $0x80] ss:$16 sps:$4 sm:$0xff]  }
0x1229   : > { %4574 = vmatprep.subr.bf16.mxu0 %v4767_v37 }
0x122c   : > { %4575 = vmatpush3.bf16.msra.mxu0 %v4767_v37  ;;  %v4789_v37 = vld [vmem:[%s6083_s16 + $0x84] ss:$16 sps:$4 sm:$0xff]  }
0x122d   : > { %4576 = vmatprep.subr.bf16.mxu0 %v4768_v19  ;;  %3472 = vmatprep.subr.bf16.mxu1 %v4789_v37 }
0x122e   : > { %3473 = vmatpush1.bf16.msra.mxu1 %v4787_v34 }
0x1230   : > { %4577 = vmatpush3.bf16.msra.mxu0 %v4768_v19 }
0x1231   : > { %3517 = vmatprep.subr.bf16.mxu0 %v4774_v10  ;;  %v4812_v10 = vld [vmem:[%s6087_s20 + $0x18] sm:$0xff]  }
0x12d7   : > { %v4552_v32 = vpop.f32.mrf.mxu0 }
0x12d9   : > { %v2992_v38 = vpop.f32.mrf.mxu0 }
0x12db   : > { %v4553_v59 = vpop.f32.mrf.mxu0 }
0x12dc   : > { %v4792_v59 = vld [vmem:[%s6083_s16 + $0x8c] ss:$16 sps:$4 sm:$0xff]  }
0x12dd   : > { %v2995_v25 = vpop.f32.mrf.mxu0 }
0x12e3   : > { %v4568_v14 = vpop.f32.mrf.mxu0 }
0x12e4   : > { %3180 = vrot.lane.b32.xlu0 %v4568_v14, %s6133_s29 }
0x12e5   : > { %v3159_v15 = vpop.f32.mrf.mxu0 }
0x12e7   : > { %v4569_v20 = vpop.f32.mrf.mxu0 }
0x12e9   : > { %v3162_v12 = vpop.f32.mrf.mxu0 }
0x12ea   : > { %v4667_v26 = vpack.i.bf16 %v3162_v12, %v3159_v15 }
0x12ec   : > { %4668 = vrot.lane.b32.xlu1 %v4667_v26, %s6133_s29  ;;  %s3953_s29 = scalar_lea.sflag [#allocation4], %s694_s25 }
0x1356   : > { %v3181_v30 = vpop.permute.xlu0 %3180 }
0x1357   : > { %v3187_v35 = vsel %vm1643_vm8, %v4552_v32, %v3181_v30  ;;  %v4784_v32 = vld [vmem:[%s6083_s16 + $0xa8] ss:$16 sps:$4 sm:$0xff]  }
0x1358   : > { %v3198_v45 = vpack.c.bf16 %v3187_v35, %v3187_v35 }
0x135e   : > { %v4669_v40 = vpop.permute.xlu1 %4668 }
0x135f   : > { %v4671_v36 = vunpack.i.h.bf16 %v4669_v40  ;;  %v4670_v39 = vunpack.i.l.bf16 %v4669_v40 }
0x1361   : > { %v3186_v41 = vsel %vm1643_vm8, %v2995_v25, %v4671_v36  ;;  %v3185_v31 = vsel %vm1643_vm8, %v2992_v38, %v4670_v39  ;;  %v4790_v38 = vld [vmem:[%s6083_s16 + $0x88] ss:$16 sps:$4 sm:$0xff]  }
0x1362   : > { %v3197_v43 = vpack.c.bf16 %v3186_v41, %v3185_v31  ;;  %v4205_v41 = vld [vmem:[%s6080_s13 + $0x3] ss:$0 sm:$0xff] }
0x1364   : > { %4578 = vmatprep.mubr.msk.bf16.mxu0 %vm1209_vm6, %v3197_v43 }
0x1365   : > { %4579 = vmatmul.mubr.msk.bf16.vlgmr.msra.gmra.mxu0 %vm1209_vm6, %v3198_v45 }
0x1366   : > { %3541 = vmatprep.mubr.bf16.mxu0 %v5013_v0  ;;  %3518 = vmatpush1.bf16.msra.mxu0 %v4772_v13  ;;  %v3363_v13 = vrot.slane %v4222_v11, %v2190_v28 }
0x1367   : > { %3519 = vmatprep.subr.bf16.mxu0 %v4780_v17 }
0x136a   : > { %3520 = vmatpush1.bf16.msra.mxu0 %v4778_v22 }
0x136b   : > { %3521 = vmatprep.subr.bf16.mxu0 %v4786_v27 }
0x136e   : > { %3522 = vmatpush1.bf16.msra.mxu0 %v4784_v32 }
0x136f   : > { %3523 = vmatprep.subr.bf16.mxu0 %v4792_v59 }
0x1372   : > { %3524 = vmatpush1.bf16.msra.mxu0 %v4790_v38 }
0x1373   : > { %4582 = vmatprep.subr.bf16.mxu0 %v5014_v18 }
0x1425   : > { %v4580_v48 = vpop.f32.mrf.mxu0 }
0x1426   : > { %v5857_v54 = vadd.f32 %v4580_v48, %v5695_v53 }
0x1427   : > { %v3263_v49 = vpop.f32.mrf.mxu0 }
0x1428   : > { %v5849_v50 = vadd.f32 %v3263_v49, %v5685_v42  ;;  %v3288_v42 = vsel %vm1439_vm7, %v5857_v54, 0.0 }
0x1429   : > { %v4581_v51 = vpop.f32.mrf.mxu0 }
0x142a   : > { %v3282_v44 = vsel %vm1209_vm6, %v5849_v50, 0.0 }
0x142b   : > { %3283 = vadd.xlane.f32.xlu1 %v3282_v44  ;;  %v3266_v46 = vpop.f32.mrf.mxu0 }
0x142c   : > { %v5854_v52 = vadd.f32 %v3266_v46, %v5690_v47 }
0x142e   : > { %v3285_v57 = vsel %vm1209_vm6, %v5854_v52, 0.0 }
0x142f   : > { %3286 = vadd.xlane.f32.xlu0 %v3285_v57  ;;  %v4793_v57 = vld [vmem:[%s6085_s18 + $0xf8] sm:$0xff]  }
0x1430   : > { %4419 = vmatprep.subr.bf16.mxu1 %v4793_v57 }
0x1433   : > { %3289 = vadd.xlane.f32.xlu0 %v3288_v42  ;;  %v4794_v42 = vld [vmem:[%s6085_s18 + $0xb8] sm:$0xff]  }
0x14b4   : > { %v3284_v4 = vpop.xlane.xlu1 %3283 }
0x14b5   : > { %v3291_v58 = vmul.f32 0.015625, %v3284_v4  ;;  %v4796_v4 = vld [vmem:[%s6085_s18 + $0xb0] sm:$0xff]  }
0x14b7   : > { %v3294_v63 = vsub.f32 %v5849_v50, %v3291_v58  ;;  %v4797_v58 = vld [vmem:[%s6085_s18 + $0xe8] sm:$0xff]  }
0x14b8   : > { %v3287_v56 = vpop.xlane.xlu0 %3286 }
0x14b9   : > { %v3292_v2 = vmul.f32 0.015625, %v3287_v56  ;;  %v3297_v3 = vmul.f32 %v3294_v63, %v3294_v63  ;;  %v4799_v56 = vld [vmem:[%s6085_s18 + $0xe0] sm:$0xff]  }
0x14bb   : > { %v3295_v47 = vsub.f32 %v5854_v52, %v3292_v2  ;;  %v3300_v53 = vsel %vm1209_vm6, %v3297_v3, 0.0  ;;  %v4800_v2 = vld [vmem:[%s6085_s18 + $0xa0] sm:$0xff]   ;;  %v4801_v3 = vld [vmem:[%s6085_s18 + $0xd8] sm:$0xff]  }
0x14bc   : > { %3301 = vadd.xlane.f32.xlu1 %v3300_v53  ;;  %v3290_v6 = vpop.xlane.xlu0 %3289  ;;  %v4803_v53 = vld [vmem:[%s6085_s18 + $0xd0] sm:$0xff]  }
0x14bd   : > { %v3293_v8 = vmul.f32 0.015625, %v3290_v6  ;;  %v3298_v60 = vmul.f32 %v3295_v47, %v3295_v47  ;;  %v4804_v6 = vld [vmem:[%s6085_s18 + $0x90] sm:$0xff]  }
0x14bf   : > { %v3296_v5 = vsub.f32 %v5857_v54, %v3293_v8  ;;  %v3303_v55 = vsel %vm1209_vm6, %v3298_v60, 0.0  ;;  %v4805_v8 = vld [vmem:[%s6085_s18 + $0xc8] sm:$0xff]  }
0x14c0   : > { %3304 = vadd.xlane.f32.xlu0 %v3303_v55  ;;  %v4806_v60 = vld [vmem:[%s6085_s18 + $0x88] sm:$0xff]   ;;  %v4808_v55 = vld [vmem:[%s6085_s18 + $0x80] sm:$0xff]  }
0x14c1   : > { %v3299_v1 = vmul.f32 %v3296_v5, %v3296_v5 }
0x14c3   : > { %v3306_v61 = vsel %vm1439_vm7, %v3299_v1, 0.0  ;;  %v4809_v1 = vld [vmem:[%s6087_s20] sm:$0xff]  }
0x14c4   : > { %3307 = vadd.xlane.f32.xlu1 %v3306_v61  ;;  %v4810_v61 = vld [vmem:[%s6087_s20 + $0x8] sm:$0xff]  }
0x14ed   : > { %3837 = vxpose.xlu0.c.b16.start [1/4] (short) (narrow) %v4809_v1, 16 }
0x14f1   : > { %3838 = vxpose.xlu0.c.b16.cont [2/4] (short) (narrow) %v4810_v61, 16 }
0x14f5   : > { %3839 = vxpose.xlu0.c.b16.cont [3/4] (short) (narrow) %v4811_v7, 16 }
0x14f9   : > { %3840 = vxpose.xlu0.c.b16.end [4/4] (short) (narrow) %v4812_v10, 16 }
0x1545   : > { %v3302_v19 = vpop.xlane.xlu1 %3301 }
0x1546   : > { %v3309_v25 = vmul.f32 0.015625, %v3302_v19 }
0x1548   : > { %v3312_v14 = vadd.f32 1e-05, %v3309_v25 }
0x1549   : > { %v3305_v15 = vpop.xlane.xlu0 %3304 }
0x154a   : > { %4915 = vrsqrt.f32 %v3312_v14  ;;  %v3310_v20 = vmul.f32 0.015625, %v3305_v15 }
0x154c   : > { %v3313_v12 = vadd.f32 1e-05, %v3310_v20 }
0x154d   : > { %v3308_v26 = vpop.xlane.xlu1 %3307 }
0x154e   : > { %4917 = vrsqrt.f32 %v3313_v12  ;;  %v3311_v30 = vmul.f32 0.015625, %v3308_v26 }
0x1550   : > { %v3314_v40 = vadd.f32 1e-05, %v3311_v30 }
0x1552   : > { %4919 = vrsqrt.f32 %v3314_v40 }
0x1557   : > { %v4916_v36 = vpop.eup %4915 }
0x1558   : > { %v3318_v39 = vmul.f32 %v4916_v36, %v3294_v63  ;;  %v4798_v63 = vld [vmem:[%s6085_s18 + $0xa8] sm:$0xff]  }
0x155a   : > { %v3327_v43 = vmul.f32 %v4205_v41, %v3318_v39 }
0x155b   : > { %v4918_v35 = vpop.eup %4917 }
0x155c   : > { %v3319_v31 = vmul.f32 %v4918_v35, %v3295_v47  ;;  %v4802_v47 = vld [vmem:[%s6085_s18 + $0x98] sm:$0xff]  }
0x155e   : > { %v3328_v45 = vmul.f32 %v4205_v41, %v3319_v31 }
0x155f   : > { %v4920_v48 = vpop.eup %4919 }
0x1560   : > { %v3347_v49 = vpack.c.bf16 %v3328_v45, %v3327_v43  ;;  %v3320_v51 = vmul.f32 %v4920_v48, %v3296_v5  ;;  %v4807_v5 = vld [vmem:[%s6085_s18 + $0xc0] sm:$0xff]  }
0x1562   : > { %4239 = vmatmul.mubr.msk.bf16.vlgmr.msra.gmra.mxu1 %vm1209_vm6, %v3347_v49  ;;  %4241 = vmatmul.mubr.msk.bf16.vlgmr.msra.gmra.mxu0 %vm1209_vm6, %v3347_v49  ;;  %v3329_v44 = vmul.f32 %v4205_v41, %v3320_v51 }
0x1563   : > { %3500 = vmatprep.mubr.bf16.mxu1 %v5013_v0  ;;  %3551 = vmatprep.mubr.bf16.mxu0 %v5013_v0  ;;  %v4795_v0 = vld [vmem:[%s6085_s18 + $0xf0] sm:$0xff]  }
0x1564   : > { %v3348_v46 = vpack.c.bf16 %v3329_v44, %v3329_v44  ;;  %4420 = vmatpush3.bf16.msra.mxu1 %v4794_v42 }
0x1565   : > { %4421 = vmatprep.subr.bf16.mxu1 %v4795_v0 }
0x1568   : > { %4422 = vmatpush3.bf16.msra.mxu1 %v4796_v4 }
0x1569   : > { %4423 = vmatprep.subr.bf16.mxu1 %v4797_v58 }
0x156a   : > { %4240 = vmatmul.mubr.msk.bf16.gmra.mxu1 %vm1209_vm6, %v3348_v46  ;;  %4242 = vmatmul.mubr.msk.bf16.gmra.mxu0 %vm1209_vm6, %v3348_v46 }
0x156b   : > { %4586 = vmatprep.mubr.msk.bf16.mxu0 %vm5015_vm0, %v5014_v18 }
0x156c   : > { %4424 = vmatpush3.bf16.msra.mxu1 %v4798_v63 }
0x156d   : > { %4425 = vmatprep.subr.bf16.mxu1 %v4799_v56 }
0x1570   : > { %4426 = vmatpush3.bf16.msra.mxu1 %v4800_v2 }
0x1571   : > { %4427 = vmatprep.subr.bf16.mxu1 %v4801_v3  ;;  %v3359_v3 = vrot.slane %v4222_v11, %v2186_v33 }
0x1574   : > { %4428 = vmatpush3.bf16.msra.mxu1 %v4802_v47 }
0x1575   : > { %4429 = vmatprep.subr.bf16.mxu1 %v4803_v53  ;;  %v3355_v53 = vrot.slane %v4222_v11, %v5266_v24 }
0x1578   : > { %4430 = vmatpush3.bf16.msra.mxu1 %v4804_v6 }
0x1579   : > { %4431 = vmatprep.subr.bf16.mxu1 %v4805_v8 }
0x157c   : > { %4432 = vmatpush3.bf16.msra.mxu1 %v4806_v60 }
0x157d   : > { %4433 = vmatprep.subr.bf16.mxu1 %v4807_v5 }
0x1580   : > { %4434 = vmatpush3.bf16.msra.mxu1 %v4808_v55 }
0x1622   : > { %v5996_v17 = vpop.f32.mrf.mxu1  ;;  %v3543_v21 = vpop.f32.mrf.mxu0 }
0x1623   : > { %v3544_v22 = vadd.f32 %v3543_v21, %v3363_v13  ;;  %v3493_v10 = vadd.f32 %v5996_v17, %v3355_v53 }
0x1624   : > { %v3494_v62 = vpop.f32.mrf.mxu1  ;;  %v3545_v27 = vpop.f32.mrf.mxu0 }
0x1625   : > { %v4243_v29 = vmul.f32 -1.442695, %v3544_v22  ;;  %v3546_v32 = vadd.f32 %v3545_v27, %v3367_v16  ;;  %v3495_v1 = vadd.f32 %v3494_v62, %v3359_v3 }
0x1626   : > { %v3496_v34 = vpop.f32.mrf.mxu1  ;;  %v3547_v37 = vpop.f32.mrf.mxu0 }
0x1627   : > { %4921 = vpow2.f32 %v4243_v29  ;;  %v4244_v38 = vmul.f32 -1.442695, %v3546_v32  ;;  %v3548_v59 = vadd.f32 %v3547_v37, %v3363_v13  ;;  %v3497_v55 = vadd.f32 %v3496_v34, %v3355_v53 }
0x1628   : > { %v3498_v19 = vpop.f32.mrf.mxu1  ;;  %v3549_v25 = vpop.f32.mrf.mxu0 }
0x1629   : > { %4923 = vpow2.f32 %v4244_v38  ;;  %v4245_v28 = vmul.f32 -1.442695, %v3548_v59  ;;  %v3550_v14 = vadd.f32 %v3549_v25, %v3367_v16  ;;  %v3499_v61 = vadd.f32 %v3498_v19, %v3359_v3 }
0x162a   : > { %v3502_v15 = vpop.f32.mrf.mxu1  ;;  %v3553_v9 = vpop.f32.mrf.mxu0 }
0x162b   : > { %4925 = vpow2.f32 %v4245_v28  ;;  %v4246_v20 = vmul.f32 -1.442695, %v3550_v14  ;;  %v3554_v12 = vadd.f32 %v3553_v9, %v3363_v13 }
0x162c   : > { %v3504_v26 = vpop.f32.mrf.mxu1  ;;  %v3555_v30 = vpop.f32.mrf.mxu0 }
0x162d   : > { %4927 = vpow2.f32 %v4246_v20  ;;  %v4247_v40 = vmul.f32 -1.442695, %v3554_v12  ;;  %v3556_v36 = vadd.f32 %v3555_v30, %v3367_v16  ;;  %v3505_v33 = vadd.f32 %v3504_v26, %v3359_v3 }
0x162e   : > { %v3506_v39 = vpop.f32.mrf.mxu1  ;;  %v3557_v35 = vpop.f32.mrf.mxu0 }
0x162f   : > { %4929 = vpow2.f32 %v4247_v40  ;;  %v4248_v41 = vmul.f32 -1.442695, %v3556_v36 }
0x1630   : > { %v3507_v31 = vpop.f32.mrf.mxu1  ;;  %v3558_v43 = vpop.f32.mrf.mxu0 }
0x1631   : > { %4931 = vpow2.f32 %v4248_v41 }
0x1634   : > { %v4922_v45 = vpop.eup %4921 }
0x1635   : > { %v3578_v49 = vadd.f32 1.0, %v4922_v45 }
0x1636   : > { %v4924_v48 = vpop.eup %4923 }
0x1637   : > { %v3579_v51 = vadd.f32 1.0, %v4924_v48 }
0x1638   : > { %v4926_v44 = vpop.eup %4925 }
0x1639   : > { %4933 = vrcp.f32 %v3579_v51  ;;  %v3580_v46 = vadd.f32 1.0, %v4926_v44 }
0x163a   : > { %v4928_v57 = vpop.eup %4927  ;;  %4935 = vrcp.f32 %v3578_v49 }
0x163b   : > { %4937 = vrcp.f32 %v3580_v46  ;;  %v3581_v42 = vadd.f32 1.0, %v4928_v57 }
0x163c   : > { %v4930_v0 = vpop.eup %4929 }
0x163d   : > { %4939 = vrcp.f32 %v3581_v42  ;;  %v3582_v4 = vadd.f32 1.0, %v4930_v0  ;;  %v3902_v42 = vld [vmem:[%s6088_s21] sm:$0xf] }
0x163e   : > { %v4932_v58 = vpop.eup %4931 }
0x163f   : > { %v3583_v63 = vadd.f32 1.0, %v4932_v58  ;;  %4941 = vrcp.f32 %v3582_v4 }
0x1641   : > { %4943 = vrcp.f32 %v3583_v63 }
0x1646   : > { %v4934_v56 = vpop.eup %4933 }
0x1647   : > { %v4936_v2 = vpop.eup %4935  ;;  %v3597_v6 = vmul.f32 %v4934_v56, %v3546_v32 }
0x1648   : > { %v4938_v47 = vpop.eup %4937  ;;  %v3596_v5 = vmul.f32 %v4936_v2, %v3544_v22  ;;  %v3503_v22 = vadd.f32 %v3502_v15, %v3355_v53  ;;  %v4298_v15 = vld [vmem:[%s6086_s19 + $0x1] ss:$0 sm:$0xff] }
0x1649   : > { %v3598_v8 = vmul.f32 %v4938_v47, %v3548_v59  ;;  %v3603_v21 = vmul.f32 %v3597_v6, %v3495_v1 }
0x164a   : > { %v4940_v60 = vpop.eup %4939  ;;  %v3602_v23 = vmul.f32 %v3596_v5, %v3493_v10 }
0x164b   : > { %v3599_v7 = vmul.f32 %v4940_v60, %v3550_v14  ;;  %v3604_v13 = vmul.f32 %v3598_v8, %v3497_v55 }
0x164c   : > { %v4942_v16 = vpop.eup %4941 }
0x164d   : > { %v3605_v27 = vmul.f32 %v3599_v7, %v3499_v61  ;;  %v3641_v24 = vpack.c.bf16 %v3604_v13, %v3602_v23  ;;  %v3600_v11 = vmul.f32 %v4942_v16, %v3554_v12 }
0x164e   : > { %v4944_v29 = vpop.eup %4943 }
0x164f   : > { %v3601_v37 = vmul.f32 %v4944_v29, %v3556_v36  ;;  %v3642_v38 = vpack.c.bf16 %v3605_v27, %v3603_v21  ;;  %v3606_v34 = vmul.f32 %v3600_v11, %v3503_v22 }
0x1651   : > { %3773 = vmatprep.mubr.bf16.mxu1 %v3642_v38  ;;  %v3607_v32 = vmul.f32 %v3601_v37, %v3505_v33  ;;  %v3643_v59 = vpack.c.bf16 %v3606_v34, %v3606_v34 }
0x1652   : > { %3774 = vmatmul.mubr.bf16.vlgmr.msra.gmra.mxu1 %v3641_v24 }
0x1653   : > { %v3644_v62 = vpack.c.bf16 %v3607_v32, %v3607_v32 }
0x1655   : > { %3781 = vmatprep.mubr.bf16.mxu1 %v3644_v62 }
0x165a   : > { %3782 = vmatmul.mubr.bf16.gmra.mxu1 %v3643_v59 }
0x1712   : > { %v4435_v17 = vpop.f32.mrf.mxu1 }
0x1714   : > { %v4436_v19 = vpop.f32.mrf.mxu1 }
0x1715   : > { %v4437_v40 = vadd.f32 %v4436_v19, %v4435_v17 }
0x1716   : > { %v4438_v25 = vpop.f32.mrf.mxu1 }
0x1717   : > { %v3789_v41 = vadd.f32 %v4437_v40, %v5849_v50 }
0x1718   : > { %v4439_v28 = vpop.f32.mrf.mxu1 }
0x1719   : > { %v4440_v20 = vadd.f32 %v4439_v28, %v4438_v25  ;;  %v3800_v48 = vadd.f32 %v4298_v15, %v3789_v41 }
0x171a   : > { %v4441_v14 = vpop.f32.mrf.mxu1 }
0x171b   : > { %v3790_v39 = vadd.f32 %v4440_v20, %v5854_v52  ;;  %v3845_v52 = vpop.trf.xlu0 }
0x171c   : > { %v4442_v9 = vpop.f32.mrf.mxu1 }
0x171d   : > { %v4443_v26 = vadd.f32 %v4442_v9, %v4441_v14  ;;  %v3801_v43 = vadd.f32 %v4298_v15, %v3790_v39 }
0x171e   : > { %v4444_v30 = vpop.f32.mrf.mxu1 }
0x171f   : > { %v3791_v12 = vadd.f32 %v4443_v26, %v5857_v54  ;;  %v3811_v49 = vpack.c.bf16 %v3801_v43, %v3800_v48 }
0x1720   : > { %v4445_v36 = vpop.f32.mrf.mxu1 }
0x1721   : > { %v3802_v35 = vadd.f32 %v4298_v15, %v3791_v12  ;;  %v3857_v54 = vsel %vm1209_vm6, %v3811_v49, 0 }
0x1723   : > { %v3812_v31 = vpack.c.bf16 %v3802_v35, %v3802_v35 }
0x1725   : > { %v3860_v45 = vsel %vm1209_vm6, %v3812_v31, 0 }
0x1726   : > { %4583 = vmatpush3.bf16.xpose.msra.mxu0 %v3860_v45 }
0x1727   : > { %4584 = vmatprep.subr.bf16.mxu0 %v5014_v18 }
0x172e   : > { %4585 = vmatpush3.bf16.xpose.msra.mxu0 %v3857_v54 }
0x172f   : > { %4590 = vmatprep.subr.bf16.mxu0 %v5014_v18 }
0x1735   : > { %4587 = vmatmul.mubr.msk.bf16.vlgmr.msra.gmra.mxu0 %vm1209_vm6, %v3845_v52 }
0x1736   : > { %4592 = vmatprep.mubr.msk.bf16.mxu0 %vm5015_vm0, %v5014_v18 }
0x17f5   : > { %v3896_v50 = vpop.f32.mrf.mxu0 }
0x17f6   : > { %v3903_v51 = vpack.c.bf16 %v3896_v50, %v3896_v50 }
0x17f7   : > { %v4588_v44 = vpop.f32.mrf.mxu0 }
0x17f8   : > { %v3908_v46 = vsel %vm1327_vm4, %v3903_v51, 0 }
0x17f9   : > { %v3899_v57 = vpop.f32.mrf.mxu0  ;;  %4591 = vmatpush3.bf16.msra.mxu0 %v3908_v46 }
0x17fb   : > { %v4589_v0 = vpop.f32.mrf.mxu0 }
0x17fc   : > { %4593 = vmatmul.mubr.msk.bf16.vlgmr.msra.gmra.mxu0 %vm1323_vm5, %v3902_v42 }
0x18bc   : > { %v3944_v18 = vpop.f32.mrf.mxu0 }
0x18bd   : > { %v3950_v4 = vadd.f32 %v3944_v18, %v3896_v50 }
0x18be   : > { %v4594_v58 = vpop.f32.mrf.mxu0 }
0x18bf   : > { %3951 = vst.msk [vmem:[%s696_s27] sm:$0xff] %vm718_vm1, %v3950_v4 }
0x18c0   : > { %v3947_v63 = vpop.f32.mrf.mxu0 }
0x18c1   : > { %4964 = shalt.err (!%p4961_p3)
}
0x18c2   : > { %s4965_s27 = scalar_lea.hbm %s6025_s24, 128  ;;  %s4969_s30 = scalar_lea.hbm %s6135_s22, 256 }
0x18c3   : > { %p4966_p4 = scmp.ne.s32.totalorder %s6025_s24, %s4965_s27  ;;  %p4970_p9 = scmp.lt.s32.totalorder %s6025_s24, %s6135_s22 }
0x18c4   : > { %p4971_p10 = scmp.lt.s32.totalorder %s4969_s30, %s4965_s27 }
0x18c5   : > { %p4967_p7 = pnand %p4966_p4, %p5181_p5 }
0x18c6   : > { %p4972_p11 = por %p4971_p10, %p4970_p9 }
0x18c7   : > { %p4968_p8 = pneg %p4967_p7 }
0x18c9   : > { %p4973_p12 = pnand %p4972_p11, %p4968_p8 }
0x18cb   : > { %4976 = shalt.err (!%p4973_p12)
}
0x18cc   : > { %4608 = dma.vmem_to_hbm [thread:$0]  (%p5181_p5), %s6027_s26, 128, %s6025_s24, %s3953_s29   ;;  %v4595_v56 = vpop.f32.mrf.mxu0 }
0x18cd PF: > { %s6136_s4 = sld [smem:[#allocation8_spill]] }
0x18ce   : > { %s6137_s1 = sld [smem:[#allocation6_spill]] }
0x18d3   : > { %p4614_p13 = scmp.ge.s32.totalorder %s6136_s4, 2 }
0x18d4   : > { %s3978_s25 = sand.u32 1, %s6137_s1  }
0x18d5   : > { %p4611_p0 = pnand %p4614_p13, %p5185_p6  ;;  %s3979_s0 = scalar_lea.sflag [#allocation4], %s3978_s25 }
0x18d7   : > { %p4612_p1 = pneg %p4611_p0 }
0x18d9   : > { %4994 = dma.done.wait (%p4612_p1), %s3979_s0, 128  }
0x18da   : > { %4996 = vsyncadd (%p4612_p1), %s3979_s0, 4294967168  ;;  %s6139_s30 = sld [smem:[#allocation9_spill]]  ;;  %s6142_s3 = smov %s5003_s28 }
0x18db   : > { %s6140_s27 = sld [smem:[#allocation7_spill]] }
0x18dc   : > { %s6141_s29 = sld [smem:[#allocation10_spill]] }
0x18e0   : > { %p32_p2 = scmp.ge.s32.totalorder %s6139_s30, 4  }
0x18e1   : > { %s6143_s28 = smov %s6140_s27 }
0x18e2   :  { %34 = sbr.rel (!%p32_p2) target bundleno = 12 (0xc), region = 159 }
0x18e7   :  { %3984 = vsyncpa [#allocation4], 1 }
0x18e8   :  { %3986 = vsyncpa [#allocation4 + $0x1], 1 }

</bundles_post_ra>
